<compile_context>
chip_gen: v5e
topology: v5e:2x2
jax: 0.10.0
libtpu: 0.0.40
codegen_flags: <defaults>
</compile_context>

<pallas_src>
import jax
import jax.numpy as jnp
from jax.experimental import pallas as pl
from jax.experimental.pallas import tpu as pltpu


def florence2_kernel(p_ref,     # (1, H*W, 9*Cin)  im2col patches for this batch image
                     w1_ref,    # (9*Cin, Hd)      conv1 weight in im2col layout
                     b1_ref,    # (1, Hd)          conv1 bias
                     w2d_ref,   # (9, Hd)          conv2 weights folded with 1x1 decoder
                     bias_ref,  # (1, 1) SMEM      folded (b2 + text) @ wd + bd
                     o_ref,     # (1, 1, H*W)      sigmoid mask (lane-dense)
                     h1_pad):   # VMEM scratch (H+2, W+2, Hd), zero-padded ReLU feature
    HW = p_ref.shape[1]
    Hd = w1_ref.shape[1]
    Hp2, Wp2, _ = h1_pad.shape
    H, W = Hp2 - 2, Wp2 - 2

    # ---- conv1 (3x3, pad=1): single MXU matmul with K = 9*Cin, + bias + ReLU ----
    h1 = jnp.dot(p_ref[0], w1_ref[...], preferred_element_type=jnp.float32)
    h1 = jnp.maximum(h1 + b1_ref[...], 0.0)                    # (HW, Hd)

    # ---- stage ReLU output in zero-padded scratch: zero ONLY the 1-px border ----
    # (border is re-zeroed every step so this stays correct if the grid is
    #  split across TensorCores; interior is fully overwritten below.)
    h1_pad[0:1, :, :] = jnp.zeros((1, Wp2, Hd), jnp.float32)
    h1_pad[H + 1:H + 2, :, :] = jnp.zeros((1, Wp2, Hd), jnp.float32)
    h1_pad[1:H + 1, 0:1, :] = jnp.zeros((H, 1, Hd), jnp.float32)
    h1_pad[1:H + 1, W + 1:W + 2, :] = jnp.zeros((H, 1, Hd), jnp.float32)
    h1_pad[1:H + 1, 1:W + 1, :] = h1.reshape(H, W, Hd)

    # ---- conv2 (3x3) fused with text-add and 1x1 decoder (all linear, exact) ----
    # logits = sum_{tap,c} h1_pad[y+dy, x+dx, c] * w2d[tap, c] + bias'
    acc = jnp.zeros((HW, Hd), jnp.float32)
    for dy in range(3):
        for dx in range(3):
            t = dy * 3 + dx
            tap = h1_pad[dy:dy + H, dx:dx + W, :].reshape(HW, Hd)   # ref-sliced load
            acc = acc + tap * w2d_ref[t:t + 1, :]                   # VPU FMA per tap
    logits = jnp.sum(acc, axis=-1) + bias_ref[0, 0]                 # (HW,) lane reduce
    o_ref[...] = jax.nn.sigmoid(logits).reshape(1, 1, HW)


def florence2_forward(image_nchw, params, text_vec):
    """image_nchw: (B, Cin, H, W) f32.  Returns mask (B, 1, H, W) f32."""
    B, Cin, H, W = image_nchw.shape
    Hd = params["w1"].shape[-1]
    HW = H * W
    hi = jax.lax.Precision.HIGHEST

    # --- layout prep + exact algebraic folding (wrapper side) ---
    # TODO(synk): if the producer can store images NHWC, drop this transpose.
    x = jnp.transpose(image_nchw, (0, 2, 3, 1))                    # NHWC
    xp = jnp.pad(x, ((0, 0), (1, 1), (1, 1), (0, 0)))
    # im2col: 9 taps concatenated along K so conv1 is ONE matmul with K=9*Cin.
    patches = jnp.concatenate(
        [xp[:, dy:dy + H, dx:dx + W, :] for dy in range(3) for dx in range(3)],
        axis=-1).reshape(B, HW, 9 * Cin)
    w1_col = params["w1"].reshape(9 * Cin, Hd)

    # Fold 1x1 decoder + text embedding + biases into conv2 (exact: linear).
    w2d = jnp.einsum("yxio,o->yxi", params["w2"], params["wd"][:, 0],
                     precision=hi).reshape(9, Hd)
    bias_fold = (jnp.sum((params["b2"][0] + text_vec[0]) * params["wd"][:, 0])
                 + params["bd"][0, 0]).reshape(1, 1).astype(jnp.float32)

    out = pl.pallas_call(
        florence2_kernel,
        out_shape=jax.ShapeDtypeStruct((B, 1, HW), jnp.float32),
        grid=(B,),
        in_specs=[
            pl.BlockSpec((1, HW, 9 * Cin), lambda b: (b, 0, 0)),     # patches
            pl.BlockSpec((9 * Cin, Hd), lambda b: (0, 0)),           # w1
            pl.BlockSpec((1, Hd), lambda b: (0, 0)),                 # b1
            pl.BlockSpec((9, Hd), lambda b: (0, 0)),                 # folded w2
            pl.BlockSpec(memory_space=pltpu.MemorySpace.SMEM),       # folded bias
        ],
        out_specs=pl.BlockSpec((1, 1, HW), lambda b: (b, 0, 0)),
        scratch_shapes=[pltpu.VMEM((H + 2, W + 2, Hd), jnp.float32)],
        compiler_params=pltpu.CompilerParams(
            dimension_semantics=("parallel",)),
    )(patches, w1_col, params["b1"], w2d, bias_fold)

    return out.reshape(B, 1, H, W)


def ref_forward(image_nchw, params, text_vec):
    """Pure-JAX reference (unfused), for correctness checking."""
    hi = jax.lax.Precision.HIGHEST
    dn = ("NHWC", "HWIO", "NHWC")
    x = jnp.transpose(image_nchw, (0, 2, 3, 1))
    h = jax.lax.conv_general_dilated(x, params["w1"], (1, 1), "SAME",
                                     dimension_numbers=dn, precision=hi)
    h = jnp.maximum(h + params["b1"][0], 0.0)
    f = jax.lax.conv_general_dilated(h, params["w2"], (1, 1), "SAME",
                                     dimension_numbers=dn, precision=hi)
    f = f + params["b2"][0] + text_vec[0]
    logits = jnp.einsum("bhwc,co->bhwo", f, params["wd"],
                        precision=hi) + params["bd"][0, 0]
    return jnp.transpose(jax.nn.sigmoid(logits), (0, 3, 1, 2))


def init_params(key, in_channels=3, hidden_dim=128):
    ks = jax.random.split(key, 6)
    scale = 0.05
    return {
        # conv weights stored HWIO (kh, kw, Cin, Cout)
        "w1": scale * jax.random.normal(ks[0], (3, 3, in_channels, hidden_dim), jnp.float32),
        "b1": scale * jax.random.normal(ks[1], (1, hidden_dim), jnp.float32),
        "w2": scale * jax.random.normal(ks[2], (3, 3, hidden_dim, hidden_dim), jnp.float32),
        "b2": scale * jax.random.normal(ks[3], (1, hidden_dim), jnp.float32),
        "wd": scale * jax.random.normal(ks[4], (hidden_dim, 1), jnp.float32),
        "bd": scale * jax.random.normal(ks[5], (1, 1), jnp.float32),
    }


if __name__ == "__main__":
    key = jax.random.PRNGKey(0)
    k_img, k_params, k_embed, k_idx = jax.random.split(key, 4)

    B, Cin, H, W = 2, 3, 16, 16
    hidden_dim = 128

    image = jax.random.normal(k_img, (B, Cin, H, W), jnp.float32)
    params = init_params(k_params, in_channels=Cin, hidden_dim=hidden_dim)

    # Embedding table (1000, Hd); the PyTorch module draws a random token at
    # forward time and means over it — mirrored here host-side (text_query is
    # unused by the reference forward, so none is passed).
    embed_table = 0.05 * jax.random.normal(k_embed, (1000, hidden_dim), jnp.float32)
    idx = jax.random.randint(k_idx, (1,), 0, 1000)
    text_vec = embed_table[idx].mean(axis=0, keepdims=True)       # (1, Hd)

    fwd = jax.jit(florence2_forward)
    mask = fwd(image, params, text_vec)
    jax.block_until_ready(mask)

    assert mask.shape == (B, 1, H, W), mask.shape
    assert bool(jnp.all((mask >= 0.0) & (mask <= 1.0)))

    ref = ref_forward(image, params, text_vec)
    assert bool(jnp.allclose(mask, ref, atol=1e-4, rtol=1e-4)), \
        float(jnp.max(jnp.abs(mask - ref)))

    print("KERNEL_OK")
</pallas_src>

<mosaic_0001>
module attributes {stable_mosaic.version = 11 : i64} {
  func.func @florence2_kernel(%arg0: i32, %arg1: memref<1x256x27xf32, #tpu.memory_space<vmem>>, %arg2: memref<27x128xf32, #tpu.memory_space<vmem>>, %arg3: memref<1x128xf32, #tpu.memory_space<vmem>>, %arg4: memref<9x128xf32, #tpu.memory_space<vmem>>, %arg5: memref<1x1xf32, #tpu.memory_space<smem>>, %arg6: memref<1x1x256xf32, #tpu.memory_space<vmem>>, %arg7: memref<18x18x128xf32, #tpu.memory_space<vmem>>) attributes {dimension_semantics = [#tpu.dimension_semantics<parallel>], iteration_bounds = array<i64: 2>, scalar_prefetch = 0 : i64, scratch_operands = 1 : i64, tpu.core_type = #tpu.core_type<tc>, window_params = [{transform_indices = @transform_0, window_bounds = array<i64: 1, 256, 27>}, {pipeline_mode = #tpu.pipeline_mode<synchronous>, transform_indices = @transform_1, window_bounds = array<i64: 27, 128>}, {pipeline_mode = #tpu.pipeline_mode<synchronous>, transform_indices = @transform_2, window_bounds = array<i64: 1, 128>}, {pipeline_mode = #tpu.pipeline_mode<synchronous>, transform_indices = @transform_3, window_bounds = array<i64: 9, 128>}, {transform_indices = @transform_4, window_bounds = array<i64: 1, 1>}, {transform_indices = @transform_5, window_bounds = array<i64: 1, 1, 256>}]} {
    %c0 = arith.constant 0 : index
    %c0_0 = arith.constant 0 : index
    %c0_1 = arith.constant 0 : index
    %0 = vector.load %arg1[%c0, %c0_0, %c0_1] : memref<1x256x27xf32, #tpu.memory_space<vmem>>, vector<1x256x27xf32>
    %1 = vector.shape_cast %0 : vector<1x256x27xf32> to vector<256x27xf32>
    %c0_2 = arith.constant 0 : index
    %c0_3 = arith.constant 0 : index
    %2 = vector.load %arg2[%c0_2, %c0_3] : memref<27x128xf32, #tpu.memory_space<vmem>>, vector<27x128xf32>
    %cst = arith.constant dense<0.000000e+00> : vector<256x128xf32>
    %3 = tpu.matmul %1, %2, %cst {dimension_numbers = #tpu.dot_dimension_numbers<[1], [0], [0], [1], [0, 0, 1, 1], [], []>} : vector<256x27xf32>, vector<27x128xf32>, vector<256x128xf32> -> vector<256x128xf32>
    %c0_4 = arith.constant 0 : index
    %c0_5 = arith.constant 0 : index
    %4 = vector.load %arg3[%c0_4, %c0_5] : memref<1x128xf32, #tpu.memory_space<vmem>>, vector<1x128xf32>
    %5 = vector.broadcast %4 : vector<1x128xf32> to vector<256x128xf32>
    %6 = arith.addf %3, %5 : vector<256x128xf32>
    %cst_6 = arith.constant 0.000000e+00 : f32
    %7 = vector.broadcast %cst_6 : f32 to vector<256x128xf32>
    %8 = arith.maximumf %6, %7 : vector<256x128xf32>
    %cst_7 = arith.constant 0.000000e+00 : f32
    %9 = vector.broadcast %cst_7 : f32 to vector<1x18x128xf32>
    %c0_8 = arith.constant 0 : index
    %c0_9 = arith.constant 0 : index
    %c0_10 = arith.constant 0 : index
    %10 = vector.load %arg7[%c0_8, %c0_9, %c0_10] : memref<18x18x128xf32, #tpu.memory_space<vmem>>, vector<1x18x128xf32>
    tpu.vector_store %arg7[%c0_8, %c0_9, %c0_10], %9 {strides = array<i32>} : memref<18x18x128xf32, #tpu.memory_space<vmem>>, vector<1x18x128xf32>,
    %cst_11 = arith.constant 0.000000e+00 : f32
    %11 = vector.broadcast %cst_11 : f32 to vector<1x18x128xf32>
    %c17 = arith.constant 17 : index
    %c0_12 = arith.constant 0 : index
    %c0_13 = arith.constant 0 : index
    %12 = vector.load %arg7[%c17, %c0_12, %c0_13] : memref<18x18x128xf32, #tpu.memory_space<vmem>>, vector<1x18x128xf32>
    tpu.vector_store %arg7[%c17, %c0_12, %c0_13], %11 {strides = array<i32>} : memref<18x18x128xf32, #tpu.memory_space<vmem>>, vector<1x18x128xf32>,
    %cst_14 = arith.constant 0.000000e+00 : f32
    %13 = vector.broadcast %cst_14 : f32 to vector<16x1x128xf32>
    %c1 = arith.constant 1 : index
    %c0_15 = arith.constant 0 : index
    %c0_16 = arith.constant 0 : index
    %14 = vector.load %arg7[%c1, %c0_15, %c0_16] : memref<18x18x128xf32, #tpu.memory_space<vmem>>, vector<16x1x128xf32>
    tpu.vector_store %arg7[%c1, %c0_15, %c0_16], %13 {strides = array<i32>} : memref<18x18x128xf32, #tpu.memory_space<vmem>>, vector<16x1x128xf32>,
    %cst_17 = arith.constant 0.000000e+00 : f32
    %15 = vector.broadcast %cst_17 : f32 to vector<16x1x128xf32>
    %c1_18 = arith.constant 1 : index
    %c17_19 = arith.constant 17 : index
    %c0_20 = arith.constant 0 : index
    %16 = vector.load %arg7[%c1_18, %c17_19, %c0_20] : memref<18x18x128xf32, #tpu.memory_space<vmem>>, vector<16x1x128xf32>
    tpu.vector_store %arg7[%c1_18, %c17_19, %c0_20], %15 {strides = array<i32>} : memref<18x18x128xf32, #tpu.memory_space<vmem>>, vector<16x1x128xf32>,
    %17 = vector.shape_cast %8 : vector<256x128xf32> to vector<16x16x128xf32>
    %c1_21 = arith.constant 1 : index
    %c1_22 = arith.constant 1 : index
    %c0_23 = arith.constant 0 : index
    %18 = vector.load %arg7[%c1_21, %c1_22, %c0_23] : memref<18x18x128xf32, #tpu.memory_space<vmem>>, vector<16x16x128xf32>
    tpu.vector_store %arg7[%c1_21, %c1_22, %c0_23], %17 {strides = array<i32>} : memref<18x18x128xf32, #tpu.memory_space<vmem>>, vector<16x16x128xf32>,
    %cst_24 = arith.constant 0.000000e+00 : f32
    %19 = vector.broadcast %cst_24 : f32 to vector<256x128xf32>
    %c0_25 = arith.constant 0 : index
    %c0_26 = arith.constant 0 : index
    %c0_27 = arith.constant 0 : index
    %20 = vector.load %arg7[%c0_25, %c0_26, %c0_27] : memref<18x18x128xf32, #tpu.memory_space<vmem>>, vector<16x16x128xf32>
    %21 = vector.shape_cast %20 : vector<16x16x128xf32> to vector<256x128xf32>
    %c0_28 = arith.constant 0 : index
    %c0_29 = arith.constant 0 : index
    %22 = vector.load %arg4[%c0_28, %c0_29] : memref<9x128xf32, #tpu.memory_space<vmem>>, vector<1x128xf32>
    %23 = vector.broadcast %22 : vector<1x128xf32> to vector<256x128xf32>
    %24 = arith.mulf %21, %23 : vector<256x128xf32>
    %25 = arith.addf %19, %24 : vector<256x128xf32>
    %c0_30 = arith.constant 0 : index
    %c1_31 = arith.constant 1 : index
    %c0_32 = arith.constant 0 : index
    %26 = vector.load %arg7[%c0_30, %c1_31, %c0_32] : memref<18x18x128xf32, #tpu.memory_space<vmem>>, vector<16x16x128xf32>
    %27 = vector.shape_cast %26 : vector<16x16x128xf32> to vector<256x128xf32>
    %c1_33 = arith.constant 1 : index
    %c0_34 = arith.constant 0 : index
    %28 = vector.load %arg4[%c1_33, %c0_34] : memref<9x128xf32, #tpu.memory_space<vmem>>, vector<1x128xf32>
    %29 = vector.broadcast %28 : vector<1x128xf32> to vector<256x128xf32>
    %30 = arith.mulf %27, %29 : vector<256x128xf32>
    %31 = arith.addf %25, %30 : vector<256x128xf32>
    %c0_35 = arith.constant 0 : index
    %c2 = arith.constant 2 : index
    %c0_36 = arith.constant 0 : index
    %32 = vector.load %arg7[%c0_35, %c2, %c0_36] : memref<18x18x128xf32, #tpu.memory_space<vmem>>, vector<16x16x128xf32>
    %33 = vector.shape_cast %32 : vector<16x16x128xf32> to vector<256x128xf32>
    %c2_37 = arith.constant 2 : index
    %c0_38 = arith.constant 0 : index
    %34 = vector.load %arg4[%c2_37, %c0_38] : memref<9x128xf32, #tpu.memory_space<vmem>>, vector<1x128xf32>
    %35 = vector.broadcast %34 : vector<1x128xf32> to vector<256x128xf32>
    %36 = arith.mulf %33, %35 : vector<256x128xf32>
    %37 = arith.addf %31, %36 : vector<256x128xf32>
    %c1_39 = arith.constant 1 : index
    %c0_40 = arith.constant 0 : index
    %c0_41 = arith.constant 0 : index
    %38 = vector.load %arg7[%c1_39, %c0_40, %c0_41] : memref<18x18x128xf32, #tpu.memory_space<vmem>>, vector<16x16x128xf32>
    %39 = vector.shape_cast %38 : vector<16x16x128xf32> to vector<256x128xf32>
    %c3 = arith.constant 3 : index
    %c0_42 = arith.constant 0 : index
    %40 = vector.load %arg4[%c3, %c0_42] : memref<9x128xf32, #tpu.memory_space<vmem>>, vector<1x128xf32>
    %41 = vector.broadcast %40 : vector<1x128xf32> to vector<256x128xf32>
    %42 = arith.mulf %39, %41 : vector<256x128xf32>
    %43 = arith.addf %37, %42 : vector<256x128xf32>
    %c1_43 = arith.constant 1 : index
    %c1_44 = arith.constant 1 : index
    %c0_45 = arith.constant 0 : index
    %44 = vector.load %arg7[%c1_43, %c1_44, %c0_45] : memref<18x18x128xf32, #tpu.memory_space<vmem>>, vector<16x16x128xf32>
    %45 = vector.shape_cast %44 : vector<16x16x128xf32> to vector<256x128xf32>
    %c4 = arith.constant 4 : index
    %c0_46 = arith.constant 0 : index
    %46 = vector.load %arg4[%c4, %c0_46] : memref<9x128xf32, #tpu.memory_space<vmem>>, vector<1x128xf32>
    %47 = vector.broadcast %46 : vector<1x128xf32> to vector<256x128xf32>
    %48 = arith.mulf %45, %47 : vector<256x128xf32>
    %49 = arith.addf %43, %48 : vector<256x128xf32>
    %c1_47 = arith.constant 1 : index
    %c2_48 = arith.constant 2 : index
    %c0_49 = arith.constant 0 : index
    %50 = vector.load %arg7[%c1_47, %c2_48, %c0_49] : memref<18x18x128xf32, #tpu.memory_space<vmem>>, vector<16x16x128xf32>
    %51 = vector.shape_cast %50 : vector<16x16x128xf32> to vector<256x128xf32>
    %c5 = arith.constant 5 : index
    %c0_50 = arith.constant 0 : index
    %52 = vector.load %arg4[%c5, %c0_50] : memref<9x128xf32, #tpu.memory_space<vmem>>, vector<1x128xf32>
    %53 = vector.broadcast %52 : vector<1x128xf32> to vector<256x128xf32>
    %54 = arith.mulf %51, %53 : vector<256x128xf32>
    %55 = arith.addf %49, %54 : vector<256x128xf32>
    %c2_51 = arith.constant 2 : index
    %c0_52 = arith.constant 0 : index
    %c0_53 = arith.constant 0 : index
    %56 = vector.load %arg7[%c2_51, %c0_52, %c0_53] : memref<18x18x128xf32, #tpu.memory_space<vmem>>, vector<16x16x128xf32>
    %57 = vector.shape_cast %56 : vector<16x16x128xf32> to vector<256x128xf32>
    %c6 = arith.constant 6 : index
    %c0_54 = arith.constant 0 : index
    %58 = vector.load %arg4[%c6, %c0_54] : memref<9x128xf32, #tpu.memory_space<vmem>>, vector<1x128xf32>
    %59 = vector.broadcast %58 : vector<1x128xf32> to vector<256x128xf32>
    %60 = arith.mulf %57, %59 : vector<256x128xf32>
    %61 = arith.addf %55, %60 : vector<256x128xf32>
    %c2_55 = arith.constant 2 : index
    %c1_56 = arith.constant 1 : index
    %c0_57 = arith.constant 0 : index
    %62 = vector.load %arg7[%c2_55, %c1_56, %c0_57] : memref<18x18x128xf32, #tpu.memory_space<vmem>>, vector<16x16x128xf32>
    %63 = vector.shape_cast %62 : vector<16x16x128xf32> to vector<256x128xf32>
    %c7 = arith.constant 7 : index
    %c0_58 = arith.constant 0 : index
    %64 = vector.load %arg4[%c7, %c0_58] : memref<9x128xf32, #tpu.memory_space<vmem>>, vector<1x128xf32>
    %65 = vector.broadcast %64 : vector<1x128xf32> to vector<256x128xf32>
    %66 = arith.mulf %63, %65 : vector<256x128xf32>
    %67 = arith.addf %61, %66 : vector<256x128xf32>
    %c2_59 = arith.constant 2 : index
    %c2_60 = arith.constant 2 : index
    %c0_61 = arith.constant 0 : index
    %68 = vector.load %arg7[%c2_59, %c2_60, %c0_61] : memref<18x18x128xf32, #tpu.memory_space<vmem>>, vector<16x16x128xf32>
    %69 = vector.shape_cast %68 : vector<16x16x128xf32> to vector<256x128xf32>
    %c8 = arith.constant 8 : index
    %c0_62 = arith.constant 0 : index
    %70 = vector.load %arg4[%c8, %c0_62] : memref<9x128xf32, #tpu.memory_space<vmem>>, vector<1x128xf32>
    %71 = vector.broadcast %70 : vector<1x128xf32> to vector<256x128xf32>
    %72 = arith.mulf %69, %71 : vector<256x128xf32>
    %73 = arith.addf %67, %72 : vector<256x128xf32>
    %cst_63 = arith.constant dense<0.000000e+00> : vector<256xf32>
    %74 = vector.multi_reduction <add>, %73, %cst_63 [1] : vector<256x128xf32> to vector<256xf32>
    %c0_64 = arith.constant 0 : index
    %c0_65 = arith.constant 0 : index
    %75 = memref.load %arg5[%c0_64, %c0_65] : memref<1x1xf32, #tpu.memory_space<smem>>
    %76 = vector.broadcast %75 : f32 to vector<256xf32>
    %77 = arith.addf %74, %76 : vector<256xf32>
    %78 = arith.negf %77 : vector<256xf32>
    %79 = math.exp %78 : vector<256xf32>
    %cst_66 = arith.constant 1.000000e+00 : f32
    %80 = vector.broadcast %cst_66 : f32 to vector<256xf32>
    %81 = arith.addf %80, %79 : vector<256xf32>
    %82 = arith.divf %80, %81 : vector<256xf32>
    %83 = vector.shape_cast %82 : vector<256xf32> to vector<1x1x256xf32>
    %c0_67 = arith.constant 0 : index
    %c0_68 = arith.constant 0 : index
    %c0_69 = arith.constant 0 : index
    %84 = vector.load %arg6[%c0_67, %c0_68, %c0_69] : memref<1x1x256xf32, #tpu.memory_space<vmem>>, vector<1x1x256xf32>
    tpu.vector_store %arg6[%c0_67, %c0_68, %c0_69], %83 {strides = array<i32>} : memref<1x1x256xf32, #tpu.memory_space<vmem>>, vector<1x1x256xf32>,
    return
  }
  func.func @transform_0(%arg0: i32) -> (i32, i32, i32) {
    %c0_i32 = arith.constant 0 : i32
    %c0_i32_0 = arith.constant 0 : i32
    %c0_i32_1 = arith.constant 0 : i32
    return %arg0, %c0_i32, %c0_i32_0 : i32, i32, i32
  }
  func.func @transform_1(%arg0: i32) -> (i32, i32) {
    %c0_i32 = arith.constant 0 : i32
    %c0_i32_0 = arith.constant 0 : i32
    %c0_i32_1 = arith.constant 0 : i32
    return %c0_i32, %c0_i32_0 : i32, i32
  }
  func.func @transform_2(%arg0: i32) -> (i32, i32) {
    %c0_i32 = arith.constant 0 : i32
    %c0_i32_0 = arith.constant 0 : i32
    %c0_i32_1 = arith.constant 0 : i32
    return %c0_i32, %c0_i32_0 : i32, i32
  }
  func.func @transform_3(%arg0: i32) -> (i32, i32) {
    %c0_i32 = arith.constant 0 : i32
    %c0_i32_0 = arith.constant 0 : i32
    %c0_i32_1 = arith.constant 0 : i32
    return %c0_i32, %c0_i32_0 : i32, i32
  }
  func.func @transform_4(%arg0: i32) -> (i32, i32) {
    %c0_i32 = arith.constant 0 : i32
    %c0_i32_0 = arith.constant 0 : i32
    %c0_i32_1 = arith.constant 0 : i32
    return %c0_i32, %c0_i32_0 : i32, i32
  }
  func.func @transform_5(%arg0: i32) -> (i32, i32, i32) {
    %c0_i32 = arith.constant 0 : i32
    %c0_i32_0 = arith.constant 0 : i32
    %c0_i32_1 = arith.constant 0 : i32
    return %arg0, %c0_i32, %c0_i32_0 : i32, i32, i32
  }
}

</mosaic_0001>

<bundles_post_ra>
// kernel: florence2_forward.1
= control target key start
LH: loop header
LB: loop body
LE: loop exit
PB: predicated region body
PF: predicated region fallthrough
CT: control target
= control target key end

     0   :  { %s3299_s20 = smov 0   ;;  %s4746_s0 = inlined_call_operand.vmem [shape: f32[2,256,27], index: 0, kind: input, shape index: {}]   ;;  %s4747_s1 = inlined_call_operand.vmem [shape: f32[27,128], index: 1, kind: input, shape index: {}]   ;;  %s4748_s2 = inlined_call_operand.vmem [shape: f32[1,128], index: 2, kind: input, shape index: {}]   ;;  %s4749_s3 = inlined_call_operand.vmem [shape: f32[9,128], index: 3, kind: input, shape index: {}]   ;;  %s4750_s4 = inlined_call_operand.<no memory space> [shape: f32[1,1], index: 4, kind: input, shape index: {}]   ;;  %s4751_s5 = inlined_call_operand.vmem [shape: f32[2,1,256], index: 5, kind: output, shape index: {}]  }
   0x1   :  { %10 = sst [smem:[#allocation3]] %s4750_s4 }
   0x2 LB: > { %s3006_s21 = sadd.s32 4294967295, %s3262_s20   ;;  %p3010_p0 = scmp.ge.s32.totalorder %s3262_s20, 1  ;;  %s3262_s20 = sphi %s3299_s20, %s16_s20  }
   0x3   : > { %p188_p1 = scmp.lt.s32.totalorder %s3262_s20, 3 }
   0x5   : > { %p189_p2 = pnand %p3010_p0, %p188_p1 }
   0x7   : > { %192 = sbr.rel (%p189_p2) target bundleno = 938 (0x3aa), region = 40 }
   0xc   : > { %v259_v0 = vld [vmem:[%s4747_s1 + $0x18] sm:$0x7]  ;;  %vm361_vm0 = vcmask 1042432   ;;  %v258_v1 = vld [vmem:[%s4747_s1 + $0x10] sm:$0xff]  ;;  %p215_p3 = scmp.lt.s32.totalorder %s3006_s21, 1  ;;  %v257_v2 = vld [vmem:[%s4747_s1 + $0x8] sm:$0xff] }
   0xd   : > { %3014 = vmatpush.msk.msra.mxu0 %vm361_vm0, %v259_v0  ;;  %3082 = vmatpush.msk.msra.mxu1 %vm361_vm0, %v259_v0  ;;  %v256_v3 = vld [vmem:[%s4747_s1] sm:$0xff]  ;;  %vm264_vm1 = vcmask 220160   ;;  %v3264_v34 = vmov 0.0   ;;  %s3923_s6 = sld [smem:[#allocation3]] }
   0xe   : > { %s4842_s21 = smov (!%p215_p3, %s3006_s21), 1  ;;  %3083 = vmatpush.msk.msra.mxu2 %vm361_vm0, %v259_v0  ;;  %3084 = vmatpush.msk.msra.mxu3 %vm361_vm0, %v259_v0  ;;  %510 = vst [vmem:[#allocation2] sm:$0xff] %v3264_v34  ;;  %v3394_v37 = vld [vmem:[%s4748_s2] ss:$0 sm:$0xff]  ;;  %v3416_v52 = vld [vmem:[%s4749_s3 + $0x1] ss:$0 sm:$0xff] }
   0xf   : > { %378 = vmatpush.msra.mxu0 %v258_v1  ;;  %3085 = vmatpush.msra.mxu1 %v258_v1  ;;  %s3081_s29 = sshll.u32 %s4842_s21, 8  ;;  %511 = vst [vmem:[#allocation2 + $0x8] sm:$0xff] %v3264_v34  ;;  %v3409_v48 = vld [vmem:[%s4749_s3] ss:$0 sm:$0xff]  ;;  %v3423_v55 = vld [vmem:[%s4749_s3 + $0x2] ss:$0 sm:$0xff] }
  0x10   : > { %3086 = vmatpush.msra.mxu2 %v258_v1  ;;  %3087 = vmatpush.msra.mxu3 %v258_v1  ;;  %s3325_s7 = scalar_lea.vmem %s4746_s0, %s3081_s29  ;;  %518 = vst [vmem:[#allocation2 + $0x18] sm:$0x1] %v3264_v34  ;;  %v616_v53 = vmul.f32 0.0, %v3409_v48  ;;  %v3433_v1 = vld [vmem:[%s4749_s3 + $0x3] ss:$0 sm:$0xff]  ;;  %s3013_s26 = sshll.u32 %s4842_s21, 1 }
  0x11   : > { %379 = vmatpush.msra.mxu0 %v257_v2  ;;  %3088 = vmatpush.msra.mxu1 %v257_v2  ;;  %v224_v4 = vld [vmem:[%s3325_s7] sm:$0xff]  ;;  %v225_v6 = vld [vmem:[%s3325_s7 + $0x8] sm:$0xff]  ;;  %v226_v8 = vld [vmem:[%s3325_s7 + $0x10] sm:$0xff]  ;;  %519 = vst [vmem:[#allocation2 + $0x30] sm:$0x1] %v3264_v34  ;;  %s223_s29 = scalar_lea.vmem %s4751_s5, %s3013_s26 }
  0x12   : > { %3089 = vmatpush.msra.mxu2 %v257_v2  ;;  %3090 = vmatpush.msra.mxu3 %v257_v2  ;;  %v232_v5 = vld [vmem:[%s3325_s7 + $0x40] sm:$0xff]  ;;  %v233_v7 = vld [vmem:[%s3325_s7 + $0x48] sm:$0xff]  ;;  %v234_v9 = vld [vmem:[%s3325_s7 + $0x50] sm:$0xff]  ;;  %512 = vst [vmem:[#allocation2 + $0x10] sm:$0x3] %v3264_v34 }
  0x13   : > { %380 = vmatpush.msra.mxu0 %v256_v3  ;;  %3091 = vmatpush.msra.mxu1 %v256_v3  ;;  %v227_v10 = vld [vmem:[%s3325_s7 + $0x18] sm:$0xff]  ;;  %v240_v12 = vld [vmem:[%s3325_s7 + $0x80] sm:$0xff]  ;;  %v241_v16 = vld [vmem:[%s3325_s7 + $0x88] sm:$0xff]  ;;  %514 = vst [vmem:[#allocation2 + $0x198] sm:$0xff] %v3264_v34 }
  0x14   : > { %3015 = vmatmul.msk.f32.vlgmr.msra.gmra.mxu0 %vm264_vm1, %v224_v4  ;;  %3023 = vmatmul.msk.f32.vlgmr.msra.gmra.mxu1 %vm264_vm1, %v232_v5  ;;  %v235_v11 = vld [vmem:[%s3325_s7 + $0x58] sm:$0xff]  ;;  %v248_v13 = vld [vmem:[%s3325_s7 + $0xc0] sm:$0xff]  ;;  %v249_v17 = vld [vmem:[%s3325_s7 + $0xc8] sm:$0xff]  ;;  %515 = vst [vmem:[#allocation2 + $0x1a0] sm:$0xff] %v3264_v34 }
  0x15   : > { %3092 = vmatpush.msra.mxu2 %v256_v3  ;;  %3093 = vmatpush.msra.mxu3 %v256_v3  ;;  %v228_v14 = vld [vmem:[%s3325_s7 + $0x20] sm:$0xff]  ;;  %v229_v18 = vld [vmem:[%s3325_s7 + $0x28] sm:$0xff]  ;;  %v242_v20 = vld [vmem:[%s3325_s7 + $0x90] sm:$0xff]  ;;  %516 = vst [vmem:[#allocation2 + $0x1a8] sm:$0x3] %v3264_v34 }
  0x16   : > { %3031 = vmatmul.msk.f32.vlgmr.msra.gmra.mxu2 %vm264_vm1, %v240_v12  ;;  %3039 = vmatmul.msk.f32.vlgmr.msra.gmra.mxu3 %vm264_vm1, %v248_v13  ;;  %v236_v15 = vld [vmem:[%s3325_s7 + $0x60] sm:$0xff]  ;;  %v237_v19 = vld [vmem:[%s3325_s7 + $0x68] sm:$0xff]  ;;  %v250_v21 = vld [vmem:[%s3325_s7 + $0xd0] sm:$0xff]  ;;  %520 = vst [vmem:[#allocation2 + $0x48] sm:$0x1] %v3264_v34 }
  0x17   : > { %v230_v22 = vld [vmem:[%s3325_s7 + $0x30] sm:$0xff]  ;;  %v243_v24 = vld [vmem:[%s3325_s7 + $0x98] sm:$0xff]  ;;  %v244_v28 = vld [vmem:[%s3325_s7 + $0xa0] sm:$0xff]  ;;  %521 = vst [vmem:[#allocation2 + $0x60] sm:$0x1] %v3264_v34 }
  0x18   : > { %v238_v23 = vld [vmem:[%s3325_s7 + $0x70] sm:$0xff]  ;;  %v251_v25 = vld [vmem:[%s3325_s7 + $0xd8] sm:$0xff]  ;;  %v252_v29 = vld [vmem:[%s3325_s7 + $0xe0] sm:$0xff]  ;;  %522 = vst [vmem:[#allocation2 + $0x78] sm:$0x1] %v3264_v34 }
  0x19   : > { %v231_v26 = vld [vmem:[%s3325_s7 + $0x38] sm:$0xff]  ;;  %v245_v30 = vld [vmem:[%s3325_s7 + $0xa8] sm:$0xff]  ;;  %v246_v32 = vld [vmem:[%s3325_s7 + $0xb0] sm:$0xff]  ;;  %523 = vst [vmem:[#allocation2 + $0x90] sm:$0x1] %v3264_v34 }
  0x1a   : > { %v239_v27 = vld [vmem:[%s3325_s7 + $0x78] sm:$0xff]  ;;  %v253_v31 = vld [vmem:[%s3325_s7 + $0xe8] sm:$0xff]  ;;  %v254_v35 = vld [vmem:[%s3325_s7 + $0xf0] sm:$0xff]  ;;  %524 = vst [vmem:[#allocation2 + $0xa8] sm:$0x1] %v3264_v34 }
  0x1b   : > { %v247_v33 = vld [vmem:[%s3325_s7 + $0xb8] sm:$0xff]  ;;  %525 = vst [vmem:[#allocation2 + $0xc0] sm:$0x1] %v3264_v34  ;;  %v680_v49 = vld [vmem:[#allocation2 + $0x1] sm:$0xff]  ;;  %v3448_v12 = vld [vmem:[%s4749_s3 + $0x5] ss:$0 sm:$0xff] }
  0x1c   : > { %3016 = vmatmul.msk.f32.gmra.mxu0 %vm264_vm1, %v225_v6  ;;  %3024 = vmatmul.msk.f32.gmra.mxu1 %vm264_vm1, %v233_v7  ;;  %v255_v36 = vld [vmem:[%s3325_s7 + $0xf8] sm:$0xff]  ;;  %526 = vst [vmem:[#allocation2 + $0xd8] sm:$0x1] %v3264_v34  ;;  %v714_v54 = vmul.f32 %v3416_v52, %v680_v49  ;;  %v778_v57 = vld [vmem:[#allocation2 + $0x2] sm:$0xff] }
  0x1d   : > { %527 = vst [vmem:[#allocation2 + $0xf0] sm:$0x1] %v3264_v34  ;;  %v681_v56 = vld [vmem:[#allocation2 + $0x9] sm:$0xff]  ;;  %v812_v0 = vmul.f32 %v3423_v55, %v778_v57 }
  0x1e   : > { %3032 = vmatmul.msk.f32.gmra.mxu2 %vm264_vm1, %v241_v16  ;;  %3040 = vmatmul.msk.f32.gmra.mxu3 %vm264_vm1, %v249_v17  ;;  %528 = vst [vmem:[#allocation2 + $0x108] sm:$0x1] %v3264_v34  ;;  %v715_v60 = vmul.f32 %v3416_v52, %v681_v56  ;;  %v746_v63 = vadd.f32 %v714_v54, %v616_v53  ;;  %v779_v2 = vld [vmem:[#allocation2 + $0xa] sm:$0xff] }
  0x1f   : > { %529 = vst [vmem:[#allocation2 + $0x120] sm:$0x1] %v3264_v34  ;;  %v813_v7 = vmul.f32 %v3423_v55, %v779_v2 }
  0x20   : > { %530 = vst [vmem:[#allocation2 + $0x138] sm:$0x1] %v3264_v34  ;;  %v747_v6 = vadd.f32 %v715_v60, %v616_v53 }
  0x21   : > { %531 = vst [vmem:[#allocation2 + $0x150] sm:$0x1] %v3264_v34 }
  0x22   : > { %532 = vst [vmem:[#allocation2 + $0x168] sm:$0x1] %v3264_v34  ;;  %v845_v16 = vadd.f32 %v813_v7, %v747_v6 }
  0x23   : > { %533 = vst [vmem:[#allocation2 + $0x180] sm:$0x1] %v3264_v34 }
  0x24   : > { %3017 = vmatmul.msk.f32.gmra.mxu0 %vm264_vm1, %v226_v8  ;;  %3025 = vmatmul.msk.f32.gmra.mxu1 %vm264_vm1, %v234_v9  ;;  %534 = vst [vmem:[#allocation2 + $0x29] sm:$0x1] %v3264_v34  ;;  %v844_v8 = vadd.f32 %v812_v0, %v746_v63 }
  0x25   : > { %535 = vst [vmem:[#allocation2 + $0x41] sm:$0x1] %v3264_v34 }
  0x26   : > { %3033 = vmatmul.msk.f32.gmra.mxu2 %vm264_vm1, %v242_v20  ;;  %3041 = vmatmul.msk.f32.gmra.mxu3 %vm264_vm1, %v250_v21  ;;  %536 = vst [vmem:[#allocation2 + $0x59] sm:$0x1] %v3264_v34  ;;  %v3455_v20 = vld [vmem:[%s4749_s3 + $0x6] ss:$0 sm:$0xff] }
  0x27   : > { %537 = vst [vmem:[#allocation2 + $0x71] sm:$0x1] %v3264_v34 }
  0x28   : > { %538 = vst [vmem:[#allocation2 + $0x89] sm:$0x1] %v3264_v34 }
  0x29   : > { %539 = vst [vmem:[#allocation2 + $0xa1] sm:$0x1] %v3264_v34 }
  0x2a   : > { %540 = vst [vmem:[#allocation2 + $0xb9] sm:$0x1] %v3264_v34 }
  0x2b   : > { %541 = vst [vmem:[#allocation2 + $0xd1] sm:$0x1] %v3264_v34 }
  0x2c   : > { %3018 = vmatmul.msk.f32.gmra.mxu0 %vm264_vm1, %v227_v10  ;;  %3026 = vmatmul.msk.f32.gmra.mxu1 %vm264_vm1, %v235_v11  ;;  %542 = vst [vmem:[#allocation2 + $0xe9] sm:$0x1] %v3264_v34  ;;  %v3443_v11 = vld [vmem:[%s4749_s3 + $0x4] ss:$0 sm:$0xff] }
  0x2d   : > { %543 = vst [vmem:[#allocation2 + $0x101] sm:$0x1] %v3264_v34 }
  0x2e   : > { %3034 = vmatmul.msk.f32.gmra.mxu2 %vm264_vm1, %v243_v24  ;;  %3042 = vmatmul.msk.f32.gmra.mxu3 %vm264_vm1, %v251_v25  ;;  %544 = vst [vmem:[#allocation2 + $0x119] sm:$0x1] %v3264_v34 }
  0x2f   : > { %545 = vst [vmem:[#allocation2 + $0x131] sm:$0x1] %v3264_v34 }
  0x30   : > { %546 = vst [vmem:[#allocation2 + $0x149] sm:$0x1] %v3264_v34 }
  0x31   : > { %547 = vst [vmem:[#allocation2 + $0x161] sm:$0x1] %v3264_v34 }
  0x32   : > { %548 = vst [vmem:[#allocation2 + $0x179] sm:$0x1] %v3264_v34 }
  0x33   : > { %549 = vst [vmem:[#allocation2 + $0x191] sm:$0x1] %v3264_v34 }
  0x34   : > { %3019 = vmatmul.msk.f32.gmra.mxu0 %vm264_vm1, %v228_v14  ;;  %3027 = vmatmul.msk.f32.gmra.mxu1 %vm264_vm1, %v236_v15  ;;  %4784 = vst [vmem:[#allocation4_spill] sm:$0xff] %v3433_v1 }
  0x35   : > { %4785 = vst [vmem:[#allocation5_spill] sm:$0xff] %v3443_v11 }
  0x36   : > { %3035 = vmatmul.msk.f32.gmra.mxu2 %vm264_vm1, %v244_v28  ;;  %3043 = vmatmul.msk.f32.gmra.mxu3 %vm264_vm1, %v252_v29 }
  0x3c   : > { %3020 = vmatmul.msk.f32.gmra.mxu0 %vm264_vm1, %v229_v18  ;;  %3028 = vmatmul.msk.f32.gmra.mxu1 %vm264_vm1, %v237_v19 }
  0x3e   : > { %3036 = vmatmul.msk.f32.gmra.mxu2 %vm264_vm1, %v245_v30  ;;  %3044 = vmatmul.msk.f32.gmra.mxu3 %vm264_vm1, %v253_v31 }
  0x44   : > { %3021 = vmatmul.msk.f32.gmra.mxu0 %vm264_vm1, %v230_v22  ;;  %3029 = vmatmul.msk.f32.gmra.mxu1 %vm264_vm1, %v238_v23 }
  0x46   : > { %3037 = vmatmul.msk.f32.gmra.mxu2 %vm264_vm1, %v246_v32  ;;  %3045 = vmatmul.msk.f32.gmra.mxu3 %vm264_vm1, %v254_v35 }
  0x4c   : > { %3022 = vmatmul.msk.f32.gmra.mxu0 %vm264_vm1, %v231_v26  ;;  %3030 = vmatmul.msk.f32.gmra.mxu1 %vm264_vm1, %v239_v27  ;;  %v3465_v26 = vld [vmem:[%s4749_s3 + $0x7] ss:$0 sm:$0xff] }
  0x4e   : > { %3038 = vmatmul.msk.f32.gmra.mxu2 %vm264_vm1, %v247_v33  ;;  %3046 = vmatmul.msk.f32.gmra.mxu3 %vm264_vm1, %v255_v36 }
  0x91   : > { %v382_v38 = vpop.f32.mrf.mxu0  ;;  %v406_v39 = vpop.f32.mrf.mxu1 }
  0x92   : > { %v383_v40 = vadd.f32 %v3394_v37, %v382_v38  ;;  %v407_v41 = vadd.f32 %v3394_v37, %v406_v39 }
  0x94   : > { %v3398_v42 = vmax.f32 %v383_v40, 0.0  ;;  %v3400_v43 = vmax.f32 %v407_v41, 0.0 }
  0x96   : > { %550 = vst [vmem:[#allocation2 + $0x19] sm:$0xff] %v3398_v42  ;;  %v1008_v22 = vmul.f32 %v3443_v11, %v3398_v42  ;;  %v716_v31 = vmul.f32 %v3416_v52, %v3398_v42 }
  0x97   : > { %558 = vst [vmem:[#allocation2 + $0x79] sm:$0xff] %v3400_v43 }
  0x99   : > { %v385_v44 = vpop.f32.mrf.mxu0  ;;  %v409_v45 = vpop.f32.mrf.mxu1 }
  0x9a   : > { %v386_v46 = vadd.f32 %v3394_v37, %v385_v44  ;;  %v410_v47 = vadd.f32 %v3394_v37, %v409_v45  ;;  %v430_v42 = vpop.f32.mrf.mxu2 }
  0x9b   : > { %v431_v56 = vadd.f32 %v3394_v37, %v430_v42 }
  0x9c   : > { %v479_v50 = vmax.f32 %v386_v46, 0.0  ;;  %v3411_v51 = vmax.f32 %v410_v47, 0.0 }
  0x9d   : > { %v876_v3 = vld [vmem:[#allocation2 + $0x18] sm:$0xff]  ;;  %v3490_v63 = vmax.f32 %v431_v56, 0.0 }
  0x9e   : > { %551 = vst [vmem:[#allocation2 + $0x21] sm:$0xff] %v479_v50  ;;  %v910_v9 = vmul.f32 %v3433_v1, %v876_v3  ;;  %v618_v23 = vmul.f32 %v3409_v48, %v876_v3  ;;  %v717_v36 = vmul.f32 %v3416_v52, %v479_v50  ;;  %v1009_v38 = vmul.f32 %v3443_v11, %v479_v50  ;;  %v3485_v50 = vld [vmem:[%s4749_s3 + $0x8] ss:$0 sm:$0xff] }
  0x9f   : > { %559 = vst [vmem:[#allocation2 + $0x81] sm:$0xff] %v3411_v51 }
  0xa0   : > { %v942_v19 = vadd.f32 %v910_v9, %v844_v8  ;;  %v748_v39 = vadd.f32 %v716_v31, %v618_v23  ;;  %4787 = vst [vmem:[#allocation7_spill] sm:$0xff] %v3485_v50 }
  0xa1   : > { %v388_v58 = vpop.f32.mrf.mxu0  ;;  %v412_v59 = vpop.f32.mrf.mxu1  ;;  %4788 = vst [vmem:[#allocation8_spill] sm:$0xff] %v3490_v63 }
  0xa2   : > { %v389_v61 = vadd.f32 %v3394_v37, %v388_v58  ;;  %v413_v62 = vadd.f32 %v3394_v37, %v412_v59  ;;  %v1040_v33 = vadd.f32 %v1008_v22, %v942_v19  ;;  %566 = vst [vmem:[#allocation2 + $0xd9] sm:$0xff] %v3490_v63  ;;  %v433_v31 = vpop.f32.mrf.mxu2 }
  0xa4   : > { %v480_v4 = vmax.f32 %v389_v61, 0.0  ;;  %v3435_v5 = vmax.f32 %v413_v62, 0.0 }
  0xa5   : > { %v877_v10 = vld [vmem:[#allocation2 + $0x20] sm:$0xff] }
  0xa6   : > { %552 = vst [vmem:[#allocation2 + $0x31] sm:$0xff] %v480_v4  ;;  %v1072_v14 = vld [vmem:[#allocation2 + $0x1a] sm:$0xff]  ;;  %v911_v17 = vmul.f32 %v3433_v1, %v877_v10  ;;  %v619_v28 = vmul.f32 %v3409_v48, %v877_v10  ;;  %v1073_v35 = vld [vmem:[#allocation2 + $0x22] sm:$0xff]  ;;  %v1303_v44 = vmul.f32 %v3465_v26, %v480_v4  ;;  %v1010_v62 = vmul.f32 %v3443_v11, %v480_v4 }
  0xa7   : > { %560 = vst [vmem:[#allocation2 + $0x91] sm:$0xff] %v3435_v5  ;;  %v1106_v25 = vmul.f32 %v3448_v12, %v1072_v14  ;;  %v814_v32 = vmul.f32 %v3423_v55, %v1072_v14  ;;  %v1107_v49 = vmul.f32 %v3448_v12, %v1073_v35  ;;  %v815_v60 = vmul.f32 %v3423_v55, %v1073_v35 }
  0xa8   : > { %v943_v30 = vadd.f32 %v911_v17, %v845_v16  ;;  %v749_v45 = vadd.f32 %v717_v36, %v619_v28  ;;  %v718_v7 = vmul.f32 %v3416_v52, %v480_v4 }
  0xa9   : > { %v391_v13 = vpop.f32.mrf.mxu0  ;;  %v415_v15 = vpop.f32.mrf.mxu1  ;;  %v1138_v41 = vadd.f32 %v1106_v25, %v1040_v33  ;;  %v846_v54 = vadd.f32 %v814_v32, %v748_v39 }
  0xaa   : > { %v392_v18 = vadd.f32 %v3394_v37, %v391_v13  ;;  %v416_v21 = vadd.f32 %v3394_v37, %v415_v15  ;;  %v1041_v47 = vadd.f32 %v1009_v38, %v943_v30  ;;  %v847_v6 = vadd.f32 %v815_v60, %v749_v45 }
  0xab   : > { %v434_v38 = vadd.f32 %v3394_v37, %v433_v31  ;;  %v3525_v60 = vmul.f32 %v3465_v26, %v3400_v43 }
  0xac   : > { %v481_v24 = vmax.f32 %v392_v18, 0.0  ;;  %v3467_v27 = vmax.f32 %v416_v21, 0.0  ;;  %v1139_v9 = vadd.f32 %v1107_v49, %v1041_v47  ;;  %v1177_v47 = vld [vmem:[#allocation2 + $0x78] sm:$0xff] }
  0xad   : > { %v1171_v29 = vld [vmem:[#allocation2 + $0x30] sm:$0xff]  ;;  %v3513_v45 = vmax.f32 %v434_v38, 0.0 }
  0xae   : > { %4786 = vst [vmem:[#allocation6_spill] sm:$0xff] %v3467_v27  ;;  %v1205_v34 = vmul.f32 %v3455_v20, %v1171_v29  ;;  %v912_v40 = vmul.f32 %v3433_v1, %v1171_v29  ;;  %v620_v0 = vmul.f32 %v3409_v48, %v1171_v29  ;;  %v1304_v13 = vmul.f32 %v3465_v26, %v481_v24 }
  0xaf   : > { %553 = vst [vmem:[#allocation2 + $0x39] sm:$0xff] %v481_v24  ;;  %v1011_v15 = vmul.f32 %v3443_v11, %v481_v24  ;;  %v719_v16 = vmul.f32 %v3416_v52, %v481_v24 }
  0xb0   : > { %561 = vst [vmem:[#allocation2 + $0x99] sm:$0xff] %v3467_v27  ;;  %v1237_v58 = vadd.f32 %v1205_v34, %v1138_v41  ;;  %v944_v61 = vadd.f32 %v912_v40, %v846_v54  ;;  %v750_v23 = vadd.f32 %v718_v7, %v620_v0 }
  0xb1   : > { %v394_v46 = vpop.f32.mrf.mxu0  ;;  %v418_v53 = vpop.f32.mrf.mxu1  ;;  %4790 = vst [vmem:[#allocation10_spill] sm:$0xff] %v3513_v45 }
  0xb2   : > { %v395_v57 = vadd.f32 %v3394_v37, %v394_v46  ;;  %v419_v59 = vadd.f32 %v3394_v37, %v418_v53  ;;  %v1335_v17 = vadd.f32 %v1303_v44, %v1237_v58  ;;  %v1042_v21 = vadd.f32 %v1010_v62, %v944_v61  ;;  %567 = vst [vmem:[#allocation2 + $0xe1] sm:$0xff] %v3513_v45  ;;  %v1373_v61 = vld [vmem:[#allocation2 + $0x7a] sm:$0xff] }
  0xb4   : > { %v482_v2 = vmax.f32 %v395_v57, 0.0  ;;  %v3493_v3 = vmax.f32 %v419_v59, 0.0  ;;  %v3520_v57 = vmul.f32 %v3455_v20, %v1177_v47 }
  0xb6   : > { %4789 = vst [vmem:[#allocation9_spill] sm:$0xff] %v3493_v3  ;;  %v1367_v8 = vld [vmem:[#allocation2 + $0x32] sm:$0xff]  ;;  %v1368_v14 = vld [vmem:[#allocation2 + $0x3a] sm:$0xff]  ;;  %v1305_v30 = vmul.f32 %v3465_v26, %v482_v2  ;;  %v1012_v44 = vmul.f32 %v3443_v11, %v482_v2  ;;  %v720_v56 = vmul.f32 %v3416_v52, %v482_v2 }
  0xb7   : > { %v1172_v10 = vld [vmem:[#allocation2 + $0x38] sm:$0xff]  ;;  %554 = vst [vmem:[#allocation2 + $0x49] sm:$0xff] %v482_v2  ;;  %v1401_v18 = vmul.f32 %v3485_v50, %v1367_v8  ;;  %v1108_v4 = vmul.f32 %v3448_v12, %v1367_v8  ;;  %v816_v25 = vmul.f32 %v3423_v55, %v1367_v8  ;;  %v1402_v24 = vmul.f32 %v3485_v50, %v1368_v14 }
  0xb8   : > { %v1206_v19 = vmul.f32 %v3455_v20, %v1172_v10  ;;  %562 = vst [vmem:[#allocation2 + $0xa9] sm:$0xff] %v3493_v3  ;;  %v913_v22 = vmul.f32 %v3433_v1, %v1172_v10  ;;  %v1109_v36 = vmul.f32 %v3448_v12, %v1368_v14  ;;  %v621_v49 = vmul.f32 %v3409_v48, %v1172_v10 }
  0xb9   : > { %v1433_v28 = vadd.f32 %v1401_v18, %v1335_v17  ;;  %v397_v32 = vpop.f32.mrf.mxu0  ;;  %v1140_v33 = vadd.f32 %v1108_v4, %v1042_v21  ;;  %v421_v34 = vpop.f32.mrf.mxu1  ;;  %v848_v46 = vadd.f32 %v816_v25, %v750_v23  ;;  %v817_v0 = vmul.f32 %v3423_v55, %v1368_v14  ;;  %v3544_v4 = vld [vmem:[#allocation2 + $0x80] sm:$0xff] }
  0xba   : > { %v1238_v29 = vadd.f32 %v1206_v19, %v1139_v9  ;;  %v945_v35 = vadd.f32 %v913_v22, %v847_v6  ;;  %v398_v39 = vadd.f32 %v3394_v37, %v397_v32  ;;  %v422_v41 = vadd.f32 %v3394_v37, %v421_v34  ;;  %v436_v17 = vpop.f32.mrf.mxu2  ;;  %v3553_v32 = vld [vmem:[#allocation2 + $0x82] sm:$0xff] }
  0xbb   : > { %1465 = vadd.xlane.f32.xlu0 %v1433_v28  ;;  %v751_v62 = vadd.f32 %v719_v16, %v621_v49  ;;  %v3532_v8 = vmul.f32 %v3485_v50, %v1373_v61  ;;  %v437_v25 = vadd.f32 %v3394_v37, %v436_v17  ;;  %v3548_v28 = vmul.f32 %v3433_v1, %v1177_v47  ;;  %v454_v49 = vpop.f32.mrf.mxu3 }
  0xbc   : > { %v1336_v40 = vadd.f32 %v1304_v13, %v1238_v29  ;;  %v1043_v42 = vadd.f32 %v1011_v15, %v945_v35  ;;  %v483_v53 = vmax.f32 %v398_v39, 0.0  ;;  %v3516_v54 = vmax.f32 %v422_v41, 0.0 }
  0xbd   : > { %v849_v13 = vadd.f32 %v817_v0, %v751_v62  ;;  %v3538_v15 = vmul.f32 %v3443_v11, %v3400_v43  ;;  %v626_v29 = vmul.f32 %v3409_v48, %v1177_v47  ;;  %v724_v34 = vmul.f32 %v3416_v52, %v3400_v43 }
  0xbe   : > { %4791 = vst [vmem:[#allocation11_spill] sm:$0xff] %v3516_v54  ;;  %v1434_v58 = vadd.f32 %v1402_v24, %v1336_v40  ;;  %v1173_v59 = vld [vmem:[#allocation2 + $0x48] sm:$0xff]  ;;  %v1141_v9 = vadd.f32 %v1109_v36, %v1043_v42  ;;  %v1306_v10 = vmul.f32 %v3465_v26, %v483_v53  ;;  %v1013_v18 = vmul.f32 %v3443_v11, %v483_v53 }
  0xbf   : > { %555 = vst [vmem:[#allocation2 + $0x51] sm:$0xff] %v483_v53  ;;  %v1207_v6 = vmul.f32 %v3455_v20, %v1173_v59  ;;  %v914_v2 = vmul.f32 %v3433_v1, %v1173_v59  ;;  %v622_v7 = vmul.f32 %v3409_v48, %v1173_v59  ;;  %v3542_v19 = vmul.f32 %v3416_v52, %v483_v53 }
  0xc0   : > { %563 = vst [vmem:[#allocation2 + $0xb1] sm:$0xff] %v3516_v54  ;;  %v3561_v38 = vmax.f32 %v437_v25, 0.0  ;;  %v3564_v39 = vmul.f32 %v3423_v55, %v1373_v61  ;;  %v3572_v42 = vmul.f32 %v3455_v20, %v3544_v4  ;;  %v3581_v47 = vmul.f32 %v3485_v50, %v3553_v32 }
  0xc1   : > { %v1239_v14 = vadd.f32 %v1207_v6, %v1140_v33  ;;  %v946_v16 = vadd.f32 %v914_v2, %v848_v46  ;;  %v400_v21 = vpop.f32.mrf.mxu0  ;;  %v424_v22 = vpop.f32.mrf.mxu1  ;;  %v752_v23 = vadd.f32 %v720_v56, %v622_v7  ;;  %v3557_v33 = vmul.f32 %v3433_v1, %v3544_v4  ;;  %v3602_v2 = vld [vmem:[#allocation2 + $0x90] sm:$0xff] }
  0xc2   : > { %v401_v24 = vadd.f32 %v3394_v37, %v400_v21  ;;  %v425_v31 = vadd.f32 %v3394_v37, %v424_v22  ;;  %4792 = vst [vmem:[#allocation12_spill] sm:$0xff] %v3561_v38  ;;  %v3576_v46 = vmul.f32 %v3465_v26, %v3411_v51  ;;  %v3585_v53 = vmul.f32 %v3443_v11, %v3411_v51 }
  0xc3   : > { %1467 = vadd.xlane.f32.xlu0 %v1434_v58  ;;  %v1337_v35 = vadd.f32 %v1305_v30, %v1239_v14  ;;  %v1044_v36 = vadd.f32 %v1012_v44, %v946_v16  ;;  %568 = vst [vmem:[#allocation2 + $0xf1] sm:$0xff] %v3561_v38  ;;  %v3589_v56 = vmul.f32 %v3448_v12, %v3553_v32 }
  0xc4   : > { %v3566_v40 = vmax.f32 %v401_v24, 0.0  ;;  %v3568_v41 = vmax.f32 %v425_v31, 0.0  ;;  %4793 = vst [vmem:[#allocation13_spill] sm:$0xff] %v3581_v47  ;;  %v3592_v58 = vmul.f32 %v3448_v12, %v1373_v61  ;;  %v3600_v6 = vmul.f32 %v3465_v26, %v3467_v27 }
  0xc5   : > { %v3609_v14 = vmul.f32 %v3455_v20, %v3602_v2  ;;  %v756_v16 = vadd.f32 %v724_v34, %v626_v29  ;;  %v455_v34 = vadd.f32 %v3394_v37, %v454_v49 }
  0xc6   : > { %v1369_v43 = vld [vmem:[#allocation2 + $0x4a] sm:$0xff]  ;;  %v1370_v44 = vld [vmem:[#allocation2 + $0x52] sm:$0xff]  ;;  %556 = vst [vmem:[#allocation2 + $0x61] sm:$0xff] %v3566_v40  ;;  %v1307_v25 = vmul.f32 %v3465_v26, %v3566_v40 }
  0xc7   : > { %v1174_v30 = vld [vmem:[#allocation2 + $0x50] sm:$0xff]  ;;  %v1403_v59 = vmul.f32 %v3485_v50, %v1369_v43  ;;  %v1110_v0 = vmul.f32 %v3448_v12, %v1369_v43  ;;  %4794 = vst [vmem:[#allocation14_spill] sm:$0xff] %v3600_v6  ;;  %v818_v7 = vmul.f32 %v3423_v55, %v1369_v43  ;;  %v1404_v22 = vmul.f32 %v3485_v50, %v1370_v44 }
  0xc8   : > { %v1208_v62 = vmul.f32 %v3455_v20, %v1174_v30  ;;  %564 = vst [vmem:[#allocation2 + $0xc1] sm:$0xff] %v3568_v41  ;;  %v915_v61 = vmul.f32 %v3433_v1, %v1174_v30  ;;  %v1014_v43 = vmul.f32 %v3443_v11, %v3566_v40  ;;  %v623_v63 = vmul.f32 %v3409_v48, %v1174_v30 }
  0xc9   : > { %4795 = vst [vmem:[#allocation15_spill] sm:$0xff] %v3609_v14  ;;  %v1435_v17 = vadd.f32 %v1403_v59, %v1337_v35  ;;  %v403_v24 = vpop.f32.mrf.mxu0  ;;  %v1142_v31 = vadd.f32 %v1110_v0, %v1044_v36  ;;  %v427_v38 = vpop.f32.mrf.mxu1  ;;  %v3620_v35 = vld [vmem:[#allocation2 + $0x98] sm:$0xff]  ;;  %v1111_v6 = vmul.f32 %v3448_v12, %v1370_v44 }
  0xca   : > { %v1240_v21 = vadd.f32 %v1208_v62, %v1141_v9  ;;  %v947_v45 = vadd.f32 %v915_v61, %v849_v13  ;;  %v404_v54 = vadd.f32 %v3394_v37, %v403_v24  ;;  %v428_v9 = vadd.f32 %v3394_v37, %v427_v38  ;;  %4796 = vst [vmem:[#allocation16_spill] sm:$0xff] %v3620_v35  ;;  %v3622_v59 = vld [vmem:[#allocation2 + $0x9a] sm:$0xff]  ;;  %v439_v36 = vpop.f32.mrf.mxu2 }
  0xcb   : > { %1469 = vadd.xlane.f32.xlu1 %v1435_v17  ;;  %4797 = vst [vmem:[#allocation17_spill] sm:$0xff] %v3622_v59  ;;  %v850_v62 = vadd.f32 %v818_v7, %v752_v23  ;;  %v753_v13 = vadd.f32 %v3542_v19, %v623_v63  ;;  %v3629_v17 = vmax.f32 %v455_v34, 0.0 }
  0xcc   : > { %v1338_v29 = vadd.f32 %v1306_v10, %v1240_v21  ;;  %v1045_v0 = vadd.f32 %v1013_v18, %v947_v45  ;;  %v485_v30 = vmax.f32 %v404_v54, 0.0  ;;  %v3626_v61 = vmax.f32 %v428_v9, 0.0  ;;  %v1375_v9 = vld [vmem:[#allocation2 + $0x92] sm:$0xff] }
  0xcd   : > { %v819_v10 = vmul.f32 %v3423_v55, %v1370_v44  ;;  %4799 = vst [vmem:[#allocation19_spill] sm:$0xff] %v3629_v17  ;;  %v1175_v49 = vld [vmem:[#allocation2 + $0x60] sm:$0xff]  ;;  %v3633_v21 = vmul.f32 %v3455_v20, %v3620_v35  ;;  %v3637_v45 = vmul.f32 %v3485_v50, %v3622_v59  ;;  %v440_v18 = vadd.f32 %v3394_v37, %v439_v36  ;;  %v457_v44 = vpop.f32.mrf.mxu3 }
  0xce   : > { %4798 = vst [vmem:[#allocation18_spill] sm:$0xff] %v3626_v61  ;;  %v1436_v38 = vadd.f32 %v1404_v22, %v1338_v29  ;;  %v1209_v63 = vmul.f32 %v3455_v20, %v1175_v49  ;;  %v916_v54 = vmul.f32 %v3433_v1, %v1175_v49  ;;  %v1143_v19 = vadd.f32 %v1111_v6, %v1045_v0  ;;  %v3652_v0 = vld [vmem:[#allocation2 + $0xa8] sm:$0xff] }
  0xcf   : > { %4800 = vst [vmem:[#allocation20_spill] sm:$0xff] %v3633_v21  ;;  %v851_v23 = vadd.f32 %v819_v10, %v753_v13  ;;  %v1308_v7 = vmul.f32 %v3465_v26, %v485_v30  ;;  %v3644_v22 = vmax.f32 %v440_v18, 0.0  ;;  %v624_v24 = vmul.f32 %v3409_v48, %v1175_v49  ;;  %v3703_v14 = vld [vmem:[#allocation2 + $0xc0] sm:$0xff] }
  0xd0   : > { %4801 = vst [vmem:[#allocation21_spill] sm:$0xff] %v3637_v45  ;;  %v722_v29 = vmul.f32 %v3416_v52, %v3566_v40  ;;  %v1241_v34 = vadd.f32 %v1209_v63, %v1142_v31  ;;  %v948_v36 = vadd.f32 %v916_v54, %v850_v62  ;;  %v1015_v45 = vmul.f32 %v3443_v11, %v485_v30  ;;  %v3664_v62 = vld [vmem:[#allocation2 + $0xaa] sm:$0xff] }
  0xd1   : > { %557 = vst [vmem:[#allocation2 + $0x69] sm:$0xff] %v485_v30  ;;  %v854_v6 = vadd.f32 %v3564_v39, %v756_v16  ;;  %v723_v13 = vmul.f32 %v3416_v52, %v485_v30  ;;  %v3658_v10 = vmul.f32 %v3465_v26, %v3435_v5  ;;  %v920_v40 = vmul.f32 %v3433_v1, %v3602_v2 }
  0xd2   : > { %565 = vst [vmem:[#allocation2 + $0xc9] sm:$0xff] %v3626_v61  ;;  %v1018_v31 = vmul.f32 %v3443_v11, %v3435_v5  ;;  %v1339_v39 = vadd.f32 %v1307_v25, %v1241_v34  ;;  %v754_v16 = vadd.f32 %v722_v29, %v624_v24  ;;  %v3667_v49 = vmul.f32 %v3485_v50, %v1375_v9 }
  0xd3   : > { %4802 = vst [vmem:[#allocation22_spill] sm:$0xff] %v3644_v22  ;;  %1471 = vadd.xlane.f32.xlu1 %v1436_v38  ;;  %v1116_v30 = vmul.f32 %v3448_v12, %v1375_v9  ;;  %v1046_v18 = vadd.f32 %v1014_v43, %v948_v36  ;;  %v952_v63 = vadd.f32 %v920_v40, %v854_v6 }
  0xd4   : > { %574 = vst [vmem:[#allocation2 + $0x139] sm:$0xff] %v3629_v17  ;;  %v1215_v54 = vmul.f32 %v3455_v20, %v3652_v0  ;;  %v3673_v17 = vadd.f32 %v3394_v37, %v457_v44  ;;  %v1313_v61 = vmul.f32 %v3465_v26, %v3493_v3  ;;  %v3679_v25 = vmul.f32 %v3485_v50, %v3664_v62 }
  0xd5   : > { %4803 = vst [vmem:[#allocation23_spill] sm:$0xff] %v3652_v0  ;;  %v628_v38 = vmul.f32 %v3409_v48, %v3602_v2  ;;  %v726_v43 = vmul.f32 %v3416_v52, %v3435_v5  ;;  %v1050_v36 = vadd.f32 %v1018_v31, %v952_v63  ;;  %v824_v6 = vmul.f32 %v3423_v55, %v1375_v9  ;;  %v3701_v47 = vpop.f32.mrf.mxu3 }
  0xd6   : > { %569 = vst [vmem:[#allocation2 + $0xf9] sm:$0xff] %v3644_v22  ;;  %v442_v22 = vpop.f32.mrf.mxu2  ;;  %v4781_v44 = vmax.f32 %v3673_v17, 0.0  ;;  %v922_v40 = vmul.f32 %v3433_v1, %v3652_v0  ;;  %v1020_v5 = vmul.f32 %v3443_v11, %v3493_v3 }
  0xd7   : > { %4804 = vst [vmem:[#allocation24_spill] sm:$0xff] %v3658_v10  ;;  %v1148_v11 = vadd.f32 %v1116_v30, %v1050_v36 }
  0xd8   : > { %4805 = vst [vmem:[#allocation25_spill] sm:$0xff] %v3667_v49  ;;  %v1371_v24 = vld [vmem:[#allocation2 + $0x62] sm:$0xff]  ;;  %v1372_v34 = vld [vmem:[#allocation2 + $0x6a] sm:$0xff] }
  0xd9   : > { %4806 = vst [vmem:[#allocation26_spill] sm:$0xff] %v3673_v17  ;;  %v1176_v29 = vld [vmem:[#allocation2 + $0x68] sm:$0xff]  ;;  %v1405_v49 = vmul.f32 %v3485_v50, %v1371_v24  ;;  %v1112_v59 = vmul.f32 %v3448_v12, %v1371_v24  ;;  %v1406_v27 = vmul.f32 %v3485_v50, %v1372_v34  ;;  %v821_v9 = vmul.f32 %v3423_v55, %v1372_v34 }
  0xda   : > { %4807 = vst [vmem:[#allocation27_spill] sm:$0xff] %v3679_v25  ;;  %v1210_v2 = vmul.f32 %v3455_v20, %v1176_v29  ;;  %v917_v31 = vmul.f32 %v3433_v1, %v1176_v29  ;;  %v625_v63 = vmul.f32 %v3409_v48, %v1176_v29  ;;  %v820_v21 = vmul.f32 %v3423_v55, %v1371_v24  ;;  %v4812_v24 = vld [vmem:[#allocation20_spill] sm:$0xff] }
  0xdb   : > { %575 = vst [vmem:[#allocation2 + $0x141] sm:$0xff] %v4781_v44  ;;  %v1437_v0 = vadd.f32 %v1405_v49, %v1339_v39  ;;  %v1144_v25 = vadd.f32 %v1112_v59, %v1046_v18  ;;  %v758_v50 = vadd.f32 %v726_v43, %v628_v38  ;;  %v1113_v17 = vmul.f32 %v3448_v12, %v1372_v34  ;;  %v4811_v43 = vld [vmem:[#allocation13_spill] sm:$0xff] }
  0xdc   : > { %v1242_v10 = vadd.f32 %v1210_v2, %v1143_v19  ;;  %v949_v35 = vadd.f32 %v917_v31, %v851_v23  ;;  %v755_v3 = vadd.f32 %v723_v13, %v625_v63  ;;  %v852_v44 = vadd.f32 %v820_v21, %v754_v16  ;;  %v4816_v31 = vld [vmem:[#allocation6_spill] sm:$0xff]  ;;  %v4817_v63 = vld [vmem:[#allocation5_spill] sm:$0xff] }
  0xdd   : > { %1473 = vadd.xlane.f32.xlu2 %v1437_v0  ;;  %v1243_v29 = vadd.f32 %v3520_v57, %v1144_v25  ;;  %v1247_v19 = vadd.f32 %v1215_v54, %v1148_v11  ;;  %v856_v49 = vadd.f32 %v824_v6, %v758_v50  ;;  %v1118_v13 = vmul.f32 %v3448_v12, %v3664_v62  ;;  %v4809_v25 = vld [vmem:[#allocation16_spill] sm:$0xff] }
  0xde   : > { %v1340_v1 = vadd.f32 %v1308_v7, %v1242_v10  ;;  %v1047_v39 = vadd.f32 %v1015_v45, %v949_v35  ;;  %v853_v59 = vadd.f32 %v821_v9, %v755_v3  ;;  %v950_v23 = vadd.f32 %v3548_v28, %v852_v44  ;;  %v445_v21 = vpop.f32.mrf.mxu2  ;;  %v4814_v44 = vld [vmem:[#allocation24_spill] sm:$0xff] }
  0xdf   : > { %v1341_v18 = vadd.f32 %v3525_v60, %v1243_v29  ;;  %v1217_v0 = vmul.f32 %v3455_v20, %v3703_v14  ;;  %v954_v10 = vadd.f32 %v922_v40, %v856_v49  ;;  %v443_v50 = vadd.f32 %v3394_v37, %v442_v22  ;;  %v4818_v29 = vld [vmem:[#allocation14_spill] sm:$0xff] }
  0xe0   : > { %v1438_v30 = vadd.f32 %v1406_v27, %v1340_v1  ;;  %v1145_v57 = vadd.f32 %v1113_v17, %v1047_v39  ;;  %v951_v7 = vadd.f32 %v3557_v33, %v853_v59  ;;  %v1048_v11 = vadd.f32 %v3538_v15, %v950_v23  ;;  %v3722_v33 = vld [vmem:[#allocation2 + $0xc2] sm:$0xff] }
  0xe1   : > { %v1439_v3 = vadd.f32 %v3532_v8, %v1341_v18  ;;  %v627_v60 = vmul.f32 %v3409_v48, %v3544_v4  ;;  %v1345_v45 = vadd.f32 %v1313_v61, %v1247_v19  ;;  %v1052_v1 = vadd.f32 %v1020_v5, %v954_v10  ;;  %v463_v4 = vpop.f32.mrf.mxu3  ;;  %v4815_v40 = vld [vmem:[#allocation27_spill] sm:$0xff]  ;;  %v4819_v19 = vld [vmem:[#allocation17_spill] sm:$0xff]  ;;  %v1182_v18 = vld [vmem:[#allocation2 + $0xb0] sm:$0xff] }
  0xe2   : > { %v1244_v28 = vadd.f32 %v3572_v42, %v1145_v57  ;;  %v1049_v35 = vadd.f32 %v3585_v53, %v951_v7  ;;  %v1146_v27 = vadd.f32 %v3592_v58, %v1048_v11  ;;  %v3724_v17 = vmax.f32 %v443_v50, 0.0  ;;  %v4808_v58 = vld [vmem:[#allocation15_spill] sm:$0xff]  ;;  %v4820_v10 = vld [vmem:[#allocation21_spill] sm:$0xff] }
  0xe3   : > { %1477 = vadd.xlane.f32.xlu0 %v1439_v3  ;;  %v725_v8 = vmul.f32 %v3416_v52, %v3411_v51  ;;  %v823_v15 = vmul.f32 %v3423_v55, %v3553_v32  ;;  %v1150_v61 = vadd.f32 %v1118_v13, %v1052_v1  ;;  %v1315_v22 = vmul.f32 %v3465_v26, %v3568_v41  ;;  %v4810_v51 = vld [vmem:[#allocation4_spill] sm:$0xff]  ;;  %v4821_v11 = vld [vmem:[#allocation25_spill] sm:$0xff] }
  0xe4   : > { %v1342_v42 = vadd.f32 %v3576_v46, %v1244_v28  ;;  %v1147_v53 = vadd.f32 %v3589_v56, %v1049_v35  ;;  %v1245_v16 = vadd.f32 %v4808_v58, %v1146_v27  ;;  %570 = vst [vmem:[#allocation2 + $0x109] sm:$0xff] %v3724_v17  ;;  %v921_v38 = vmul.f32 %v4810_v51, %v4809_v25  ;;  %v4813_v56 = vld [vmem:[#allocation7_spill] sm:$0xff] }
  0xe5   : > { %1475 = vadd.xlane.f32.xlu2 %v1438_v30  ;;  %v757_v54 = vadd.f32 %v725_v8, %v627_v60  ;;  %v1249_v46 = vadd.f32 %v1217_v0, %v1150_v61  ;;  %v1413_v36 = vmul.f32 %v4813_v56, %v3722_v33  ;;  %v1443_v2 = vadd.f32 %v4815_v40, %v1345_v45  ;;  %v1378_v30 = vld [vmem:[#allocation2 + $0xb2] sm:$0xff]  ;;  %v4822_v60 = vld [vmem:[#allocation11_spill] sm:$0xff] }
  0xe6   : > { %v1440_v32 = vadd.f32 %v4811_v43, %v1342_v42  ;;  %v1246_v34 = vadd.f32 %v4812_v24, %v1147_v53  ;;  %v1343_v6 = vadd.f32 %v4814_v44, %v1245_v16  ;;  %v1019_v9 = vmul.f32 %v4817_v63, %v4816_v31  ;;  %v448_v45 = vpop.f32.mrf.mxu2  ;;  %v4823_v43 = vld [vmem:[#allocation23_spill] sm:$0xff] }
  0xe7   : > { %v855_v5 = vadd.f32 %v823_v15, %v757_v54  ;;  %v1347_v59 = vadd.f32 %v1315_v22, %v1249_v46  ;;  %v1117_v49 = vmul.f32 %v3448_v12, %v4819_v19  ;;  %v629_v23 = vmul.f32 %v3409_v48, %v4809_v25  ;;  %v3765_v22 = vld [vmem:[#allocation2 + $0xc8] sm:$0xff] }
  0xe8   : > { %1479 = vadd.xlane.f32.xlu1 %v1440_v32  ;;  %v1344_v39 = vadd.f32 %v4818_v29, %v1246_v34  ;;  %v1216_v0 = vmul.f32 %v3455_v20, %v1182_v18  ;;  %v727_v57 = vmul.f32 %v3416_v52, %v4816_v31  ;;  %v825_v7 = vmul.f32 %v3423_v55, %v4819_v19  ;;  %v3775_v24 = vld [vmem:[#allocation2 + $0xca] sm:$0xff] }
  0xe9   : > { %v953_v13 = vadd.f32 %v921_v38, %v855_v5  ;;  %v1441_v50 = vadd.f32 %v4821_v11, %v1343_v6  ;;  %v1314_v28 = vmul.f32 %v3465_v26, %v4822_v60  ;;  %v1412_v35 = vmul.f32 %v4813_v56, %v1378_v30  ;;  %v466_v42 = vpop.f32.mrf.mxu3  ;;  %v4825_v5 = vld [vmem:[#allocation18_spill] sm:$0xff] }
  0xea   : > { %v1442_v3 = vadd.f32 %v4820_v10, %v1344_v39  ;;  %v1445_v1 = vadd.f32 %v1413_v36, %v1347_v59  ;;  %v759_v8 = vadd.f32 %v727_v57, %v629_v23  ;;  %v923_v15 = vmul.f32 %v4810_v51, %v1182_v18  ;;  %v4824_v36 = vld [vmem:[#allocation9_spill] sm:$0xff] }
  0xeb   : > { %v1051_v27 = vadd.f32 %v1019_v9, %v953_v13  ;;  %v1021_v53 = vmul.f32 %v4817_v63, %v4822_v60  ;;  %v1119_v61 = vmul.f32 %v3448_v12, %v1378_v30  ;;  %v461_v58 = vadd.f32 %v3394_v37, %v3701_v47  ;;  %v3804_v13 = vld [vmem:[#allocation2 + $0xda] sm:$0xff] }
  0xec   : > { %1483 = vadd.xlane.f32.xlu0 %v1442_v3  ;;  %v446_v16 = vadd.f32 %v3394_v37, %v445_v21  ;;  %v857_v25 = vadd.f32 %v825_v7, %v759_v8  ;;  %v3771_v38 = vadd.f32 %v3394_v37, %v463_v4  ;;  %v630_v32 = vmul.f32 %v3409_v48, %v4823_v43  ;;  %v4826_v8 = vld [vmem:[#allocation8_spill] sm:$0xff] }
  0xed   : > { %1481 = vadd.xlane.f32.xlu2 %v1441_v50  ;;  %v1149_v54 = vadd.f32 %v1117_v49, %v1051_v27  ;;  %v3777_v34 = vmax.f32 %v461_v58, 0.0  ;;  %v728_v47 = vmul.f32 %v3416_v52, %v4824_v36  ;;  %v826_v21 = vmul.f32 %v3423_v55, %v3664_v62 }
  0xee   : > { %v3779_v46 = vmax.f32 %v446_v16, 0.0  ;;  %v955_v6 = vadd.f32 %v923_v15, %v857_v25  ;;  %v1218_v4 = vmul.f32 %v3455_v20, %v3765_v22  ;;  %v4783_v40 = vmax.f32 %v3771_v38, 0.0 }
  0xef   : > { %v1248_v44 = vadd.f32 %v1216_v0, %v1149_v54  ;;  %v1316_v31 = vmul.f32 %v3465_v26, %v4825_v5  ;;  %576 = vst [vmem:[#allocation2 + $0x151] sm:$0xff] %v3777_v34  ;;  %v760_v9 = vadd.f32 %v728_v47, %v630_v32  ;;  %v924_v29 = vmul.f32 %v4810_v51, %v3703_v14  ;;  %v3829_v47 = vld [vmem:[#allocation2 + $0xe0] sm:$0xff] }
  0xf0   : > { %1485 = vadd.xlane.f32.xlu1 %v1443_v2  ;;  %v1053_v59 = vadd.f32 %v1021_v53, %v955_v6  ;;  %v1414_v62 = vmul.f32 %v4813_v56, %v3775_v24  ;;  %571 = vst [vmem:[#allocation2 + $0x111] sm:$0xff] %v3779_v46  ;;  %v1022_v19 = vmul.f32 %v4817_v63, %v3568_v41  ;;  %v3798_v2 = vld [vmem:[#allocation2 + $0xd8] sm:$0xff] }
  0xf1   : > { %v1346_v39 = vadd.f32 %v1314_v28, %v1248_v44  ;;  %577 = vst [vmem:[#allocation2 + $0x159] sm:$0xff] %v4783_v40  ;;  %v858_v49 = vadd.f32 %v826_v21, %v760_v9  ;;  %v1120_v23 = vmul.f32 %v3448_v12, %v3722_v33  ;;  %v449_v0 = vadd.f32 %v3394_v37, %v448_v45  ;;  %v469_v50 = vpop.f32.mrf.mxu3  ;;  %v451_v45 = vpop.f32.mrf.mxu2 }
  0xf2   : > { %v631_v57 = vmul.f32 %v3409_v48, %v1182_v18  ;;  %v1151_v10 = vadd.f32 %v1119_v61, %v1053_v59  ;;  %v729_v3 = vmul.f32 %v3416_v52, %v4822_v60  ;;  %v827_v11 = vmul.f32 %v3423_v55, %v1378_v30 }
  0xf3   : > { %v1444_v7 = vadd.f32 %v1412_v35, %v1346_v39  ;;  %v956_v28 = vadd.f32 %v924_v29, %v858_v49  ;;  %v1219_v27 = vmul.f32 %v3455_v20, %v3798_v2  ;;  %v1317_v15 = vmul.f32 %v3465_v26, %v4826_v8  ;;  %v4827_v49 = vld [vmem:[#allocation10_spill] sm:$0xff] }
  0xf4   : > { %1489 = vadd.xlane.f32.xlu0 %v1445_v1  ;;  %v3815_v53 = vmax.f32 %v449_v0, 0.0  ;;  %v1250_v18 = vadd.f32 %v1218_v4, %v1151_v10  ;;  %v1415_v35 = vmul.f32 %v4813_v56, %v3804_v13  ;;  %v761_v60 = vadd.f32 %v729_v3, %v631_v57  ;;  %v3853_v0 = vld [vmem:[#allocation2 + $0xf0] sm:$0xff] }
  0xf5   : > { %1487 = vadd.xlane.f32.xlu2 %v1444_v7  ;;  %v925_v30 = vmul.f32 %v4810_v51, %v3765_v22  ;;  %v1054_v1 = vadd.f32 %v1022_v19, %v956_v28  ;;  %v1023_v61 = vmul.f32 %v4817_v63, %v4825_v5  ;;  %v1121_v58 = vmul.f32 %v3448_v12, %v3775_v24  ;;  %v3862_v28 = vld [vmem:[#allocation2 + $0xf2] sm:$0xff] }
  0xf6   : > { %572 = vst [vmem:[#allocation2 + $0x121] sm:$0xff] %v3815_v53  ;;  %v467_v16 = vadd.f32 %v3394_v37, %v466_v42  ;;  %v1348_v54 = vadd.f32 %v1316_v31, %v1250_v18  ;;  %v859_v25 = vadd.f32 %v827_v11, %v761_v60  ;;  %v452_v43 = vadd.f32 %v3394_v37, %v451_v45  ;;  %v3837_v42 = vld [vmem:[#allocation2 + $0xe2] sm:$0xff] }
  0xf7   : > { %v470_v32 = vadd.f32 %v3394_v37, %v469_v50  ;;  %v1152_v36 = vadd.f32 %v1120_v23, %v1054_v1  ;;  %v632_v44 = vmul.f32 %v3409_v48, %v3703_v14  ;;  %v730_v6 = vmul.f32 %v3416_v52, %v3568_v41 }
  0xf8   : > { %v3831_v21 = vmax.f32 %v467_v16, 0.0  ;;  %v1446_v4 = vadd.f32 %v1414_v62, %v1348_v54  ;;  %v957_v9 = vadd.f32 %v925_v30, %v859_v25  ;;  %v3839_v31 = vmax.f32 %v452_v43, 0.0 }
  0xf9   : > { %v3841_v29 = vmax.f32 %v470_v32, 0.0  ;;  %v1251_v39 = vadd.f32 %v1219_v27, %v1152_v36  ;;  %v762_v59 = vadd.f32 %v730_v6, %v632_v44  ;;  %v828_v19 = vmul.f32 %v3423_v55, %v3722_v33  ;;  %v472_v57 = vpop.f32.mrf.mxu3  ;;  %v3884_v36 = vld [vmem:[#allocation2 + $0xfa] sm:$0xff] }
  0xfa   : > { %578 = vst [vmem:[#allocation2 + $0x169] sm:$0xff] %v3831_v21  ;;  %v926_v14 = vmul.f32 %v4810_v51, %v3798_v2  ;;  %1491 = vadd.xlane.f32.xlu1 %v1446_v4  ;;  %v1055_v41 = vadd.f32 %v1023_v61, %v957_v9  ;;  %v1220_v62 = vmul.f32 %v3455_v20, %v3829_v47  ;;  %v4828_v61 = vld [vmem:[#allocation12_spill] sm:$0xff]  ;;  %v3889_v4 = vld [vmem:[#allocation2 + $0x108] sm:$0xff] }
  0xfb   : > { %v1318_v23 = vmul.f32 %v3465_v26, %v4827_v49  ;;  %573 = vst [vmem:[#allocation2 + $0x129] sm:$0xff] %v3839_v31  ;;  %v1349_v7 = vadd.f32 %v1317_v15, %v1251_v39  ;;  %v1416_v33 = vmul.f32 %v4813_v56, %v3837_v42  ;;  %v860_v10 = vadd.f32 %v828_v19, %v762_v59 }
  0xfc   : > { %579 = vst [vmem:[#allocation2 + $0x171] sm:$0xff] %v3841_v29  ;;  %v1024_v3 = vmul.f32 %v4817_v63, %v4826_v8  ;;  %v1153_v11 = vadd.f32 %v1121_v58, %v1055_v41  ;;  %v1122_v50 = vmul.f32 %v3448_v12, %v3804_v13  ;;  %v633_v27 = vmul.f32 %v3409_v48, %v3765_v22  ;;  %v3876_v22 = vld [vmem:[#allocation2 + $0xf8] sm:$0xff] }
  0xfd   : > { %v731_v15 = vmul.f32 %v3416_v52, %v4825_v5  ;;  %v1447_v45 = vadd.f32 %v1415_v35, %v1349_v7  ;;  %v958_v18 = vadd.f32 %v926_v14, %v860_v10  ;;  %v1221_v60 = vmul.f32 %v3455_v20, %v3853_v0  ;;  %v3897_v14 = vld [vmem:[#allocation2 + $0x10a] sm:$0xff] }
  0xfe   : > { %v829_v30 = vmul.f32 %v3423_v55, %v3775_v24  ;;  %v1252_v1 = vadd.f32 %v1220_v62, %v1153_v11  ;;  %v1319_v58 = vmul.f32 %v3465_v26, %v4828_v61  ;;  %v927_v54 = vmul.f32 %v4810_v51, %v3829_v47 }
  0xff   : > { %v763_v16 = vadd.f32 %v731_v15, %v633_v27  ;;  %1493 = vadd.xlane.f32.xlu2 %v1447_v45  ;;  %v1056_v5 = vadd.f32 %v1024_v3, %v958_v18  ;;  %v1417_v35 = vmul.f32 %v4813_v56, %v3862_v28  ;;  %v1025_v25 = vmul.f32 %v4817_v63, %v4827_v49  ;;  %v3907_v27 = vld [vmem:[#allocation2 + $0x120] sm:$0xff] }
 0x100   : > { %v1123_v24 = vmul.f32 %v3448_v12, %v3837_v42  ;;  %v1350_v43 = vadd.f32 %v1318_v23, %v1252_v1  ;;  %v473_v44 = vadd.f32 %v3394_v37, %v472_v57  ;;  %v636_v6 = vmul.f32 %v3409_v48, %v3853_v0  ;;  %v4829_v37 = vld [vmem:[#allocation22_spill] sm:$0xff]  ;;  %v3245_v1 = vld [vmem:[%s4748_s2] ss:$0 sm:$0xff] }
 0x101   : > { %v861_v32 = vadd.f32 %v829_v30, %v763_v16  ;;  %v1154_v9 = vadd.f32 %v1122_v50, %v1056_v5  ;;  %v1222_v39 = vmul.f32 %v3455_v20, %v3876_v22  ;;  %v734_v59 = vmul.f32 %v3416_v52, %v4828_v61  ;;  %v475_v7 = vpop.f32.mrf.mxu3 }
 0x102   : > { %v832_v19 = vmul.f32 %v3423_v55, %v3862_v28  ;;  %v1448_v41 = vadd.f32 %v1416_v33, %v1350_v43  ;;  %v1320_v23 = vmul.f32 %v3465_v26, %v4829_v37  ;;  %v3901_v57 = vmax.f32 %v473_v44, 0.0  ;;  %v3914_v30 = vld [vmem:[#allocation2 + $0x122] sm:$0xff] }
 0x103   : > { %v959_v62 = vadd.f32 %v927_v54, %v861_v32  ;;  %v1253_v10 = vadd.f32 %v1221_v60, %v1154_v9  ;;  %v1418_v3 = vmul.f32 %v4813_v56, %v3884_v36  ;;  %v766_v11 = vadd.f32 %v734_v59, %v636_v6 }
 0x104   : > { %v930_v50 = vmul.f32 %v4810_v51, %v3889_v4  ;;  %1495 = vadd.xlane.f32.xlu0 %v1448_v41  ;;  %580 = vst [vmem:[#allocation2 + $0x181] sm:$0xff] %v3901_v57  ;;  %v1028_v33 = vmul.f32 %v4817_v63, %v3724_v17  ;;  %v1126_v45 = vmul.f32 %v3448_v12, %v3897_v14 }
 0x105   : > { %v1057_v15 = vadd.f32 %v1025_v25, %v959_v62  ;;  %v1351_v18 = vadd.f32 %v1319_v58, %v1253_v10  ;;  %v864_v60 = vadd.f32 %v832_v19, %v766_v11  ;;  %v3919_v16 = vadd.f32 %v3245_v1, %v475_v7  ;;  %v3954_v19 = vld [vmem:[%s4749_s3 + $0x1] ss:$0 sm:$0xff]  ;;  %v3969_v7 = vld [vmem:[#allocation2 + $0x110] sm:$0xff] }
 0x106   : > { %v634_v54 = vmul.f32 %v3409_v48, %v3798_v2  ;;  %v1225_v25 = vmul.f32 %v3455_v20, %v3907_v27  ;;  %v732_v58 = vmul.f32 %v3416_v52, %v4826_v8  ;;  %v830_v43 = vmul.f32 %v3423_v55, %v3804_v13 }
 0x107   : > { %v1155_v5 = vadd.f32 %v1123_v24, %v1057_v15  ;;  %v1449_v32 = vadd.f32 %v1417_v35, %v1351_v18  ;;  %v962_v44 = vadd.f32 %v930_v50, %v864_v60  ;;  %v1323_v6 = vmul.f32 %v3465_v26, %v3815_v53  ;;  %v3973_v15 = vld [vmem:[#allocation2 + $0x112] sm:$0xff]  ;;  %v3979_v60 = vld [vmem:[#allocation2 + $0x128] sm:$0xff] }
 0x108   : > { %v4782_v9 = vmax.f32 %v3919_v16, 0.0  ;;  %v1421_v2 = vmul.f32 %v4813_v56, %v3914_v30  ;;  %v764_v24 = vadd.f32 %v732_v58, %v634_v54  ;;  %v928_v59 = vmul.f32 %v4810_v51, %v3853_v0 }
 0x109   : > { %v1254_v48 = vadd.f32 %v1222_v39, %v1155_v5  ;;  %1497 = vadd.xlane.f32.xlu1 %v1449_v32  ;;  %v1060_v52 = vadd.f32 %v1028_v33, %v962_v44  ;;  %v1026_v55 = vmul.f32 %v4817_v63, %v4828_v61  ;;  %v1124_v13 = vmul.f32 %v3448_v12, %v3862_v28  ;;  %v3947_v39 = vld [vmem:[%s4749_s3] ss:$0 sm:$0xff] }
 0x10a   : > { %581 = vst [vmem:[#allocation2 + $0x189] sm:$0xff] %v4782_v9  ;;  %v862_v35 = vadd.f32 %v830_v43, %v764_v24  ;;  %v635_v0 = vmul.f32 %v3947_v39, %v3829_v47  ;;  %v733_v61 = vmul.f32 %v3954_v19, %v4827_v49  ;;  %v1223_v41 = vmul.f32 %v3455_v20, %v3889_v4  ;;  %v3965_v47 = vld [vmem:[%s4749_s3 + $0x2] ss:$0 sm:$0xff]  ;;  %v3999_v24 = vld [vmem:[%s4749_s3 + $0x3] ss:$0 sm:$0xff] }
 0x10b   : > { %v1352_v8 = vadd.f32 %v1320_v23, %v1254_v48  ;;  %v1158_v28 = vadd.f32 %v1126_v45, %v1060_v52  ;;  %v1321_v62 = vmul.f32 %v3465_v26, %v3724_v17  ;;  %v831_v23 = vmul.f32 %v3965_v47, %v3837_v42  ;;  %v3994_v43 = vld [vmem:[#allocation2 + $0x138] sm:$0xff] }
 0x10c   : > { %v960_v49 = vadd.f32 %v928_v59, %v862_v35  ;;  %v765_v11 = vadd.f32 %v733_v61, %v635_v0  ;;  %v929_v50 = vmul.f32 %v4810_v51, %v3876_v22  ;;  %v1419_v45 = vmul.f32 %v4813_v56, %v3897_v14  ;;  %v4005_v59 = vld [vmem:[#allocation2 + $0x140] sm:$0xff] }
 0x10d   : > { %v1450_v10 = vadd.f32 %v1418_v3, %v1352_v8  ;;  %v1257_v33 = vadd.f32 %v1225_v25, %v1158_v28  ;;  %v1027_v18 = vmul.f32 %v4817_v63, %v4829_v37  ;;  %v3982_v42 = vstv %s3923_s6  ;;  %v4016_v8 = vld [vmem:[%s4749_s3 + $0x4] ss:$0 sm:$0xff] }
 0x10e   : > { %v1058_v3 = vadd.f32 %v1026_v55, %v960_v49  ;;  %v863_v1 = vadd.f32 %v831_v23, %v765_v11  ;;  %v639_v54 = vmul.f32 %v3947_v39, %v3969_v7  ;;  %v737_v51 = vmul.f32 %v3954_v19, %v3779_v46  ;;  %v4020_v23 = vld [vmem:[#allocation2 + $0x142] sm:$0xff] }
 0x10f   : > { %1499 = vadd.xlane.f32.xlu2 %v1450_v10  ;;  %v1355_v5 = vadd.f32 %v1323_v6, %v1257_v33  ;;  %v1125_v25 = vmul.f32 %v3448_v12, %v3884_v36  ;;  %v1224_v63 = vmul.f32 %v3455_v20, %v3969_v7  ;;  %v835_v58 = vmul.f32 %v3965_v47, %v3973_v15  ;;  %v4003_v12 = vld [vmem:[#allocation2 + $0x12a] sm:$0xff]  ;;  %v4007_v20 = vld [vmem:[#allocation2 + $0x13a] sm:$0xff] }
 0x110   : > { %v1156_v32 = vadd.f32 %v1124_v13, %v1058_v3  ;;  %v961_v44 = vadd.f32 %v929_v50, %v863_v1  ;;  %v769_v48 = vadd.f32 %v737_v51, %v639_v54  ;;  %v933_v6 = vmul.f32 %v3999_v24, %v3979_v60  ;;  %v4029_v10 = vld [vmem:[%s4749_s3 + $0x5] ss:$0 sm:$0xff]  ;;  %v4830_v50 = vld [vmem:[#allocation19_spill] sm:$0xff]  ;;  %v4047_v51 = vld [vmem:[%s4749_s3 + $0x7] ss:$0 sm:$0xff] }
 0x111   : > { %v1453_v52 = vadd.f32 %v1421_v2, %v1355_v5  ;;  %v1322_v55 = vmul.f32 %v3465_v26, %v3779_v46  ;;  %v1420_v13 = vmul.f32 %v4813_v56, %v3973_v15  ;;  %v1031_v35 = vmul.f32 %v4016_v8, %v3839_v31  ;;  %v4024_v26 = vld [vmem:[#allocation2 + $0x150] sm:$0xff]  ;;  %v4831_v5 = vld [vmem:[#allocation26_spill] sm:$0xff] }
 0x112   : > { %v1255_v0 = vadd.f32 %v1223_v41, %v1156_v32  ;;  %v1059_v61 = vadd.f32 %v1027_v18, %v961_v44  ;;  %v867_v28 = vadd.f32 %v835_v58, %v769_v48  ;;  %v642_v2 = vmul.f32 %v3947_v39, %v3994_v43  ;;  %v4036_v41 = vld [vmem:[%s4749_s3 + $0x6] ss:$0 sm:$0xff]  ;;  %v4052_v44 = vld [vmem:[#allocation2 + $0x152] sm:$0xff] }
 0x113   : > { %v1129_v49 = vmul.f32 %v4029_v10, %v4003_v12  ;;  %v1228_v11 = vmul.f32 %v4036_v41, %v4005_v59  ;;  %v740_v33 = vmul.f32 %v3954_v19, %v4830_v50  ;;  %v838_v18 = vmul.f32 %v3965_v47, %v4007_v20 }
 0x114   : > { %v1353_v3 = vadd.f32 %v1321_v62, %v1255_v0  ;;  %v1157_v1 = vadd.f32 %v1125_v25, %v1059_v61  ;;  %v965_v54 = vadd.f32 %v933_v6, %v867_v28  ;;  %v4832_v58 = vmax.f32 %v4831_v5, 0.0  ;;  %v4060_v6 = vld [vmem:[#allocation2 + $0x168] sm:$0xff] }
 0x115   : > { %v1424_v48 = vmul.f32 %v4813_v56, %v4020_v23  ;;  %v772_v9 = vadd.f32 %v740_v33, %v642_v2  ;;  %v936_v62 = vmul.f32 %v3999_v24, %v4024_v26  ;;  %v1034_v25 = vmul.f32 %v4016_v8, %v3777_v34  ;;  %v4062_v5 = vld [vmem:[#allocation2 + $0x16a] sm:$0xff] }
 0x116   : > { %v1326_v32 = vmul.f32 %v4047_v51, %v4832_v58  ;;  %v1451_v0 = vadd.f32 %v1419_v45, %v1353_v3  ;;  %v1256_v61 = vadd.f32 %v1224_v63, %v1157_v1  ;;  %v1063_v28 = vadd.f32 %v1031_v35, %v965_v54 }
 0x117   : > { %1505 = vadd.xlane.f32.xlu2 %v1453_v52  ;;  %v638_v58 = vmul.f32 %v3947_v39, %v3889_v4  ;;  %v870_v40 = vadd.f32 %v838_v18, %v772_v9  ;;  %v1132_v56 = vmul.f32 %v4029_v10, %v4052_v44  ;;  %v736_v2 = vmul.f32 %v3954_v19, %v3724_v17  ;;  %v4079_v9 = vld [vmem:[%s4749_s3 + $0x8] ss:$0 sm:$0xff] }
 0x118   : > { %v834_v33 = vmul.f32 %v3965_v47, %v3897_v14  ;;  %1501 = vadd.xlane.f32.xlu0 %v1451_v0  ;;  %v1354_v52 = vadd.f32 %v1322_v55, %v1256_v61  ;;  %v1161_v45 = vadd.f32 %v1129_v49, %v1063_v28  ;;  %v1231_v63 = vmul.f32 %v4036_v41, %v4060_v6  ;;  %v4093_v61 = vld [vmem:[#allocation2 + $0x158] sm:$0xff] }
 0x119   : > { %v1329_v35 = vmul.f32 %v4047_v51, %v3831_v21  ;;  %v968_v4 = vadd.f32 %v936_v62, %v870_v40  ;;  %v1427_v17 = vmul.f32 %v4079_v9, %v4062_v5  ;;  %v768_v18 = vadd.f32 %v736_v2, %v638_v58 }
 0x11a   : > { %v932_v14 = vmul.f32 %v3999_v24, %v3907_v27  ;;  %v1452_v55 = vadd.f32 %v1420_v13, %v1354_v52  ;;  %v1260_v49 = vadd.f32 %v1228_v11, %v1161_v45  ;;  %v1030_v3 = vmul.f32 %v4016_v8, %v3815_v53 }
 0x11b   : > { %v637_v40 = vmul.f32 %v3947_v39, %v3876_v22  ;;  %v1066_v1 = vadd.f32 %v1034_v25, %v968_v4  ;;  %v866_v54 = vadd.f32 %v834_v33, %v768_v18  ;;  %v735_v62 = vmul.f32 %v3954_v19, %v4829_v37  ;;  %v4105_v33 = vld [vmem:[#allocation2 + $0x170] sm:$0xff] }
 0x11c   : > { %v833_v0 = vmul.f32 %v3965_v47, %v3884_v36  ;;  %1503 = vadd.xlane.f32.xlu1 %v1452_v55  ;;  %v1358_v28 = vadd.f32 %v1326_v32, %v1260_v49  ;;  %v1128_v13 = vmul.f32 %v4029_v10, %v3914_v30  ;;  %v1227_v11 = vmul.f32 %v4036_v41, %v3994_v43  ;;  %v4103_v36 = vld [vmem:[#allocation2 + $0x15a] sm:$0xff] }
 0x11d   : > { %v1325_v22 = vmul.f32 %v4047_v51, %v4830_v50  ;;  %v1164_v25 = vadd.f32 %v1132_v56, %v1066_v1  ;;  %v964_v58 = vadd.f32 %v932_v14, %v866_v54  ;;  %v767_v2 = vadd.f32 %v735_v62, %v637_v40  ;;  %v4126_v54 = vld [vmem:[#allocation2 + $0x188] sm:$0xff] }
 0x11e   : > { %v931_v37 = vmul.f32 %v3999_v24, %v3969_v7  ;;  %v1456_v32 = vadd.f32 %v1424_v48, %v1358_v28  ;;  %v1423_v52 = vmul.f32 %v4079_v9, %v4007_v20  ;;  %v1029_v45 = vmul.f32 %v4016_v8, %v3779_v46 }
 0x11f   : > { %v645_v50 = vmul.f32 %v3947_v39, %v4093_v61  ;;  %v1263_v56 = vadd.f32 %v1231_v63, %v1164_v25  ;;  %v1062_v4 = vadd.f32 %v1030_v3, %v964_v58  ;;  %v865_v18 = vadd.f32 %v833_v0, %v767_v2  ;;  %v4124_v63 = vld [vmem:[#allocation2 + $0x172] sm:$0xff]  ;;  %v4138_v2 = vld [vmem:[#allocation2 + $0x18a] sm:$0xff] }
 0x120   : > { %v4833_v14 = vmax.f32 %v3771_v38, 0.0  ;;  %1511 = vadd.xlane.f32.xlu2 %v1456_v32  ;;  %v1127_v48 = vmul.f32 %v4029_v10, %v3973_v15  ;;  %v1226_v55 = vmul.f32 %v4036_v41, %v3979_v60  ;;  %v841_v46 = vmul.f32 %v3965_v47, %v4103_v36 }
 0x121   : > { %v939_v49 = vmul.f32 %v3999_v24, %v4105_v33  ;;  %v1361_v3 = vadd.f32 %v1329_v35, %v1263_v56  ;;  %v1160_v40 = vadd.f32 %v1128_v13, %v1062_v4  ;;  %v963_v38 = vadd.f32 %v931_v37, %v865_v18 }
 0x122   : > { %v743_v7 = vmul.f32 %v3954_v19, %v4833_v14  ;;  %v1324_v15 = vmul.f32 %v4047_v51, %v3839_v31  ;;  %v1422_v62 = vmul.f32 %v4079_v9, %v4003_v12  ;;  %v1037_v0 = vmul.f32 %v4016_v8, %v3841_v29 }
 0x123   : > { %v644_v28 = vmul.f32 %v3947_v39, %v4024_v26  ;;  %v1259_v25 = vadd.f32 %v1227_v11, %v1160_v40  ;;  %v1061_v58 = vadd.f32 %v1029_v45, %v963_v38  ;;  %v1135_v13 = vmul.f32 %v4029_v10, %v4124_v63  ;;  %v4155_v40 = vld [vmem:[#allocation2 + $0x180] sm:$0xff] }
 0x124   : > { %v775_v1 = vadd.f32 %v743_v7, %v645_v50  ;;  %v1459_v37 = vadd.f32 %v1427_v17, %v1361_v3  ;;  %v1234_v32 = vmul.f32 %v4036_v41, %v4126_v54  ;;  %v742_v50 = vmul.f32 %v3954_v19, %v3777_v34 }
 0x125   : > { %v840_v56 = vmul.f32 %v3965_v47, %v4052_v44  ;;  %v1357_v4 = vadd.f32 %v1325_v22, %v1259_v25  ;;  %v1159_v18 = vadd.f32 %v1127_v48, %v1061_v58  ;;  %v4834_v45 = vmax.f32 %v3919_v16, 0.0  ;;  %v998_v58 = vld [vmem:[#allocation2 + $0x139] sm:$0xff] }
 0x126   : > { %v873_v35 = vadd.f32 %v841_v46, %v775_v1  ;;  %v1430_v7 = vmul.f32 %v4079_v9, %v4138_v2  ;;  %v774_v17 = vadd.f32 %v742_v50, %v644_v28  ;;  %v938_v46 = vmul.f32 %v3999_v24, %v4060_v6 }
 0x127   : > { %v1332_v14 = vmul.f32 %v4047_v51, %v4834_v45  ;;  %v1036_v3 = vmul.f32 %v4016_v8, %v3831_v21  ;;  %v1455_v38 = vadd.f32 %v1423_v52, %v1357_v4  ;;  %v1258_v22 = vadd.f32 %v1226_v55, %v1159_v18 }
 0x128   : > { %v971_v11 = vadd.f32 %v939_v49, %v873_v35  ;;  %v4157_v49 = vld [vmem:[#allocation2 + $0x182] sm:$0xff]  ;;  %v640_v16 = vmul.f32 %v3947_v39, %v3907_v27  ;;  %1517 = vadd.xlane.f32.xlu2 %v1459_v37  ;;  %v872_v1 = vadd.f32 %v840_v56, %v774_v17  ;;  %v1134_v28 = vmul.f32 %v4029_v10, %v4062_v5 }
 0x129   : > { %v738_v25 = vmul.f32 %v3954_v19, %v3815_v53  ;;  %v836_v21 = vmul.f32 %v3965_v47, %v3914_v30  ;;  %1509 = vadd.xlane.f32.xlu1 %v1455_v38  ;;  %v1356_v52 = vadd.f32 %v1324_v15, %v1258_v22  ;;  %v1331_v27 = vmul.f32 %v4047_v51, %v3901_v57  ;;  %v999_v17 = vld [vmem:[#allocation2 + $0x141] sm:$0xff] }
 0x12a   : > { %v1069_v48 = vadd.f32 %v1037_v0, %v971_v11  ;;  %v1233_v0 = vmul.f32 %v4036_v41, %v4155_v40  ;;  %v970_v35 = vadd.f32 %v938_v46, %v872_v1  ;;  %v1429_v37 = vmul.f32 %v4079_v9, %v4157_v49 }
 0x12b   : > { %v770_v50 = vadd.f32 %v738_v25, %v640_v16  ;;  %v934_v53 = vmul.f32 %v3999_v24, %v3994_v43  ;;  %v1454_v56 = vadd.f32 %v1422_v62, %v1356_v52  ;;  %v1032_v4 = vmul.f32 %v4016_v8, %v998_v58 }
 0x12c   : > { %v1167_v55 = vadd.f32 %v1135_v13, %v1069_v48  ;;  %v641_v15 = vmul.f32 %v3947_v39, %v3979_v60  ;;  %v1068_v13 = vadd.f32 %v1036_v3, %v970_v35  ;;  %v739_v11 = vmul.f32 %v3954_v19, %v3839_v31 }
 0x12d   : > { %v868_v18 = vadd.f32 %v836_v21, %v770_v50  ;;  %v837_v45 = vmul.f32 %v3965_v47, %v4003_v12  ;;  %1507 = vadd.xlane.f32.xlu0 %v1454_v56  ;;  %v1130_v43 = vmul.f32 %v4029_v10, %v4007_v20  ;;  %v1229_v62 = vmul.f32 %v4036_v41, %v4024_v26 }
 0x12e   : > { %v1266_v30 = vadd.f32 %v1234_v32, %v1167_v55  ;;  %v935_v60 = vmul.f32 %v3999_v24, %v4005_v59  ;;  %v1166_v32 = vadd.f32 %v1134_v28, %v1068_v13  ;;  %v771_v38 = vadd.f32 %v739_v11, %v641_v15  ;;  %v1466_v22 = vpop.xlane.xlu0 %1465  ;;  %v1294_v28 = vld [vmem:[#allocation2 + $0x159] sm:$0xff] }
 0x12f   : > { %v966_v3 = vadd.f32 %v934_v53, %v868_v18  ;;  %v1033_v31 = vmul.f32 %v4016_v8, %v999_v17  ;;  %v643_v12 = vmul.f32 %v3947_v39, %v4005_v59  ;;  %v839_v20 = vmul.f32 %v3965_v47, %v4020_v23  ;;  %v710_v18 = vld [vmem:[#allocation2 + $0x169] sm:$0xff] }
 0x130   : > { %v1364_v46 = vadd.f32 %v1332_v14, %v1266_v30  ;;  %v741_v14 = vmul.f32 %v3954_v19, %v999_v17  ;;  %v1531_v26 = vadd.f32 %v3982_v42, %v1466_v22  ;;  %v1265_v16 = vadd.f32 %v1233_v0, %v1166_v32 }
 0x131   : > { %v1064_v1 = vadd.f32 %v1032_v4, %v966_v3  ;;  %v869_v25 = vadd.f32 %v837_v45, %v771_v38  ;;  %v1327_v21 = vmul.f32 %v4047_v51, %v3777_v34  ;;  %v937_v59 = vmul.f32 %v3999_v24, %v4093_v61 }
 0x132   : > { %v1462_v48 = vadd.f32 %v1430_v7, %v1364_v46  ;;  %v1131_v7 = vmul.f32 %v4029_v10, %v4020_v23  ;;  %v773_v58 = vadd.f32 %v741_v14, %v643_v12  ;;  %v3047_v52 = vmul.f32 -1.442695, %v1531_v26 }
 0x133   : > { %v1363_v55 = vadd.f32 %v1331_v27, %v1265_v16  ;;  %v1162_v35 = vadd.f32 %v1130_v43, %v1064_v1  ;;  %v967_v50 = vadd.f32 %v935_v60, %v869_v25  ;;  %v1425_v0 = vmul.f32 %v4079_v9, %v4052_v44 }
 0x134   : > { %1523 = vadd.xlane.f32.xlu2 %v1462_v48  ;;  %v1230_v53 = vmul.f32 %v4036_v41, %v4093_v61  ;;  %v871_v56 = vadd.f32 %v839_v20, %v773_v58  ;;  %v1035_v34 = vmul.f32 %v4016_v8, %v1294_v28  ;;  %3117 = vpow2.f32 %v3047_v52  ;;  %v3255_v52 = vld [vmem:[#allocation2] sm:$0xff] }
 0x135   : > { %v1461_v30 = vadd.f32 %v1429_v37, %v1363_v55  ;;  %v1261_v23 = vadd.f32 %v1229_v62, %v1162_v35  ;;  %v1065_v4 = vadd.f32 %v1033_v31, %v967_v50  ;;  %v1328_v15 = vmul.f32 %v4047_v51, %v1294_v28  ;;  %v1299_v35 = vld [vmem:[#allocation2 + $0x199] sm:$0xff] }
 0x136   : > { %v969_v13 = vadd.f32 %v937_v59, %v871_v56  ;;  %v1133_v27 = vmul.f32 %v4029_v10, %v4103_v36  ;;  %v646_v61 = vmul.f32 %v3947_v39, %v4060_v6  ;;  %v744_v45 = vmul.f32 %v3954_v19, %v710_v18  ;;  %v1468_v17 = vpop.xlane.xlu0 %1467  ;;  %v1005_v18 = vld [vmem:[#allocation2 + $0x189] sm:$0xff] }
 0x137   : > { %1521 = vadd.xlane.f32.xlu1 %v1461_v30  ;;  %v1359_v11 = vadd.f32 %v1327_v21, %v1261_v23  ;;  %v1163_v44 = vadd.f32 %v1131_v7, %v1065_v4  ;;  %v1426_v37 = vmul.f32 %v4079_v9, %v4103_v36  ;;  %v1232_v43 = vmul.f32 %v4036_v41, %v4105_v33 }
 0x138   : > { %v1067_v46 = vadd.f32 %v1035_v34, %v969_v13  ;;  %v1532_v62 = vadd.f32 %v3982_v42, %v1468_v17  ;;  %v776_v3 = vadd.f32 %v744_v45, %v646_v61  ;;  %v842_v31 = vmul.f32 %v3965_v47, %v4062_v5 }
 0x139   : > { %v1457_v60 = vadd.f32 %v1425_v0, %v1359_v11  ;;  %v1262_v32 = vadd.f32 %v1230_v53, %v1163_v44  ;;  %v1330_v36 = vmul.f32 %v4047_v51, %v3841_v29  ;;  %v940_v12 = vmul.f32 %v3999_v24, %v4155_v40  ;;  %v711_v40 = vld [vmem:[#allocation2 + $0x171] sm:$0xff] }
 0x13a   : > { %v1165_v38 = vadd.f32 %v1133_v27, %v1067_v46  ;;  %v3118_v6 = vpop.eup %3117  ;;  %v3048_v22 = vmul.f32 -1.442695, %v1532_v62  ;;  %v874_v26 = vadd.f32 %v842_v31, %v776_v3  ;;  %v1428_v1 = vmul.f32 %v4079_v9, %v4124_v63 }
 0x13b   : > { %1513 = vadd.xlane.f32.xlu0 %v1457_v60  ;;  %v1360_v48 = vadd.f32 %v1328_v15, %v1262_v32  ;;  %v1659_v14 = vadd.f32 1.0, %v3118_v6  ;;  %v1038_v5 = vmul.f32 %v4016_v8, %v3901_v57  ;;  %v1136_v29 = vmul.f32 %v4029_v10, %v4157_v49 }
 0x13c   : > { %v1264_v20 = vadd.f32 %v1232_v43, %v1165_v38  ;;  %3119 = vpow2.f32 %v3048_v22  ;;  %v972_v28 = vadd.f32 %v940_v12, %v874_v26  ;;  %v4231_v55 = vmul.f32 %v3255_v52, %v4036_v41  ;;  %v1397_v41 = vld [vmem:[#allocation2 + $0x19a] sm:$0xff] }
 0x13d   : > { %v1458_v16 = vadd.f32 %v1426_v37, %v1360_v48  ;;  %3121 = vrcp.f32 %v1659_v14  ;;  %v647_v57 = vmul.f32 %v3947_v39, %v4105_v33  ;;  %v745_v50 = vmul.f32 %v3954_v19, %v711_v40 }
 0x13e   : > { %v1362_v25 = vadd.f32 %v1330_v36, %v1264_v20  ;;  %v1470_v21 = vpop.xlane.xlu1 %1469  ;;  %v1070_v59 = vadd.f32 %v1038_v5, %v972_v28  ;;  %v1333_v56 = vmul.f32 %v4047_v51, %v1299_v35  ;;  %v843_v34 = vmul.f32 %v3965_v47, %v4124_v63 }
 0x13f   : > { %1515 = vadd.xlane.f32.xlu1 %v1458_v16  ;;  %v1533_v7 = vadd.f32 %v3982_v42, %v1470_v21  ;;  %v777_v4 = vadd.f32 %v745_v50, %v647_v57  ;;  %v1431_v13 = vmul.f32 %v4079_v9, %v1397_v41  ;;  %v1700_v11 = vand.u32 2147483647, %v1659_v14 }
 0x140   : > { %v1460_v58 = vadd.f32 %v1428_v1, %v1362_v25  ;;  %v1168_v49 = vadd.f32 %v1136_v29, %v1070_v59  ;;  %v1702_v44 = vand.u32 2147483648, %v1659_v14  ;;  %v941_v63 = vmul.f32 %v3999_v24, %v4126_v54  ;;  %v1398_v59 = vld [vmem:[#allocation2 + $0x1a2] sm:$0xff] }
 0x141   : > { %v3049_v53 = vmul.f32 -1.442695, %v1533_v7  ;;  %v875_v27 = vadd.f32 %v843_v34, %v777_v4  ;;  %v1039_v46 = vmul.f32 %v4016_v8, %v1005_v18  ;;  %vm1696_vm3 = vweird.f32 %v1659_v14 }
 0x142   : > { %v3120_v0 = vpop.eup %3119  ;;  %v1267_v39 = vadd.f32 %v4231_v55, %v1168_v49  ;;  %v1703_v3 = vor.u32 1.1754944e-38, %v1702_v44  ;;  %vm1701_vm5 = vcmp.eq.f32.partialorder %v1700_v11, 8.507059e+37  ;;  %v1137_v8 = vmul.f32 %v4029_v10, %v4138_v2 }
 0x143   : > { %1519 = vadd.xlane.f32.xlu0 %v1460_v58  ;;  %v3122_v30 = vpop.eup %3121  ;;  %v4239_v23 = vadd.f32 1.0, %v3120_v0  ;;  %3123 = vpow2.f32 %v3049_v53  ;;  %v973_v37 = vadd.f32 %v941_v63, %v875_v27  ;;  %v3265_v41 = vmov 0  }
 0x144   : > { %v1692_v15 = vmul.f32 %v3122_v30, %v1659_v14  ;;  %v1365_v33 = vadd.f32 %v1333_v56, %v1267_v39  ;;  %vm1697_vm2 = vweird.f32 %v3122_v30  ;;  %v1300_v14 = vld [vmem:[#allocation2 + $0x1a1] sm:$0xff]  ;;  %3104 = vset.pattern.permute.xlu2 %v3265_v41  ;;  %3105 = vset.pattern.permute.xlu0 %v3265_v41 }
 0x145   : > { %3125 = vrcp.f32 %v4239_v23  ;;  %vm1698_vm4 = vmor %vm1696_vm3, %vm1697_vm2  ;;  %v1071_v6 = vadd.f32 %v1039_v46, %v973_v37  ;;  %v1717_v1 = vand.u32 2147483648, %v4239_v23  ;;  %v1334_v10 = vmul.f32 %v4047_v51, %v1300_v14  ;;  %3106 = vset.pattern.permute.xlu1 %v3265_v41 }
 0x146   : > { %v1693_v19 = vsub.f32 1.0, %v1692_v15  ;;  %v1472_v47 = vpop.xlane.xlu1 %1471  ;;  %v1463_v17 = vadd.f32 %v1431_v13, %v1365_v33  ;;  %v1715_v7 = vand.u32 2147483647, %v4239_v23  ;;  %vm1711_vm7 = vweird.f32 %v4239_v23 }
 0x147   : > { %v1534_v45 = vadd.f32 %v3982_v42, %v1472_v47  ;;  %v1169_v25 = vadd.f32 %v1137_v8, %v1071_v6  ;;  %v1718_v51 = vor.u32 1.1754944e-38, %v1717_v1 }
 0x148   : > { %v1694_v61 = vmul.f32 %v3122_v30, %v1693_v19  ;;  %vm1716_vm9 = vcmp.eq.f32.partialorder %v1715_v7, 8.507059e+37 }
 0x149   : > { %v3124_v43 = vpop.eup %3123  ;;  %v3050_v60 = vmul.f32 -1.442695, %v1534_v45  ;;  %v1268_v58 = vadd.f32 %v4231_v55, %v1169_v25  ;;  %v1432_v55 = vmul.f32 %v4079_v9, %v1398_v59 }
 0x14a   : > { %v1695_v62 = vadd.f32 %v3122_v30, %v1694_v61  ;;  %v4248_v38 = vadd.f32 1.0, %v3124_v43 }
 0x14b   : > { %1525 = vadd.xlane.f32.xlu0 %v1463_v17  ;;  %v3126_v32 = vpop.eup %3125  ;;  %3127 = vpow2.f32 %v3050_v60  ;;  %v1366_v53 = vadd.f32 %v1334_v10, %v1268_v58 }
 0x14c   : > { %v1699_v31 = vsel %vm1698_vm4, %v3122_v30, %v1695_v62  ;;  %v1707_v24 = vmul.f32 %v3126_v32, %v4239_v23  ;;  %3129 = vrcp.f32 %v4248_v38  ;;  %vm1712_vm6 = vweird.f32 %v3126_v32 }
 0x14d   : > { %v1704_v54 = vsel %vm1701_vm5, %v1703_v3, %v1699_v31  ;;  %vm1713_vm8 = vmor %vm1711_vm7, %vm1712_vm6  ;;  %v1464_v30 = vadd.f32 %v1432_v55, %v1366_v53  ;;  %v1732_v47 = vand.u32 2147483648, %v4248_v38  ;;  %vm1726_vm11 = vweird.f32 %v4248_v38 }
 0x14e   : > { %v2203_v22 = vperm.slane %v1704_v54, 0  ;;  %v2204_v48 = vperm.slane %v1704_v54, 1  ;;  %v2205_v36 = vperm.slane %v1704_v54, 2  ;;  %v2206_v12 = vperm.slane %v1704_v54, 3 }
 0x14f   : > { %v2207_v20 = vperm.slane %v1704_v54, 4  ;;  %v1708_v26 = vsub.f32 1.0, %v1707_v24  ;;  %v2208_v16 = vperm.slane %v1704_v54, 5  ;;  %v2209_v29 = vperm.slane %v1704_v54, 6  ;;  %1527 = vadd.xlane.f32.xlu1 %v1464_v30 }
 0x150   : > { %2459 = vst [vmem:[#allocation1] ss:$9 sm:$0xff] %v2203_v22  ;;  %v1474_v5 = vpop.xlane.xlu2 %1473  ;;  %v2210_v40 = vperm.slane %v1704_v54, 7  ;;  %v1730_v45 = vand.u32 2147483647, %v4248_v38  ;;  %v1733_v43 = vor.u32 1.1754944e-38, %v1732_v47 }
 0x151   : > { %2461 = vst [vmem:[#allocation1 + $0x1] ss:$9 sm:$0xff] %v2204_v48  ;;  %v3128_v28 = vpop.eup %3127  ;;  %v1709_v21 = vmul.f32 %v3126_v32, %v1708_v26  ;;  %v1535_v57 = vadd.f32 %v3982_v42, %v1474_v5 }
 0x152   : > { %2463 = vst [vmem:[#allocation1 + $0x2] ss:$9 sm:$0xff] %v2205_v36  ;;  %v4256_v2 = vpop.eup %3129  ;;  %v4264_v0 = vadd.f32 1.0, %v3128_v28  ;;  %vm1731_vm13 = vcmp.eq.f32.partialorder %v1730_v45, 8.507059e+37 }
 0x153   : > { %2465 = vst [vmem:[#allocation1 + $0x3] ss:$9 sm:$0xff] %v2206_v12  ;;  %v1710_v52 = vadd.f32 %v3126_v32, %v1709_v21  ;;  %v1722_v35 = vmul.f32 %v4256_v2, %v4248_v38  ;;  %v3051_v34 = vmul.f32 -1.442695, %v1535_v57  ;;  %vm1727_vm10 = vweird.f32 %v4256_v2 }
 0x154   : > { %2467 = vst [vmem:[#allocation1 + $0x4] ss:$9 sm:$0xff] %v2207_v20  ;;  %3131 = vrcp.f32 %v4264_v0  ;;  %vm1728_vm12 = vmor %vm1726_vm11, %vm1727_vm10  ;;  %v1747_v20 = vand.u32 2147483648, %v4264_v0  ;;  %vm1741_vm15 = vweird.f32 %v4264_v0  ;;  %v1745_v1 = vand.u32 2147483647, %v4264_v0 }
 0x155   : > { %2469 = vst [vmem:[#allocation1 + $0x5] ss:$9 sm:$0xff] %v2208_v16  ;;  %v1714_v50 = vsel %vm1713_vm8, %v3126_v32, %v1710_v52  ;;  %v1723_v56 = vsub.f32 1.0, %v1722_v35  ;;  %3133 = vpow2.f32 %v3051_v34 }
 0x156   : > { %2471 = vst [vmem:[#allocation1 + $0x6] ss:$9 sm:$0xff] %v2209_v29  ;;  %v1719_v49 = vsel %vm1716_vm9, %v1718_v51, %v1714_v50  ;;  %v1478_v5 = vpop.xlane.xlu0 %1477  ;;  %v1748_v29 = vor.u32 1.1754944e-38, %v1747_v20  ;;  %vm1746_vm1 = vcmp.eq.f32.partialorder %v1745_v1, 8.507059e+37 }
 0x157   : > { %2473 = vst [vmem:[#allocation1 + $0x7] ss:$9 sm:$0xff] %v2210_v40  ;;  %v2211_v23 = vperm.slane %v1719_v49, 0  ;;  %v2212_v4 = vperm.slane %v1719_v49, 1  ;;  %v1724_v15 = vmul.f32 %v4256_v2, %v1723_v56  ;;  %v2213_v39 = vperm.slane %v1719_v49, 2 }
 0x158   : > { %v2214_v19 = vperm.slane %v1719_v49, 3  ;;  %v2215_v33 = vperm.slane %v1719_v49, 4  ;;  %v2216_v27 = vperm.slane %v1719_v49, 5  ;;  %v1476_v11 = vpop.xlane.xlu2 %1475  ;;  %v2217_v44 = vperm.slane %v1719_v49, 6 }
 0x159   : > { %v1725_v18 = vadd.f32 %v4256_v2, %v1724_v15  ;;  %v2218_v61 = vperm.slane %v1719_v49, 7  ;;  %v1536_v37 = vadd.f32 %v3982_v42, %v1476_v11  ;;  %v1537_v21 = vadd.f32 %v3982_v42, %v1478_v5 }
 0x15a   : > { %v4269_v13 = vpop.eup %3131 }
 0x15b   : > { %v3134_v63 = vpop.eup %3133  ;;  %v1737_v17 = vmul.f32 %v4269_v13, %v4264_v0  ;;  %v1729_v46 = vsel %vm1728_vm12, %v4256_v2, %v1725_v18  ;;  %v3052_v3 = vmul.f32 -1.442695, %v1536_v37  ;;  %vm1742_vm14 = vweird.f32 %v4269_v13 }
 0x15c   : > { %v4280_v62 = vadd.f32 1.0, %v3134_v63  ;;  %v1734_v60 = vsel %vm1731_vm13, %v1733_v43, %v1729_v46  ;;  %vm1743_vm0 = vmor %vm1741_vm15, %vm1742_vm14  ;;  %v3053_v7 = vmul.f32 -1.442695, %v1537_v21 }
 0x15d   : > { %v1738_v32 = vsub.f32 1.0, %v1737_v17  ;;  %v2219_v38 = vperm.slane %v1734_v60, 0  ;;  %v2220_v31 = vperm.slane %v1734_v60, 1  ;;  %v2221_v54 = vperm.slane %v1734_v60, 2 }
 0x15e   : > { %v2474_v9 = vld [vmem:[#allocation1] sm:$0xff]  ;;  %3135 = vrcp.f32 %v4280_v62  ;;  %v2222_v8 = vperm.slane %v1734_v60, 3  ;;  %v2223_v22 = vperm.slane %v1734_v60, 4  ;;  %v2224_v36 = vperm.slane %v1734_v60, 5 }
 0x15f   : > { %2475 = vst [vmem:[#allocation1] ss:$9 sm:$0xff] %v2211_v23  ;;  %2755 = vperm.xlu2 %3104, %v2474_v9   ;;  %v1739_v24 = vmul.f32 %v4269_v13, %v1738_v32  ;;  %3137 = vpow2.f32 %v3052_v3  ;;  %v2225_v14 = vperm.slane %v1734_v60, 6  ;;  %v2226_v16 = vperm.slane %v1734_v60, 7  ;;  %v1480_v23 = vpop.xlane.xlu1 %1479 }
 0x160   : > { %2476 = vst [vmem:[#allocation1 + $0x1] ss:$9 sm:$0xff] %v2212_v4  ;;  %v1762_v56 = vand.u32 2147483648, %v4280_v62  ;;  %vm1756_vm3 = vweird.f32 %v4280_v62  ;;  %v1760_v30 = vand.u32 2147483647, %v4280_v62  ;;  %v1538_v9 = vadd.f32 %v3982_v42, %v1480_v23  ;;  %v1482_v3 = vpop.xlane.xlu2 %1481 }
 0x161   : > { %2477 = vst [vmem:[#allocation1 + $0x2] ss:$9 sm:$0xff] %v2213_v39  ;;  %v1740_v12 = vadd.f32 %v4269_v13, %v1739_v24 }
 0x162   : > { %2478 = vst [vmem:[#allocation1 + $0x3] ss:$9 sm:$0xff] %v2214_v19  ;;  %v1763_v39 = vor.u32 1.1754944e-38, %v1762_v56  ;;  %vm1761_vm5 = vcmp.eq.f32.partialorder %v1760_v30, 8.507059e+37 }
 0x163   : > { %2479 = vst [vmem:[#allocation1 + $0x4] ss:$9 sm:$0xff] %v2215_v33  ;;  %v1744_v28 = vsel %vm1743_vm0, %v4269_v13, %v1740_v12 }
 0x164   : > { %2480 = vst [vmem:[#allocation1 + $0x5] ss:$9 sm:$0xff] %v2216_v27  ;;  %v4284_v48 = vpop.eup %3135  ;;  %v1749_v2 = vsel %vm1746_vm1, %v1748_v29, %v1744_v28  ;;  %v3054_v27 = vmul.f32 -1.442695, %v1538_v9 }
 0x165   : > { %2481 = vst [vmem:[#allocation1 + $0x6] ss:$9 sm:$0xff] %v2217_v44  ;;  %v3138_v26 = vpop.eup %3137  ;;  %v1752_v25 = vmul.f32 %v4284_v48, %v4280_v62  ;;  %v2227_v58 = vperm.slane %v1749_v2, 0  ;;  %v2228_v59 = vperm.slane %v1749_v2, 1  ;;  %v2229_v35 = vperm.slane %v1749_v2, 2 }
 0x166   : > { %2482 = vst [vmem:[#allocation1 + $0x7] ss:$9 sm:$0xff] %v2218_v61  ;;  %v4295_v10 = vadd.f32 1.0, %v3138_v26  ;;  %v2230_v51 = vperm.slane %v1749_v2, 3  ;;  %v2231_v50 = vperm.slane %v1749_v2, 4  ;;  %v2232_v53 = vperm.slane %v1749_v2, 5 }
 0x167   : > { %v1753_v40 = vsub.f32 1.0, %v1752_v25  ;;  %vm1757_vm2 = vweird.f32 %v4284_v48  ;;  %v2233_v49 = vperm.slane %v1749_v2, 6  ;;  %v2234_v34 = vperm.slane %v1749_v2, 7  ;;  %v1484_v2 = vpop.xlane.xlu0 %1483  ;;  %v1486_v9 = vpop.xlane.xlu1 %1485 }
 0x168   : > { %3139 = vrcp.f32 %v4295_v10  ;;  %vm1758_vm4 = vmor %vm1756_vm3, %vm1757_vm2  ;;  %v1777_v43 = vand.u32 2147483648, %v4295_v10  ;;  %vm1771_vm7 = vweird.f32 %v4295_v10  ;;  %v1775_v32 = vand.u32 2147483647, %v4295_v10 }
 0x169   : > { %v1754_v52 = vmul.f32 %v4284_v48, %v1753_v40  ;;  %3141 = vpow2.f32 %v3053_v7 }
 0x16a   : > { %vm1776_vm9 = vcmp.eq.f32.partialorder %v1775_v32, 8.507059e+37 }
 0x16b   : > { %v1755_v55 = vadd.f32 %v4284_v48, %v1754_v52  ;;  %v1540_v52 = vadd.f32 %v3982_v42, %v1484_v2 }
 0x16d   : > { %v2483_v6 = vld [vmem:[#allocation1] sm:$0xff]  ;;  %v1759_v15 = vsel %vm1758_vm4, %v4284_v48, %v1755_v55 }
 0x16e   : > { %2484 = vst [vmem:[#allocation1] ss:$9 sm:$0xff] %v2219_v38  ;;  %2758 = vperm.xlu0 %3105, %v2483_v6   ;;  %v4299_v0 = vpop.eup %3139  ;;  %v1764_v19 = vsel %vm1761_vm5, %v1763_v39, %v1759_v15  ;;  %v1539_v6 = vadd.f32 %v3982_v42, %v1482_v3 }
 0x16f   : > { %2485 = vst [vmem:[#allocation1 + $0x1] ss:$9 sm:$0xff] %v2220_v31  ;;  %v1767_v41 = vmul.f32 %v4299_v0, %v4295_v10  ;;  %v3142_v4 = vpop.eup %3141  ;;  %v2235_v18 = vperm.slane %v1764_v19, 0  ;;  %v2236_v11 = vperm.slane %v1764_v19, 1  ;;  %v2237_v47 = vperm.slane %v1764_v19, 2 }
 0x170   : > { %2486 = vst [vmem:[#allocation1 + $0x2] ss:$9 sm:$0xff] %v2221_v54  ;;  %v4310_v33 = vadd.f32 1.0, %v3142_v4  ;;  %v2238_v61 = vperm.slane %v1764_v19, 3  ;;  %v2239_v45 = vperm.slane %v1764_v19, 4  ;;  %v2240_v17 = vperm.slane %v1764_v19, 5 }
 0x171   : > { %2487 = vst [vmem:[#allocation1 + $0x3] ss:$9 sm:$0xff] %v2222_v8  ;;  %v1768_v13 = vsub.f32 1.0, %v1767_v41  ;;  %vm1772_vm6 = vweird.f32 %v4299_v0  ;;  %v2241_v46 = vperm.slane %v1764_v19, 6  ;;  %v2242_v60 = vperm.slane %v1764_v19, 7 }
 0x172   : > { %2488 = vst [vmem:[#allocation1 + $0x4] ss:$9 sm:$0xff] %v2223_v22  ;;  %3143 = vrcp.f32 %v4310_v33  ;;  %vm1773_vm8 = vmor %vm1771_vm7, %vm1772_vm6  ;;  %v1778_v54 = vor.u32 1.1754944e-38, %v1777_v43  ;;  %v1792_v40 = vand.u32 2147483648, %v4310_v33  ;;  %vm1786_vm11 = vweird.f32 %v4310_v33 }
 0x173   : > { %2489 = vst [vmem:[#allocation1 + $0x5] ss:$9 sm:$0xff] %v2224_v36  ;;  %v1769_v44 = vmul.f32 %v4299_v0, %v1768_v13  ;;  %3145 = vpow2.f32 %v3054_v27  ;;  %v3055_v36 = vmul.f32 -1.442695, %v1539_v6  ;;  %v1488_v6 = vpop.xlane.xlu2 %1487 }
 0x174   : > { %2490 = vst [vmem:[#allocation1 + $0x6] ss:$9 sm:$0xff] %v2225_v14 }
 0x175   : > { %2491 = vst [vmem:[#allocation1 + $0x7] ss:$9 sm:$0xff] %v2226_v16  ;;  %v1770_v37 = vadd.f32 %v4299_v0, %v1769_v44  ;;  %v1541_v44 = vadd.f32 %v3982_v42, %v1486_v9 }
 0x177   : > { %v1774_v31 = vsel %vm1773_vm8, %v4299_v0, %v1770_v37  ;;  %v3057_v37 = vmul.f32 -1.442695, %v1541_v44 }
 0x178   : > { %v3144_v62 = vpop.eup %3143  ;;  %v1779_v8 = vsel %vm1776_vm9, %v1778_v54, %v1774_v31 }
 0x179   : > { %v3146_v38 = vpop.eup %3145  ;;  %v1782_v24 = vmul.f32 %v3144_v62, %v4310_v33  ;;  %v2243_v12 = vperm.slane %v1779_v8, 0  ;;  %v2244_v14 = vperm.slane %v1779_v8, 1  ;;  %v2245_v20 = vperm.slane %v1779_v8, 2 }
 0x17a   : > { %v4322_v22 = vadd.f32 1.0, %v3146_v38  ;;  %v2246_v1 = vperm.slane %v1779_v8, 3  ;;  %v2247_v5 = vperm.slane %v1779_v8, 4  ;;  %v2248_v25 = vperm.slane %v1779_v8, 5 }
 0x17b   : > { %v1783_v48 = vsub.f32 1.0, %v1782_v24  ;;  %v2249_v28 = vperm.slane %v1779_v8, 6  ;;  %vm1787_vm10 = vweird.f32 %v3144_v62  ;;  %v2250_v10 = vperm.slane %v1779_v8, 7 }
 0x17c   : > { %v2492_v57 = vld [vmem:[#allocation1] sm:$0xff]  ;;  %3147 = vrcp.f32 %v4322_v22  ;;  %vm1788_vm12 = vmor %vm1786_vm11, %vm1787_vm10  ;;  %vm1801_vm15 = vweird.f32 %v4322_v22 }
 0x17d   : > { %2493 = vst [vmem:[#allocation1] ss:$9 sm:$0xff] %v2227_v58  ;;  %2761 = vperm.xlu1 %3106, %v2492_v57   ;;  %v1784_v16 = vmul.f32 %v3144_v62, %v1783_v48  ;;  %3149 = vpow2.f32 %v3055_v36  ;;  %v1790_v58 = vand.u32 2147483647, %v4310_v33  ;;  %v1793_v57 = vor.u32 1.1754944e-38, %v1792_v40 }
 0x17e   : > { %2494 = vst [vmem:[#allocation1 + $0x1] ss:$9 sm:$0xff] %v2228_v59  ;;  %v1807_v33 = vand.u32 2147483648, %v4322_v22 }
 0x17f   : > { %2495 = vst [vmem:[#allocation1 + $0x2] ss:$9 sm:$0xff] %v2229_v35  ;;  %v1785_v21 = vadd.f32 %v3144_v62, %v1784_v16  ;;  %vm1791_vm13 = vcmp.eq.f32.partialorder %v1790_v58, 8.507059e+37 }
 0x180   : > { %2496 = vst [vmem:[#allocation1 + $0x3] ss:$9 sm:$0xff] %v2230_v51 }
 0x181   : > { %2497 = vst [vmem:[#allocation1 + $0x4] ss:$9 sm:$0xff] %v2231_v50  ;;  %v1789_v35 = vsel %vm1788_vm12, %v3144_v62, %v1785_v21 }
 0x182   : > { %2498 = vst [vmem:[#allocation1 + $0x5] ss:$9 sm:$0xff] %v2232_v53  ;;  %v3148_v29 = vpop.eup %3147  ;;  %v1794_v50 = vsel %vm1791_vm13, %v1793_v57, %v1789_v35  ;;  %v3056_v53 = vmul.f32 -1.442695, %v1540_v52  ;;  %v1490_v57 = vpop.xlane.xlu0 %1489 }
 0x183   : > { %2499 = vst [vmem:[#allocation1 + $0x6] ss:$9 sm:$0xff] %v2233_v49  ;;  %v3150_v7 = vpop.eup %3149  ;;  %v1797_v59 = vmul.f32 %v3148_v29, %v4322_v22  ;;  %v2251_v55 = vperm.slane %v1794_v50, 0  ;;  %v2252_v49 = vperm.slane %v1794_v50, 1  ;;  %v2253_v30 = vperm.slane %v1794_v50, 2 }
 0x184   : > { %2500 = vst [vmem:[#allocation1 + $0x7] ss:$9 sm:$0xff] %v2234_v34  ;;  %v4330_v51 = vadd.f32 1.0, %v3150_v7  ;;  %v2254_v23 = vperm.slane %v1794_v50, 3  ;;  %v2255_v41 = vperm.slane %v1794_v50, 4  ;;  %v2256_v15 = vperm.slane %v1794_v50, 5 }
 0x185   : > { %v1798_v0 = vsub.f32 1.0, %v1797_v59  ;;  %vm1802_vm14 = vweird.f32 %v3148_v29  ;;  %v2257_v19 = vperm.slane %v1794_v50, 6  ;;  %v2258_v27 = vperm.slane %v1794_v50, 7 }
 0x186   : > { %3151 = vrcp.f32 %v4330_v51  ;;  %vm1803_vm0 = vmor %vm1801_vm15, %vm1802_vm14  ;;  %vm1816_vm3 = vweird.f32 %v4330_v51 }
 0x187   : > { %v1799_v34 = vmul.f32 %v3148_v29, %v1798_v0  ;;  %3153 = vpow2.f32 %v3056_v53 }
 0x189   : > { %v1800_v39 = vadd.f32 %v3148_v29, %v1799_v34 }
 0x18b   : > { %v2501_v63 = vld [vmem:[#allocation1] sm:$0xff] }
 0x18c   : > { %2502 = vst [vmem:[#allocation1] ss:$9 sm:$0xff] %v2235_v18  ;;  %2764 = vperm.xlu2 %3104, %v2501_v63   ;;  %v4333_v4 = vpop.eup %3151  ;;  %v1805_v18 = vand.u32 2147483647, %v4322_v22  ;;  %v1808_v63 = vor.u32 1.1754944e-38, %v1807_v33  ;;  %v1822_v22 = vand.u32 2147483648, %v4330_v51 }
 0x18d   : > { %2503 = vst [vmem:[#allocation1 + $0x1] ss:$9 sm:$0xff] %v2236_v11  ;;  %v3154_v13 = vpop.eup %3153  ;;  %v1812_v11 = vmul.f32 %v4333_v4, %v4330_v51  ;;  %vm1817_vm2 = vweird.f32 %v4333_v4 }
 0x18e   : > { %2504 = vst [vmem:[#allocation1 + $0x2] ss:$9 sm:$0xff] %v2237_v47  ;;  %v1804_v47 = vsel %vm1803_vm0, %v3148_v29, %v1800_v39  ;;  %vm1806_vm1 = vcmp.eq.f32.partialorder %v1805_v18, 8.507059e+37  ;;  %vm1818_vm4 = vmor %vm1816_vm3, %vm1817_vm2  ;;  %v1823_v16 = vor.u32 1.1754944e-38, %v1822_v22 }
 0x18f   : > { %2505 = vst [vmem:[#allocation1 + $0x3] ss:$9 sm:$0xff] %v2238_v61  ;;  %v4341_v61 = vadd.f32 1.0, %v3154_v13 }
 0x190   : > { %2506 = vst [vmem:[#allocation1 + $0x4] ss:$9 sm:$0xff] %v2239_v45  ;;  %v1809_v45 = vsel %vm1806_vm1, %v1808_v63, %v1804_v47  ;;  %v1492_v63 = vpop.xlane.xlu1 %1491 }
 0x191   : > { %2507 = vst [vmem:[#allocation1 + $0x5] ss:$9 sm:$0xff] %v2240_v17  ;;  %v1813_v17 = vsub.f32 1.0, %v1812_v11  ;;  %3155 = vrcp.f32 %v4341_v61  ;;  %v2260_v62 = vperm.slane %v1809_v45, 1  ;;  %v2261_v32 = vperm.slane %v1809_v45, 2 }
 0x192   : > { %2508 = vst [vmem:[#allocation1 + $0x6] ss:$9 sm:$0xff] %v2241_v46  ;;  %v2259_v46 = vperm.slane %v1809_v45, 0  ;;  %3157 = vpow2.f32 %v3057_v37  ;;  %v2262_v3 = vperm.slane %v1809_v45, 3  ;;  %v2263_v38 = vperm.slane %v1809_v45, 4 }
 0x193   : > { %2509 = vst [vmem:[#allocation1 + $0x7] ss:$9 sm:$0xff] %v2242_v60  ;;  %v1814_v60 = vmul.f32 %v4333_v4, %v1813_v17  ;;  %v2264_v24 = vperm.slane %v1809_v45, 5  ;;  %v2265_v8 = vperm.slane %v1809_v45, 6  ;;  %v2266_v36 = vperm.slane %v1809_v45, 7 }
 0x194   : > { %vm1831_vm7 = vweird.f32 %v4341_v61  ;;  %v1835_v53 = vand.u32 2147483647, %v4341_v61 }
 0x195   : > { %v1815_v54 = vadd.f32 %v4333_v4, %v1814_v60 }
 0x196   : > { %vm1836_vm9 = vcmp.eq.f32.partialorder %v1835_v53, 8.507059e+37 }
 0x197   : > { %v4345_v31 = vpop.eup %3155 }
 0x198   : > { %v3158_v48 = vpop.eup %3157  ;;  %vm1832_vm6 = vweird.f32 %v4345_v31 }
 0x199   : > { %vm1833_vm8 = vmor %vm1831_vm7, %vm1832_vm6 }
 0x19a   : > { %v2510_v26 = vld [vmem:[#allocation1] sm:$0xff] }
 0x19b   : > { %2511 = vst [vmem:[#allocation1] ss:$9 sm:$0xff] %v2243_v12  ;;  %2767 = vperm.xlu2 %3104, %v2510_v26   ;;  %v1820_v12 = vand.u32 2147483647, %v4330_v51  ;;  %v1819_v26 = vsel %vm1818_vm4, %v4333_v4, %v1815_v54  ;;  %v1837_v51 = vand.u32 2147483648, %v4341_v61 }
 0x19c   : > { %2512 = vst [vmem:[#allocation1 + $0x1] ss:$9 sm:$0xff] %v2244_v14  ;;  %v1827_v14 = vmul.f32 %v4345_v31, %v4341_v61 }
 0x19d   : > { %2513 = vst [vmem:[#allocation1 + $0x2] ss:$9 sm:$0xff] %v2245_v20  ;;  %v1542_v20 = vadd.f32 %v3982_v42, %v1488_v6  ;;  %vm1821_vm5 = vcmp.eq.f32.partialorder %v1820_v12, 8.507059e+37 }
 0x19e   : > { %2514 = vst [vmem:[#allocation1 + $0x3] ss:$9 sm:$0xff] %v2246_v1  ;;  %v4356_v1 = vadd.f32 1.0, %v3158_v48 }
 0x19f   : > { %2515 = vst [vmem:[#allocation1 + $0x4] ss:$9 sm:$0xff] %v2247_v5  ;;  %v1828_v5 = vsub.f32 1.0, %v1827_v14 }
 0x1a0   : > { %2516 = vst [vmem:[#allocation1 + $0x5] ss:$9 sm:$0xff] %v2248_v25  ;;  %v1824_v25 = vsel %vm1821_vm5, %v1823_v16, %v1819_v26  ;;  %3159 = vrcp.f32 %v4356_v1  ;;  %v1852_v45 = vand.u32 2147483648, %v4356_v1  ;;  %vm1846_vm11 = vweird.f32 %v4356_v1  ;;  %v1494_v16 = vpop.xlane.xlu2 %1493 }
 0x1a1   : > { %2517 = vst [vmem:[#allocation1 + $0x6] ss:$9 sm:$0xff] %v2249_v28  ;;  %v3058_v28 = vmul.f32 -1.442695, %v1542_v20  ;;  %v2267_v29 = vperm.slane %v1824_v25, 0  ;;  %v2268_v2 = vperm.slane %v1824_v25, 1 }
 0x1a2   : > { %2518 = vst [vmem:[#allocation1 + $0x7] ss:$9 sm:$0xff] %v2250_v10  ;;  %v1829_v10 = vmul.f32 %v4345_v31, %v1828_v5  ;;  %v2269_v40 = vperm.slane %v1824_v25, 2  ;;  %v2270_v7 = vperm.slane %v1824_v25, 3  ;;  %v2271_v58 = vperm.slane %v1824_v25, 4 }
 0x1a3   : > { %3161 = vpow2.f32 %v3058_v28  ;;  %v2272_v35 = vperm.slane %v1824_v25, 5  ;;  %v2273_v50 = vperm.slane %v1824_v25, 6 }
 0x1a4   : > { %v1830_v52 = vadd.f32 %v4345_v31, %v1829_v10  ;;  %v1545_v10 = vadd.f32 %v3982_v42, %v1494_v16 }
 0x1a6   : > { %v4360_v59 = vpop.eup %3159  ;;  %v1834_v34 = vsel %vm1833_vm8, %v4345_v31, %v1830_v52  ;;  %v3061_v52 = vmul.f32 -1.442695, %v1545_v10 }
 0x1a7   : > { %vm1847_vm10 = vweird.f32 %v4360_v59 }
 0x1a8   : > { %vm1848_vm12 = vmor %vm1846_vm11, %vm1847_vm10 }
 0x1a9   : > { %v2519_v56 = vld [vmem:[#allocation1] sm:$0xff]  ;;  %v3162_v0 = vpop.eup %3161 }
 0x1aa   : > { %2520 = vst [vmem:[#allocation1] ss:$9 sm:$0xff] %v2251_v55  ;;  %2770 = vperm.xlu1 %3106, %v2519_v56   ;;  %v2274_v55 = vperm.slane %v1824_v25, 7  ;;  %v1543_v56 = vadd.f32 %v3982_v42, %v1490_v57 }
 0x1ab   : > { %2521 = vst [vmem:[#allocation1 + $0x1] ss:$9 sm:$0xff] %v2252_v49  ;;  %v1842_v49 = vmul.f32 %v4360_v59, %v4356_v1 }
 0x1ac   : > { %2522 = vst [vmem:[#allocation1 + $0x2] ss:$9 sm:$0xff] %v2253_v30  ;;  %v1838_v30 = vor.u32 1.1754944e-38, %v1837_v51 }
 0x1ad   : > { %2523 = vst [vmem:[#allocation1 + $0x3] ss:$9 sm:$0xff] %v2254_v23  ;;  %v4371_v23 = vadd.f32 1.0, %v3162_v0  ;;  %v1843_v4 = vsub.f32 1.0, %v1842_v49 }
 0x1ae   : > { %2524 = vst [vmem:[#allocation1 + $0x4] ss:$9 sm:$0xff] %v2255_v41  ;;  %v1839_v41 = vsel %vm1836_vm9, %v1838_v30, %v1834_v34  ;;  %v1496_v30 = vpop.xlane.xlu0 %1495 }
 0x1af   : > { %2525 = vst [vmem:[#allocation1 + $0x5] ss:$9 sm:$0xff] %v2256_v15  ;;  %v3059_v15 = vmul.f32 -1.442695, %v1543_v56  ;;  %3163 = vrcp.f32 %v4371_v23  ;;  %v2275_v39 = vperm.slane %v1839_v41, 0  ;;  %v2276_v9 = vperm.slane %v1839_v41, 1 }
 0x1b0   : > { %2526 = vst [vmem:[#allocation1 + $0x6] ss:$9 sm:$0xff] %v2257_v19  ;;  %v1844_v33 = vmul.f32 %v4360_v59, %v1843_v4  ;;  %v2277_v13 = vperm.slane %v1839_v41, 2  ;;  %v2279_v18 = vperm.slane %v1839_v41, 4  ;;  %v2280_v44 = vperm.slane %v1839_v41, 5 }
 0x1b1   : > { %2527 = vst [vmem:[#allocation1 + $0x7] ss:$9 sm:$0xff] %v2258_v27  ;;  %3165 = vpow2.f32 %v3059_v15  ;;  %v2278_v27 = vperm.slane %v1839_v41, 3  ;;  %v2281_v61 = vperm.slane %v1839_v41, 6  ;;  %v2282_v37 = vperm.slane %v1839_v41, 7 }
 0x1b2   : > { %v1845_v47 = vadd.f32 %v4360_v59, %v1844_v33  ;;  %v1867_v5 = vand.u32 2147483648, %v4371_v23  ;;  %vm1861_vm15 = vweird.f32 %v4371_v23 }
 0x1b4   : > { %v1849_v60 = vsel %vm1848_vm12, %v4360_v59, %v1845_v47 }
 0x1b5   : > { %v4375_v11 = vpop.eup %3163 }
 0x1b6   : > { %vm1862_vm14 = vweird.f32 %v4375_v11 }
 0x1b7   : > { %v3166_v17 = vpop.eup %3165  ;;  %vm1863_vm0 = vmor %vm1861_vm15, %vm1862_vm14 }
 0x1b8   : > { %v2528_v43 = vld [vmem:[#allocation1] sm:$0xff] }
 0x1b9   : > { %2529 = vst [vmem:[#allocation1] ss:$9 sm:$0xff] %v2259_v46  ;;  %2773 = vperm.xlu2 %3104, %v2528_v43   ;;  %v1850_v46 = vand.u32 2147483647, %v4356_v1  ;;  %v1857_v43 = vmul.f32 %v4375_v11, %v4371_v23 }
 0x1ba   : > { %2530 = vst [vmem:[#allocation1 + $0x1] ss:$9 sm:$0xff] %v2260_v62  ;;  %v1544_v62 = vadd.f32 %v3982_v42, %v1492_v63 }
 0x1bb   : > { %2531 = vst [vmem:[#allocation1 + $0x2] ss:$9 sm:$0xff] %v2261_v32  ;;  %v1853_v32 = vor.u32 1.1754944e-38, %v1852_v45  ;;  %vm1851_vm13 = vcmp.eq.f32.partialorder %v1850_v46, 8.507059e+37  ;;  %v1858_v31 = vsub.f32 1.0, %v1857_v43 }
 0x1bc   : > { %2532 = vst [vmem:[#allocation1 + $0x3] ss:$9 sm:$0xff] %v2262_v3  ;;  %v4386_v3 = vadd.f32 1.0, %v3166_v17 }
 0x1bd   : > { %2533 = vst [vmem:[#allocation1 + $0x4] ss:$9 sm:$0xff] %v2263_v38  ;;  %v1854_v38 = vsel %vm1851_vm13, %v1853_v32, %v1849_v60  ;;  %v1859_v22 = vmul.f32 %v4375_v11, %v1858_v31 }
 0x1be   : > { %2534 = vst [vmem:[#allocation1 + $0x5] ss:$9 sm:$0xff] %v2264_v24  ;;  %v3060_v24 = vmul.f32 -1.442695, %v1544_v62  ;;  %3167 = vrcp.f32 %v4386_v3  ;;  %v2283_v54 = vperm.slane %v1854_v38, 0  ;;  %v2285_v48 = vperm.slane %v1854_v38, 2 }
 0x1bf   : > { %2535 = vst [vmem:[#allocation1 + $0x6] ss:$9 sm:$0xff] %v2265_v8  ;;  %v2284_v8 = vperm.slane %v1854_v38, 1  ;;  %v2287_v12 = vperm.slane %v1854_v38, 4  ;;  %v2288_v20 = vperm.slane %v1854_v38, 5  ;;  %v1860_v26 = vadd.f32 %v4375_v11, %v1859_v22 }
 0x1c0   : > { %2536 = vst [vmem:[#allocation1 + $0x7] ss:$9 sm:$0xff] %v2266_v36  ;;  %3169 = vpow2.f32 %v3060_v24  ;;  %v2286_v36 = vperm.slane %v1854_v38, 3  ;;  %v2289_v1 = vperm.slane %v1854_v38, 6  ;;  %v2290_v28 = vperm.slane %v1854_v38, 7  ;;  %v1498_v38 = vpop.xlane.xlu1 %1497 }
 0x1c1   : > { %vm1876_vm2 = vweird.f32 %v4386_v3  ;;  %v1880_v15 = vand.u32 2147483647, %v4386_v3  ;;  %v1547_v22 = vadd.f32 %v3982_v42, %v1498_v38 }
 0x1c3   : > { %vm1881_vm5 = vcmp.eq.f32.partialorder %v1880_v15, 8.507059e+37 }
 0x1c4   : > { %v4390_v14 = vpop.eup %3167 }
 0x1c5   : > { %vm1877_vm3 = vweird.f32 %v4390_v14 }
 0x1c6   : > { %v3170_v25 = vpop.eup %3169  ;;  %vm1878_vm4 = vmor %vm1876_vm2, %vm1877_vm3 }
 0x1c7   : > { %v2537_v21 = vld [vmem:[#allocation1] sm:$0xff] }
 0x1c8   : > { %2538 = vst [vmem:[#allocation1] ss:$9 sm:$0xff] %v2267_v29  ;;  %2776 = vperm.xlu1 %3106, %v2537_v21   ;;  %v1865_v29 = vand.u32 2147483647, %v4371_v23  ;;  %v1872_v21 = vmul.f32 %v4390_v14, %v4386_v3  ;;  %v1882_v23 = vand.u32 2147483648, %v4386_v3 }
 0x1c9   : > { %2539 = vst [vmem:[#allocation1 + $0x1] ss:$9 sm:$0xff] %v2268_v2  ;;  %v1864_v2 = vsel %vm1863_vm0, %v4375_v11, %v1860_v26 }
 0x1ca   : > { %2540 = vst [vmem:[#allocation1 + $0x2] ss:$9 sm:$0xff] %v2269_v40  ;;  %v1868_v40 = vor.u32 1.1754944e-38, %v1867_v5  ;;  %vm1866_vm1 = vcmp.eq.f32.partialorder %v1865_v29, 8.507059e+37 }
 0x1cb   : > { %2541 = vst [vmem:[#allocation1 + $0x3] ss:$9 sm:$0xff] %v2270_v7  ;;  %v4401_v7 = vadd.f32 1.0, %v3170_v25 }
 0x1cc   : > { %2542 = vst [vmem:[#allocation1 + $0x4] ss:$9 sm:$0xff] %v2271_v58  ;;  %v1873_v58 = vsub.f32 1.0, %v1872_v21  ;;  %v1869_v59 = vsel %vm1866_vm1, %v1868_v40, %v1864_v2 }
 0x1cd   : > { %2543 = vst [vmem:[#allocation1 + $0x5] ss:$9 sm:$0xff] %v2272_v35  ;;  %3171 = vrcp.f32 %v4401_v7  ;;  %v2291_v35 = vperm.slane %v1869_v59, 0  ;;  %v2293_v0 = vperm.slane %v1869_v59, 2  ;;  %v2294_v53 = vperm.slane %v1869_v59, 3 }
 0x1ce   : > { %2544 = vst [vmem:[#allocation1 + $0x6] ss:$9 sm:$0xff] %v2273_v50  ;;  %v1874_v51 = vmul.f32 %v4390_v14, %v1873_v58  ;;  %v2292_v50 = vperm.slane %v1869_v59, 1  ;;  %3173 = vpow2.f32 %v3061_v52  ;;  %v2296_v34 = vperm.slane %v1869_v59, 5  ;;  %v1500_v58 = vpop.xlane.xlu2 %1499 }
 0x1cf   : > { %2545 = vst [vmem:[#allocation1 + $0x7] ss:$9 sm:$0xff] %v2274_v55  ;;  %v2295_v55 = vperm.slane %v1869_v59, 4  ;;  %v2297_v41 = vperm.slane %v1869_v59, 6  ;;  %vm1891_vm6 = vweird.f32 %v4401_v7  ;;  %v1897_v43 = vand.u32 2147483648, %v4401_v7 }
 0x1d0   : > { %v1875_v56 = vadd.f32 %v4390_v14, %v1874_v51  ;;  %v1895_v3 = vand.u32 2147483647, %v4401_v7 }
 0x1d2   : > { %v1879_v33 = vsel %vm1878_vm4, %v4390_v14, %v1875_v56  ;;  %vm1896_vm9 = vcmp.eq.f32.partialorder %v1895_v3, 8.507059e+37 }
 0x1d3   : > { %v4405_v49 = vpop.eup %3171 }
 0x1d4   : > { %v3174_v4 = vpop.eup %3173  ;;  %vm1892_vm7 = vweird.f32 %v4405_v49 }
 0x1d5   : > { %vm1893_vm8 = vmor %vm1891_vm6, %vm1892_vm7 }
 0x1d6   : > { %v2546_v19 = vld [vmem:[#allocation1] sm:$0xff] }
 0x1d7   : > { %2547 = vst [vmem:[#allocation1] ss:$9 sm:$0xff] %v2275_v39  ;;  %2779 = vperm.xlu0 %3105, %v2546_v19   ;;  %v2298_v39 = vperm.slane %v1869_v59, 7  ;;  %v1546_v19 = vadd.f32 %v3982_v42, %v1496_v30 }
 0x1d8   : > { %2548 = vst [vmem:[#allocation1 + $0x1] ss:$9 sm:$0xff] %v2276_v9  ;;  %v1887_v9 = vmul.f32 %v4405_v49, %v4401_v7 }
 0x1d9   : > { %2549 = vst [vmem:[#allocation1 + $0x2] ss:$9 sm:$0xff] %v2277_v13  ;;  %v1883_v13 = vor.u32 1.1754944e-38, %v1882_v23 }
 0x1da   : > { %2550 = vst [vmem:[#allocation1 + $0x3] ss:$9 sm:$0xff] %v2278_v27  ;;  %v4416_v27 = vadd.f32 1.0, %v3174_v4  ;;  %v1888_v11 = vsub.f32 1.0, %v1887_v9 }
 0x1db   : > { %2551 = vst [vmem:[#allocation1 + $0x4] ss:$9 sm:$0xff] %v2279_v18  ;;  %v1884_v18 = vsel %vm1881_vm5, %v1883_v13, %v1879_v33 }
 0x1dc   : > { %2552 = vst [vmem:[#allocation1 + $0x5] ss:$9 sm:$0xff] %v2280_v44  ;;  %v3062_v44 = vmul.f32 -1.442695, %v1546_v19  ;;  %3175 = vrcp.f32 %v4416_v27  ;;  %v2299_v47 = vperm.slane %v1884_v18, 0  ;;  %v2300_v63 = vperm.slane %v1884_v18, 1 }
 0x1dd   : > { %2553 = vst [vmem:[#allocation1 + $0x6] ss:$9 sm:$0xff] %v2281_v61  ;;  %v1889_v45 = vmul.f32 %v4405_v49, %v1888_v11  ;;  %v2301_v17 = vperm.slane %v1884_v18, 2  ;;  %v2303_v46 = vperm.slane %v1884_v18, 4  ;;  %v2304_v60 = vperm.slane %v1884_v18, 5 }
 0x1de   : > { %2554 = vst [vmem:[#allocation1 + $0x7] ss:$9 sm:$0xff] %v2282_v37  ;;  %3177 = vpow2.f32 %v3062_v44  ;;  %v2302_v37 = vperm.slane %v1884_v18, 3  ;;  %v2305_v31 = vperm.slane %v1884_v18, 6  ;;  %vm1906_vm10 = vweird.f32 %v4416_v27 }
 0x1df   : > { %v1890_v32 = vadd.f32 %v4405_v49, %v1889_v45  ;;  %v1912_v21 = vand.u32 2147483648, %v4416_v27  ;;  %v1910_v7 = vand.u32 2147483647, %v4416_v27 }
 0x1e1   : > { %vm1911_vm13 = vcmp.eq.f32.partialorder %v1910_v7, 8.507059e+37 }
 0x1e2   : > { %v3176_v62 = vpop.eup %3175 }
 0x1e3   : > { %vm1907_vm11 = vweird.f32 %v3176_v62 }
 0x1e4   : > { %v3178_v24 = vpop.eup %3177  ;;  %vm1908_vm12 = vmor %vm1906_vm10, %vm1907_vm11 }
 0x1e5   : > { %v2555_v6 = vld [vmem:[#allocation1] sm:$0xff] }
 0x1e6   : > { %2556 = vst [vmem:[#allocation1] ss:$9 sm:$0xff] %v2283_v54  ;;  %2782 = vperm.xlu2 %3104, %v2555_v6   ;;  %v2306_v54 = vperm.slane %v1884_v18, 7  ;;  %v1898_v6 = vor.u32 1.1754944e-38, %v1897_v43  ;;  %v1502_v18 = vpop.xlane.xlu0 %1501 }
 0x1e7   : > { %2557 = vst [vmem:[#allocation1 + $0x1] ss:$9 sm:$0xff] %v2284_v8  ;;  %v1902_v8 = vmul.f32 %v3176_v62, %v4416_v27  ;;  %v1549_v45 = vadd.f32 %v3982_v42, %v1502_v18 }
 0x1e8   : > { %2558 = vst [vmem:[#allocation1 + $0x2] ss:$9 sm:$0xff] %v2285_v48  ;;  %v1894_v48 = vsel %vm1893_vm8, %v4405_v49, %v1890_v32 }
 0x1e9   : > { %2559 = vst [vmem:[#allocation1 + $0x3] ss:$9 sm:$0xff] %v2286_v36  ;;  %v4428_v36 = vadd.f32 1.0, %v3178_v24  ;;  %v1903_v14 = vsub.f32 1.0, %v1902_v8 }
 0x1ea   : > { %2560 = vst [vmem:[#allocation1 + $0x4] ss:$9 sm:$0xff] %v2287_v12  ;;  %v1899_v12 = vsel %vm1896_vm9, %v1898_v6, %v1894_v48 }
 0x1eb   : > { %2561 = vst [vmem:[#allocation1 + $0x5] ss:$9 sm:$0xff] %v2288_v20  ;;  %v3063_v20 = vmul.f32 -1.442695, %v1547_v22  ;;  %3179 = vrcp.f32 %v4428_v36  ;;  %v2307_v26 = vperm.slane %v1899_v12, 0  ;;  %v1904_v5 = vmul.f32 %v3176_v62, %v1903_v14 }
 0x1ec   : > { %2562 = vst [vmem:[#allocation1 + $0x6] ss:$9 sm:$0xff] %v2289_v1  ;;  %v2308_v1 = vperm.slane %v1899_v12, 1  ;;  %v2309_v25 = vperm.slane %v1899_v12, 2  ;;  %v2311_v29 = vperm.slane %v1899_v12, 4  ;;  %v2312_v2 = vperm.slane %v1899_v12, 5 }
 0x1ed   : > { %2563 = vst [vmem:[#allocation1 + $0x7] ss:$9 sm:$0xff] %v2290_v28  ;;  %3181 = vpow2.f32 %v3063_v20  ;;  %v2310_v28 = vperm.slane %v1899_v12, 3  ;;  %v1905_v40 = vadd.f32 %v3176_v62, %v1904_v5  ;;  %v2313_v59 = vperm.slane %v1899_v12, 6 }
 0x1ee   : > { %vm1921_vm14 = vweird.f32 %v4428_v36  ;;  %v1927_v9 = vand.u32 2147483648, %v4428_v36  ;;  %v1925_v27 = vand.u32 2147483647, %v4428_v36 }
 0x1f0   : > { %vm1926_vm1 = vcmp.eq.f32.partialorder %v1925_v27, 8.507059e+37 }
 0x1f1   : > { %v3180_v10 = vpop.eup %3179 }
 0x1f2   : > { %v1917_v51 = vmul.f32 %v3180_v10, %v4428_v36  ;;  %vm1922_vm15 = vweird.f32 %v3180_v10 }
 0x1f3   : > { %v3182_v52 = vpop.eup %3181  ;;  %vm1923_vm0 = vmor %vm1921_vm14, %vm1922_vm15 }
 0x1f4   : > { %v2564_v57 = vld [vmem:[#allocation1] sm:$0xff]  ;;  %v1918_v49 = vsub.f32 1.0, %v1917_v51 }
 0x1f5   : > { %2565 = vst [vmem:[#allocation1] ss:$9 sm:$0xff] %v2291_v35  ;;  %2785 = vperm.xlu1 %3106, %v2564_v57   ;;  %v2314_v35 = vperm.slane %v1899_v12, 7  ;;  %v1913_v57 = vor.u32 1.1754944e-38, %v1912_v21  ;;  %v1504_v12 = vpop.xlane.xlu1 %1503 }
 0x1f6   : > { %2566 = vst [vmem:[#allocation1 + $0x1] ss:$9 sm:$0xff] %v2292_v50  ;;  %v1548_v50 = vadd.f32 %v3982_v42, %v1500_v58  ;;  %v1550_v5 = vadd.f32 %v3982_v42, %v1504_v12 }
 0x1f7   : > { %2567 = vst [vmem:[#allocation1 + $0x2] ss:$9 sm:$0xff] %v2293_v0  ;;  %v1909_v0 = vsel %vm1908_vm12, %v3176_v62, %v1905_v40  ;;  %v3065_v62 = vmul.f32 -1.442695, %v1549_v45 }
 0x1f8   : > { %2568 = vst [vmem:[#allocation1 + $0x3] ss:$9 sm:$0xff] %v2294_v53  ;;  %v4436_v53 = vadd.f32 1.0, %v3182_v52  ;;  %v3064_v56 = vmul.f32 -1.442695, %v1548_v50  ;;  %v1506_v52 = vpop.xlane.xlu2 %1505 }
 0x1f9   : > { %2569 = vst [vmem:[#allocation1 + $0x4] ss:$9 sm:$0xff] %v2295_v55  ;;  %v1914_v55 = vsel %vm1911_vm13, %v1913_v57, %v1909_v0 }
 0x1fa   : > { %2570 = vst [vmem:[#allocation1 + $0x5] ss:$9 sm:$0xff] %v2296_v34  ;;  %3183 = vrcp.f32 %v4436_v53  ;;  %v2315_v34 = vperm.slane %v1914_v55, 0  ;;  %v2316_v23 = vperm.slane %v1914_v55, 1  ;;  %v2317_v4 = vperm.slane %v1914_v55, 2 }
 0x1fb   : > { %2571 = vst [vmem:[#allocation1 + $0x6] ss:$9 sm:$0xff] %v2297_v41  ;;  %v1919_v41 = vmul.f32 %v3180_v10, %v1918_v49  ;;  %3185 = vpow2.f32 %v3064_v56  ;;  %v2318_v15 = vperm.slane %v1914_v55, 3  ;;  %v2320_v33 = vperm.slane %v1914_v55, 5 }
 0x1fc   : > { %2572 = vst [vmem:[#allocation1 + $0x7] ss:$9 sm:$0xff] %v2298_v39  ;;  %v2319_v39 = vperm.slane %v1914_v55, 4  ;;  %v2321_v11 = vperm.slane %v1914_v55, 6  ;;  %vm1936_vm2 = vweird.f32 %v4436_v53  ;;  %v1942_v6 = vand.u32 2147483648, %v4436_v53 }
 0x1fd   : > { %v1920_v13 = vadd.f32 %v3180_v10, %v1919_v41  ;;  %v1940_v36 = vand.u32 2147483647, %v4436_v53 }
 0x1ff   : > { %vm1941_vm5 = vcmp.eq.f32.partialorder %v1940_v36, 8.507059e+37 }
 0x200   : > { %v3184_v19 = vpop.eup %3183 }
 0x201   : > { %v3186_v44 = vpop.eup %3185  ;;  %vm1937_vm3 = vweird.f32 %v3184_v19 }
 0x202   : > { %vm1938_vm4 = vmor %vm1936_vm2, %vm1937_vm3 }
 0x203   : > { %v2573_v61 = vld [vmem:[#allocation1] sm:$0xff] }
 0x204   : > { %2574 = vst [vmem:[#allocation1] ss:$9 sm:$0xff] %v2299_v47  ;;  %2788 = vperm.xlu0 %3105, %v2573_v61   ;;  %v2322_v47 = vperm.slane %v1914_v55, 7  ;;  %v1932_v61 = vmul.f32 %v3184_v19, %v4436_v53 }
 0x205   : > { %2575 = vst [vmem:[#allocation1 + $0x1] ss:$9 sm:$0xff] %v2300_v63  ;;  %v1928_v63 = vor.u32 1.1754944e-38, %v1927_v9 }
 0x206   : > { %2576 = vst [vmem:[#allocation1 + $0x2] ss:$9 sm:$0xff] %v2301_v17  ;;  %v1924_v17 = vsel %vm1923_vm0, %v3180_v10, %v1920_v13  ;;  %v1933_v43 = vsub.f32 1.0, %v1932_v61  ;;  %v3066_v10 = vmul.f32 -1.442695, %v1550_v5 }
 0x207   : > { %2577 = vst [vmem:[#allocation1 + $0x3] ss:$9 sm:$0xff] %v2302_v37  ;;  %v4444_v37 = vadd.f32 1.0, %v3186_v44 }
 0x208   : > { %2578 = vst [vmem:[#allocation1 + $0x4] ss:$9 sm:$0xff] %v2303_v46  ;;  %v1929_v46 = vsel %vm1926_vm1, %v1928_v63, %v1924_v17  ;;  %v1934_v38 = vmul.f32 %v3184_v19, %v1933_v43 }
 0x209   : > { %2579 = vst [vmem:[#allocation1 + $0x5] ss:$9 sm:$0xff] %v2304_v60  ;;  %3187 = vrcp.f32 %v4444_v37  ;;  %v2323_v60 = vperm.slane %v1929_v46, 0  ;;  %v2324_v3 = vperm.slane %v1929_v46, 1  ;;  %v2326_v24 = vperm.slane %v1929_v46, 3 }
 0x20a   : > { %2580 = vst [vmem:[#allocation1 + $0x6] ss:$9 sm:$0xff] %v2305_v31  ;;  %3189 = vpow2.f32 %v3065_v62  ;;  %v2325_v31 = vperm.slane %v1929_v46, 2  ;;  %v2328_v22 = vperm.slane %v1929_v46, 5  ;;  %v1935_v48 = vadd.f32 %v3184_v19, %v1934_v38  ;;  %v1510_v38 = vpop.xlane.xlu1 %1509 }
 0x20b   : > { %2581 = vst [vmem:[#allocation1 + $0x7] ss:$9 sm:$0xff] %v2306_v54  ;;  %v2327_v54 = vperm.slane %v1929_v46, 4  ;;  %v2329_v14 = vperm.slane %v1929_v46, 6  ;;  %vm1951_vm6 = vweird.f32 %v4444_v37  ;;  %v1957_v51 = vand.u32 2147483648, %v4444_v37 }
 0x20c   : > { %v1955_v55 = vand.u32 2147483647, %v4444_v37 }
 0x20e   : > { %vm1956_vm9 = vcmp.eq.f32.partialorder %v1955_v55, 8.507059e+37 }
 0x20f   : > { %v3188_v8 = vpop.eup %3187 }
 0x210   : > { %v3190_v20 = vpop.eup %3189  ;;  %vm1952_vm7 = vweird.f32 %v3188_v8 }
 0x211   : > { %vm1953_vm8 = vmor %vm1951_vm6, %vm1952_vm7  ;;  %vm2855_vm6 = vcmask 130112   ;;  %vm2859_vm7 = vcmask 195712  }
 0x212   : > { %v2582_v16 = vld [vmem:[#allocation1] sm:$0xff] }
 0x213   : > { %2583 = vst [vmem:[#allocation1] ss:$9 sm:$0xff] %v2307_v26  ;;  %2791 = vperm.xlu2 %3104, %v2582_v16   ;;  %v2330_v26 = vperm.slane %v1929_v46, 7  ;;  %v1943_v16 = vor.u32 1.1754944e-38, %v1942_v6 }
 0x214   : > { %2584 = vst [vmem:[#allocation1 + $0x1] ss:$9 sm:$0xff] %v2308_v1  ;;  %v1947_v1 = vmul.f32 %v3188_v8, %v4444_v37 }
 0x215   : > { %2585 = vst [vmem:[#allocation1 + $0x2] ss:$9 sm:$0xff] %v2309_v25  ;;  %v1939_v25 = vsel %vm1938_vm4, %v3184_v19, %v1935_v48 }
 0x216   : > { %2586 = vst [vmem:[#allocation1 + $0x3] ss:$9 sm:$0xff] %v2310_v28  ;;  %v4452_v28 = vadd.f32 1.0, %v3190_v20  ;;  %v1948_v21 = vsub.f32 1.0, %v1947_v1 }
 0x217   : > { %2587 = vst [vmem:[#allocation1 + $0x4] ss:$9 sm:$0xff] %v2311_v29  ;;  %v1944_v29 = vsel %vm1941_vm5, %v1943_v16, %v1939_v25  ;;  %v4490_v25 = vpop.xlane.xlu1 %1521 }
 0x218   : > { %2588 = vst [vmem:[#allocation1 + $0x5] ss:$9 sm:$0xff] %v2312_v2  ;;  %3191 = vrcp.f32 %v4452_v28  ;;  %v2331_v2 = vperm.slane %v1944_v29, 0  ;;  %v2332_v7 = vperm.slane %v1944_v29, 1  ;;  %v1949_v58 = vmul.f32 %v3188_v8, %v1948_v21 }
 0x219   : > { %2589 = vst [vmem:[#allocation1 + $0x6] ss:$9 sm:$0xff] %v2313_v59  ;;  %3193 = vpow2.f32 %v3066_v10  ;;  %v2333_v59 = vperm.slane %v1944_v29, 2  ;;  %v2335_v57 = vperm.slane %v1944_v29, 4  ;;  %v2336_v0 = vperm.slane %v1944_v29, 5 }
 0x21a   : > { %2590 = vst [vmem:[#allocation1 + $0x7] ss:$9 sm:$0xff] %v2314_v35  ;;  %v2334_v35 = vperm.slane %v1944_v29, 3  ;;  %v1950_v53 = vadd.f32 %v3188_v8, %v1949_v58  ;;  %v2337_v49 = vperm.slane %v1944_v29, 6  ;;  %vm1966_vm10 = vweird.f32 %v4452_v28 }
 0x21b   : > { %v1972_v45 = vand.u32 2147483648, %v4452_v28  ;;  %v1970_v43 = vand.u32 2147483647, %v4452_v28 }
 0x21d   : > { %vm1971_vm13 = vcmp.eq.f32.partialorder %v1970_v43, 8.507059e+37 }
 0x21e   : > { %v4457_v50 = vpop.eup %3191 }
 0x21f   : > { %v3194_v56 = vpop.eup %3193  ;;  %v1962_v41 = vmul.f32 %v4457_v50, %v4452_v28  ;;  %vm1967_vm11 = vweird.f32 %v4457_v50 }
 0x220   : > { %vm1968_vm12 = vmor %vm1966_vm10, %vm1967_vm11 }
 0x221   : > { %v2591_v30 = vld [vmem:[#allocation1] sm:$0xff]  ;;  %v1963_v19 = vsub.f32 1.0, %v1962_v41 }
 0x222   : > { %2592 = vst [vmem:[#allocation1] ss:$9 sm:$0xff] %v2315_v34  ;;  %2794 = vperm.xlu1 %3106, %v2591_v30   ;;  %v2338_v34 = vperm.slane %v1944_v29, 7  ;;  %v1551_v30 = vadd.f32 %v3982_v42, %v1506_v52 }
 0x223   : > { %2593 = vst [vmem:[#allocation1 + $0x1] ss:$9 sm:$0xff] %v2316_v23  ;;  %v1958_v23 = vor.u32 1.1754944e-38, %v1957_v51 }
 0x224   : > { %2594 = vst [vmem:[#allocation1 + $0x2] ss:$9 sm:$0xff] %v2317_v4  ;;  %v1954_v4 = vsel %vm1953_vm8, %v3188_v8, %v1950_v53  ;;  %vm2863_vm8 = vcmask 261312  }
 0x225   : > { %2595 = vst [vmem:[#allocation1 + $0x3] ss:$9 sm:$0xff] %v2318_v15  ;;  %v4463_v15 = vadd.f32 1.0, %v3194_v56  ;;  %v1959_v9 = vsel %vm1956_vm9, %v1958_v23, %v1954_v4  ;;  %vm2867_vm9 = vcmask 326912  }
 0x226   : > { %2596 = vst [vmem:[#allocation1 + $0x4] ss:$9 sm:$0xff] %v2319_v39  ;;  %v3067_v39 = vmul.f32 -1.442695, %v1551_v30  ;;  %v2339_v13 = vperm.slane %v1959_v9, 0  ;;  %v2340_v18 = vperm.slane %v1959_v9, 1  ;;  %v4509_v30 = vpop.xlane.xlu1 %1515 }
 0x227   : > { %2597 = vst [vmem:[#allocation1 + $0x5] ss:$9 sm:$0xff] %v2320_v33  ;;  %v4465_v33 = vpop.xlane.xlu2 %1511  ;;  %3195 = vrcp.f32 %v4463_v15  ;;  %v2341_v44 = vperm.slane %v1959_v9, 2  ;;  %v2342_v63 = vperm.slane %v1959_v9, 3  ;;  %v2343_v61 = vperm.slane %v1959_v9, 4 }
 0x228   : > { %2598 = vst [vmem:[#allocation1 + $0x6] ss:$9 sm:$0xff] %v2321_v11  ;;  %3197 = vpow2.f32 %v3067_v39  ;;  %v1964_v11 = vmul.f32 %v4457_v50, %v1963_v19  ;;  %v2344_v37 = vperm.slane %v1959_v9, 5  ;;  %vm1981_vm14 = vweird.f32 %v4463_v15 }
 0x229   : > { %2599 = vst [vmem:[#allocation1 + $0x7] ss:$9 sm:$0xff] %v2322_v47  ;;  %v1508_v47 = vpop.xlane.xlu0 %1507  ;;  %v1987_v10 = vand.u32 2147483648, %v4463_v15 }
 0x22a   : > { %v1965_v46 = vadd.f32 %v4457_v50, %v1964_v11 }
 0x22b   : > { %v1988_v51 = vor.u32 1.1754944e-38, %v1987_v10 }
 0x22c   : > { %v1969_v8 = vsel %vm1968_vm12, %v4457_v50, %v1965_v46  ;;  %v1553_v50 = vadd.f32 %v3982_v42, %v1510_v38 }
 0x22d   : > { %v4472_v17 = vpop.eup %3195 }
 0x22e   : > { %v3198_v62 = vpop.eup %3197  ;;  %vm1982_vm15 = vweird.f32 %v4472_v17  ;;  %v3069_v56 = vmul.f32 -1.442695, %v1553_v50 }
 0x22f   : > { %v4481_v6 = vadd.f32 1.0, %v3198_v62  ;;  %vm1983_vm0 = vmor %vm1981_vm14, %vm1982_vm15 }
 0x230   : > { %v2600_v32 = vld [vmem:[#allocation1] sm:$0xff] }
 0x231   : > { %2601 = vst [vmem:[#allocation1] ss:$9 sm:$0xff] %v2323_v60  ;;  %2797 = vperm.xlu0 %3105, %v2600_v32   ;;  %v2345_v60 = vperm.slane %v1959_v9, 6  ;;  %v2346_v32 = vperm.slane %v1959_v9, 7  ;;  %v4484_v12 = vpop.xlane.xlu0 %1513  ;;  %3199 = vrcp.f32 %v4481_v6  ;;  %vm1996_vm2 = vweird.f32 %v4481_v6 }
 0x232   : > { %2602 = vst [vmem:[#allocation1 + $0x1] ss:$9 sm:$0xff] %v2324_v3  ;;  %v4476_v3 = vpop.xlane.xlu2 %1517  ;;  %v2002_v19 = vand.u32 2147483648, %v4481_v6  ;;  %v2000_v11 = vand.u32 2147483647, %v4481_v6 }
 0x233   : > { %2603 = vst [vmem:[#allocation1 + $0x2] ss:$9 sm:$0xff] %v2325_v31  ;;  %v1973_v31 = vor.u32 1.1754944e-38, %v1972_v45 }
 0x234   : > { %2604 = vst [vmem:[#allocation1 + $0x3] ss:$9 sm:$0xff] %v2326_v24  ;;  %v1977_v24 = vmul.f32 %v4472_v17, %v4463_v15  ;;  %v2003_v43 = vor.u32 1.1754944e-38, %v2002_v19  ;;  %vm2001_vm5 = vcmp.eq.f32.partialorder %v2000_v11, 8.507059e+37 }
 0x235   : > { %2605 = vst [vmem:[#allocation1 + $0x4] ss:$9 sm:$0xff] %v2327_v54  ;;  %v1552_v54 = vadd.f32 %v3982_v42, %v1508_v47 }
 0x236   : > { %2606 = vst [vmem:[#allocation1 + $0x5] ss:$9 sm:$0xff] %v2328_v22  ;;  %v1974_v22 = vsel %vm1971_vm13, %v1973_v31, %v1969_v8  ;;  %v1978_v48 = vsub.f32 1.0, %v1977_v24 }
 0x237   : > { %2607 = vst [vmem:[#allocation1 + $0x6] ss:$9 sm:$0xff] %v2329_v14  ;;  %v3068_v36 = vmul.f32 -1.442695, %v1552_v54  ;;  %v2347_v14 = vperm.slane %v1974_v22, 0  ;;  %v2349_v1 = vperm.slane %v1974_v22, 2  ;;  %v4494_v29 = vpop.eup %3199 }
 0x238   : > { %2608 = vst [vmem:[#allocation1 + $0x7] ss:$9 sm:$0xff] %v2330_v26  ;;  %v2348_v26 = vperm.slane %v1974_v22, 1  ;;  %v1979_v16 = vmul.f32 %v4472_v17, %v1978_v48  ;;  %v2350_v28 = vperm.slane %v1974_v22, 3  ;;  %v2351_v21 = vperm.slane %v1974_v22, 4 }
 0x239   : > { %3201 = vpow2.f32 %v3068_v36  ;;  %v2353_v58 = vperm.slane %v1974_v22, 6  ;;  %v1992_v52 = vmul.f32 %v4494_v29, %v4481_v6  ;;  %vm1997_vm3 = vweird.f32 %v4494_v29 }
 0x23a   : > { %v4488_v5 = vpop.xlane.xlu2 %1523  ;;  %vm4522_vm4 = vmor %vm1996_vm2, %vm1997_vm3  ;;  %vm2871_vm2 = vcmask 392512  }
 0x23b   : > { %v1993_v55 = vsub.f32 1.0, %v1992_v52 }
 0x23d   : > { %v1994_v23 = vmul.f32 %v4494_v29, %v1993_v55 }
 0x23f   : > { %v2609_v40 = vld [vmem:[#allocation1] sm:$0xff] }
 0x240   : > { %2610 = vst [vmem:[#allocation1] ss:$9 sm:$0xff] %v2331_v2  ;;  %2800 = vperm.xlu2 %3104, %v2609_v40   ;;  %v2352_v2 = vperm.slane %v1974_v22, 5  ;;  %v1980_v40 = vadd.f32 %v4472_v17, %v1979_v16 }
 0x241   : > { %2611 = vst [vmem:[#allocation1 + $0x1] ss:$9 sm:$0xff] %v2332_v7  ;;  %v1985_v7 = vand.u32 2147483647, %v4463_v15 }
 0x242   : > { %2612 = vst [vmem:[#allocation1 + $0x2] ss:$9 sm:$0xff] %v2333_v59  ;;  %v3202_v59 = vpop.eup %3201 }
 0x243   : > { %2613 = vst [vmem:[#allocation1 + $0x3] ss:$9 sm:$0xff] %v2334_v35  ;;  %v2354_v35 = vperm.slane %v1974_v22, 7  ;;  %vm1986_vm1 = vcmp.eq.f32.partialorder %v1985_v7, 8.507059e+37  ;;  %v4505_v53 = vadd.f32 1.0, %v3202_v59 }
 0x244   : > { %2614 = vst [vmem:[#allocation1 + $0x4] ss:$9 sm:$0xff] %v2335_v57  ;;  %v4501_v57 = vpop.xlane.xlu0 %1519 }
 0x245   : > { %2615 = vst [vmem:[#allocation1 + $0x5] ss:$9 sm:$0xff] %v2336_v0  ;;  %v1984_v0 = vsel %vm1983_vm0, %v4472_v17, %v1980_v40  ;;  %3203 = vrcp.f32 %v4505_v53  ;;  %v4526_v17 = vpop.xlane.xlu1 %1527  ;;  %vm2011_vm10 = vweird.f32 %v4505_v53  ;;  %v2017_v50 = vand.u32 2147483648, %v4505_v53 }
 0x246   : > { %2616 = vst [vmem:[#allocation1 + $0x6] ss:$9 sm:$0xff] %v2337_v49  ;;  %v1989_v49 = vsel %vm1986_vm1, %v1988_v51, %v1984_v0  ;;  %3205 = vpow2.f32 %v3069_v56 }
 0x247   : > { %2617 = vst [vmem:[#allocation1 + $0x7] ss:$9 sm:$0xff] %v2338_v34  ;;  %v4507_v34 = vpop.permute.xlu2 %2755  ;;  %v2355_v41 = vperm.slane %v1989_v49, 0  ;;  %v2356_v39 = vperm.slane %v1989_v49, 1  ;;  %v2357_v9 = vperm.slane %v1989_v49, 2  ;;  %v2362_v62 = vperm.slane %v1989_v49, 7 }
 0x248   : > { %v2018_v19 = vor.u32 1.1754944e-38, %v2017_v50 }
 0x24b   : > { %v4520_v47 = vpop.eup %3203 }
 0x24c   : > { %v4513_v4 = vpop.xlane.xlu0 %1525  ;;  %v3206_v46 = vpop.eup %3205  ;;  %v2007_v31 = vmul.f32 %v4520_v47, %v4505_v53  ;;  %vm2012_vm11 = vweird.f32 %v4520_v47 }
 0x24d   : > { %v4541_v54 = vadd.f32 1.0, %v3206_v46  ;;  %vm2013_vm12 = vmor %vm2011_vm10, %vm2012_vm11 }
 0x24e   : > { %v2618_v27 = vld [vmem:[#allocation1] sm:$0xff]  ;;  %v2008_v22 = vsub.f32 1.0, %v2007_v31 }
 0x24f   : > { %2619 = vst [vmem:[#allocation1] ss:$9 sm:$0xff] %v2339_v13  ;;  %2803 = vperm.xlu1 %3106, %v2618_v27   ;;  %v2358_v13 = vperm.slane %v1989_v49, 3  ;;  %v2850_v27 = vlaneseq  ;;  %v2765_v45 = vpop.permute.xlu2 %2764  ;;  %3207 = vrcp.f32 %v4541_v54  ;;  %vm2026_vm14 = vweird.f32 %v4541_v54 }
 0x250   : > { %2620 = vst [vmem:[#allocation1 + $0x1] ss:$9 sm:$0xff] %v2340_v18  ;;  %v1995_v18 = vadd.f32 %v4494_v29, %v1994_v23  ;;  %v2030_v31 = vand.u32 2147483647, %v4541_v54 }
 0x251   : > { %2621 = vst [vmem:[#allocation1 + $0x2] ss:$9 sm:$0xff] %v2341_v44  ;;  %v2359_v44 = vperm.slane %v1989_v49, 4 }
 0x252   : > { %2622 = vst [vmem:[#allocation1 + $0x3] ss:$9 sm:$0xff] %v2342_v63  ;;  %v1999_v38 = vsel %vm4522_vm4, %v4494_v29, %v1995_v18  ;;  %vm2031_vm1 = vcmp.eq.f32.partialorder %v2030_v31, 8.507059e+37 }
 0x253   : > { %2623 = vst [vmem:[#allocation1 + $0x4] ss:$9 sm:$0xff] %v2343_v61  ;;  %v2360_v61 = vperm.slane %v1989_v49, 5 }
 0x254   : > { %2624 = vst [vmem:[#allocation1 + $0x5] ss:$9 sm:$0xff] %v2344_v37  ;;  %v2361_v37 = vperm.slane %v1989_v49, 6  ;;  %v2759_v6 = vpop.permute.xlu0 %2758 }
 0x255   : > { %2625 = vst [vmem:[#allocation1 + $0x6] ss:$9 sm:$0xff] %v2345_v60  ;;  %v1554_v60 = vadd.f32 %v3982_v42, %v4465_v33  ;;  %v2004_v33 = vsel %vm2001_vm5, %v2003_v43, %v1999_v38  ;;  %v4566_v55 = vpop.eup %3207 }
 0x256   : > { %2626 = vst [vmem:[#allocation1 + $0x7] ss:$9 sm:$0xff] %v2346_v32  ;;  %v4531_v32 = vand.u32 127, %v2850_v27  ;;  %v2366_v7 = vperm.slane %v2004_v33, 3  ;;  %v2367_v51 = vperm.slane %v2004_v33, 4  ;;  %v2368_v49 = vperm.slane %v2004_v33, 5 }
 0x257   : > { %v3070_v8 = vmul.f32 -1.442695, %v1554_v60  ;;  %vm2027_vm15 = vweird.f32 %v4566_v55 }
 0x258   : > { %v4539_v24 = vadd.s32 4294967288, %v4531_v32  ;;  %v4544_v48 = vadd.s32 4294967280, %v4531_v32  ;;  %v4547_v36 = vadd.s32 4294967272, %v4531_v32  ;;  %v4552_v16 = vadd.s32 4294967264, %v4531_v32  ;;  %vm4593_vm0 = vmor %vm2026_vm14, %vm2027_vm15 }
 0x259   : > { %3209 = vpow2.f32 %v3070_v8  ;;  %v2852_v29 = vperm.slane %v4507_v34, %v4531_v32  ;;  %v2015_v34 = vand.u32 2147483647, %v4505_v53 }
 0x25b   : > { %vm2016_vm13 = vcmp.eq.f32.partialorder %v2015_v34, 8.507059e+37 }
 0x25d   : > { %v2627_v20 = vld [vmem:[#allocation1] sm:$0xff] }
 0x25e   : > { %2628 = vst [vmem:[#allocation1] ss:$9 sm:$0xff] %v2347_v14  ;;  %2806 = vperm.xlu0 %3105, %v2627_v20   ;;  %v2854_v14 = vperm.slane %v2759_v6, %v4539_v24  ;;  %v2762_v20 = vpop.permute.xlu1 %2761 }
 0x25f   : > { %2629 = vst [vmem:[#allocation1 + $0x1] ss:$9 sm:$0xff] %v2348_v26  ;;  %v2363_v26 = vperm.slane %v2004_v33, 0  ;;  %v2858_v40 = vperm.slane %v2762_v20, %v4544_v48  ;;  %v4598_v20 = vadd.s32 4294967256, %v4531_v32 }
 0x260   : > { %2630 = vst [vmem:[#allocation1 + $0x2] ss:$9 sm:$0xff] %v2349_v1  ;;  %v2364_v1 = vperm.slane %v2004_v33, 1  ;;  %v2856_v59 = vsel %vm2855_vm6, %v2854_v14, %v2852_v29 }
 0x261   : > { %2631 = vst [vmem:[#allocation1 + $0x3] ss:$9 sm:$0xff] %v2350_v28  ;;  %v2365_v28 = vperm.slane %v2004_v33, 2 }
 0x262   : > { %2632 = vst [vmem:[#allocation1 + $0x4] ss:$9 sm:$0xff] %v2351_v21  ;;  %v2768_v21 = vpop.permute.xlu2 %2767 }
 0x263   : > { %2633 = vst [vmem:[#allocation1 + $0x5] ss:$9 sm:$0xff] %v2352_v2  ;;  %v2009_v2 = vmul.f32 %v4520_v47, %v2008_v22  ;;  %v2866_v52 = vperm.slane %v2768_v21, %v4552_v16 }
 0x264   : > { %2634 = vst [vmem:[#allocation1 + $0x6] ss:$9 sm:$0xff] %v2353_v58  ;;  %v2862_v58 = vperm.slane %v2765_v45, %v4547_v36 }
 0x265   : > { %2635 = vst [vmem:[#allocation1 + $0x7] ss:$9 sm:$0xff] %v2354_v35  ;;  %v2860_v35 = vsel %vm2859_vm7, %v2858_v40, %v2856_v59  ;;  %v2010_v56 = vadd.f32 %v4520_v47, %v2009_v2 }
 0x266   : > { %v2864_v0 = vsel %vm2863_vm8, %v2862_v58, %v2860_v35 }
 0x267   : > { %v4571_v23 = vsel %vm2867_vm9, %v2866_v52, %v2864_v0  ;;  %v2014_v18 = vsel %vm2013_vm12, %v4520_v47, %v2010_v56  ;;  %v2032_v47 = vand.u32 2147483648, %v4541_v54 }
 0x268   : > { %v2019_v63 = vsel %vm2016_vm13, %v2018_v19, %v2014_v18  ;;  %v1557_v19 = vadd.f32 %v3982_v42, %v4476_v3 }
 0x269   : > { %v2372_v46 = vperm.slane %v2019_v63, 1  ;;  %v2373_v43 = vperm.slane %v2019_v63, 2  ;;  %v2376_v6 = vperm.slane %v2019_v63, 5  ;;  %v2377_v8 = vperm.slane %v2019_v63, 6 }
 0x26a   : > { %v2378_v14 = vperm.slane %v2019_v63, 7 }
 0x26c   : > { %v2636_v15 = vld [vmem:[#allocation1] sm:$0xff] }
 0x26d   : > { %2637 = vst [vmem:[#allocation1] ss:$9 sm:$0xff] %v2355_v41  ;;  %2809 = vperm.xlu2 %3104, %v2636_v15   ;;  %v3210_v41 = vpop.eup %3209  ;;  %v2369_v15 = vperm.slane %v2004_v33, 6 }
 0x26e   : > { %2638 = vst [vmem:[#allocation1 + $0x1] ss:$9 sm:$0xff] %v2356_v39  ;;  %v2370_v39 = vperm.slane %v2004_v33, 7  ;;  %v4582_v11 = vadd.f32 1.0, %v3210_v41 }
 0x26f   : > { %2639 = vst [vmem:[#allocation1 + $0x2] ss:$9 sm:$0xff] %v2357_v9  ;;  %v2022_v9 = vmul.f32 %v4566_v55, %v4541_v54  ;;  %v1556_v54 = vadd.f32 %v3982_v42, %v4509_v30 }
 0x270   : > { %2640 = vst [vmem:[#allocation1 + $0x3] ss:$9 sm:$0xff] %v2358_v13  ;;  %v1555_v13 = vadd.f32 %v3982_v42, %v4484_v12  ;;  %3211 = vrcp.f32 %v4582_v11  ;;  %v2374_v12 = vperm.slane %v2019_v63, 3  ;;  %vm2041_vm3 = vweird.f32 %v4582_v11 }
 0x271   : > { %2641 = vst [vmem:[#allocation1 + $0x4] ss:$9 sm:$0xff] %v2359_v44  ;;  %v2023_v44 = vsub.f32 1.0, %v2022_v9  ;;  %v2047_v0 = vand.u32 2147483648, %v4582_v11  ;;  %v2045_v34 = vand.u32 2147483647, %v4582_v11 }
 0x272   : > { %2642 = vst [vmem:[#allocation1 + $0x5] ss:$9 sm:$0xff] %v2360_v61  ;;  %v3071_v53 = vmul.f32 -1.442695, %v1555_v13  ;;  %v2371_v61 = vperm.slane %v2019_v63, 0 }
 0x273   : > { %2643 = vst [vmem:[#allocation1 + $0x6] ss:$9 sm:$0xff] %v2361_v37  ;;  %v2024_v37 = vmul.f32 %v4566_v55, %v2023_v44  ;;  %v2048_v9 = vor.u32 1.1754944e-38, %v2047_v0  ;;  %vm2046_vm10 = vcmp.eq.f32.partialorder %v2045_v34, 8.507059e+37 }
 0x274   : > { %2644 = vst [vmem:[#allocation1 + $0x7] ss:$9 sm:$0xff] %v2362_v62  ;;  %3213 = vpow2.f32 %v3071_v53  ;;  %v2375_v62 = vperm.slane %v2019_v63, 4  ;;  %v3073_v63 = vmul.f32 -1.442695, %v1557_v19 }
 0x275   : > { %v2025_v38 = vadd.f32 %v4566_v55, %v2024_v37 }
 0x276   : > { %v4589_v60 = vpop.eup %3211 }
 0x277   : > { %v2029_v29 = vsel %vm4593_vm0, %v4566_v55, %v2025_v38  ;;  %vm2042_vm4 = vweird.f32 %v4589_v60 }
 0x278   : > { %vm2043_vm5 = vmor %vm2041_vm3, %vm2042_vm4 }
 0x27a   : > { %v3214_v22 = vpop.eup %3213 }
 0x27b   : > { %v2645_v10 = vld [vmem:[#allocation1] sm:$0xff]  ;;  %v4607_v21 = vadd.f32 1.0, %v3214_v22 }
 0x27c   : > { %2646 = vst [vmem:[#allocation1] ss:$9 sm:$0xff] %v2363_v26  ;;  %2812 = vperm.xlu1 %3106, %v2645_v10   ;;  %v2037_v26 = vmul.f32 %v4589_v60, %v4582_v11 }
 0x27d   : > { %2647 = vst [vmem:[#allocation1 + $0x1] ss:$9 sm:$0xff] %v2364_v1  ;;  %v2033_v1 = vor.u32 1.1754944e-38, %v2032_v47  ;;  %3215 = vrcp.f32 %v4607_v21  ;;  %vm2056_vm11 = vweird.f32 %v4607_v21  ;;  %v2062_v47 = vand.u32 2147483648, %v4607_v21 }
 0x27e   : > { %2648 = vst [vmem:[#allocation1 + $0x2] ss:$9 sm:$0xff] %v2365_v28  ;;  %v2771_v28 = vpop.permute.xlu1 %2770  ;;  %v2038_v2 = vsub.f32 1.0, %v2037_v26  ;;  %v2060_v31 = vand.u32 2147483647, %v4607_v21  ;;  %v1558_v26 = vadd.f32 %v3982_v42, %v4501_v57 }
 0x27f   : > { %2649 = vst [vmem:[#allocation1 + $0x3] ss:$9 sm:$0xff] %v2366_v7  ;;  %v2870_v10 = vperm.slane %v2771_v28, %v4598_v20  ;;  %v2034_v40 = vsel %vm2031_vm1, %v2033_v1, %v2029_v29  ;;  %v3072_v7 = vmul.f32 -1.442695, %v1556_v54  ;;  %v2063_v22 = vor.u32 1.1754944e-38, %v2062_v47 }
 0x280   : > { %2650 = vst [vmem:[#allocation1 + $0x4] ss:$9 sm:$0xff] %v2367_v51  ;;  %v2379_v58 = vperm.slane %v2034_v40, 0  ;;  %v2039_v59 = vmul.f32 %v4589_v60, %v2038_v2  ;;  %v2380_v52 = vperm.slane %v2034_v40, 1  ;;  %v2381_v51 = vperm.slane %v2034_v40, 2 }
 0x281   : > { %2651 = vst [vmem:[#allocation1 + $0x5] ss:$9 sm:$0xff] %v2368_v49  ;;  %v4613_v30 = vsel %vm2871_vm2, %v2870_v10, %v4571_v23  ;;  %3217 = vpow2.f32 %v3072_v7  ;;  %v2382_v50 = vperm.slane %v2034_v40, 3  ;;  %v2383_v55 = vperm.slane %v2034_v40, 4 }
 0x282   : > { %2652 = vst [vmem:[#allocation1 + $0x6] ss:$9 sm:$0xff] %v2369_v15  ;;  %v2040_v56 = vadd.f32 %v4589_v60, %v2039_v59  ;;  %v2384_v23 = vperm.slane %v2034_v40, 5  ;;  %v2385_v41 = vperm.slane %v2034_v40, 6  ;;  %vm2061_vm14 = vcmp.eq.f32.partialorder %v2060_v31, 8.507059e+37 }
 0x283   : > { %2653 = vst [vmem:[#allocation1 + $0x7] ss:$9 sm:$0xff] %v2370_v39  ;;  %v3216_v49 = vpop.eup %3215  ;;  %v2386_v39 = vperm.slane %v2034_v40, 7 }
 0x284   : > { %v2052_v13 = vmul.f32 %v3216_v49, %v4607_v21  ;;  %v2044_v18 = vsel %vm2043_vm5, %v4589_v60, %v2040_v56  ;;  %vm2057_vm12 = vweird.f32 %v3216_v49  ;;  %v3074_v21 = vmul.f32 -1.442695, %v1558_v26 }
 0x285   : > { %v2049_v44 = vsel %vm2046_vm10, %v2048_v9, %v2044_v18  ;;  %vm2058_vm13 = vmor %vm2056_vm11, %vm2057_vm12 }
 0x286   : > { %v2053_v53 = vsub.f32 1.0, %v2052_v13  ;;  %v2389_v3 = vperm.slane %v2049_v44, 2  ;;  %v2392_v60 = vperm.slane %v2049_v44, 5 }
 0x287   : > { %v3218_v15 = vpop.eup %3217 }
 0x288   : > { %v4625_v11 = vadd.f32 1.0, %v3218_v15 }
 0x28a   : > { %v2654_v45 = vld [vmem:[#allocation1] sm:$0xff]  ;;  %3219 = vrcp.f32 %v4625_v11  ;;  %vm2071_vm15 = vweird.f32 %v4625_v11  ;;  %v2075_v0 = vand.u32 2147483647, %v4625_v11 }
 0x28b   : > { %2655 = vst [vmem:[#allocation1] ss:$9 sm:$0xff] %v2371_v61  ;;  %2815 = vperm.xlu0 %3105, %v2654_v45   ;;  %v2387_v61 = vperm.slane %v2049_v44, 0  ;;  %v2388_v45 = vperm.slane %v2049_v44, 1  ;;  %3221 = vpow2.f32 %v3073_v63 }
 0x28c   : > { %2656 = vst [vmem:[#allocation1 + $0x1] ss:$9 sm:$0xff] %v2372_v46  ;;  %v2054_v46 = vmul.f32 %v3216_v49, %v2053_v53  ;;  %vm2076_vm3 = vcmp.eq.f32.partialorder %v2075_v0, 8.507059e+37 }
 0x28d   : > { %2657 = vst [vmem:[#allocation1 + $0x2] ss:$9 sm:$0xff] %v2373_v43  ;;  %v2390_v43 = vperm.slane %v2049_v44, 3 }
 0x28e   : > { %2658 = vst [vmem:[#allocation1 + $0x3] ss:$9 sm:$0xff] %v2374_v12  ;;  %v2391_v12 = vperm.slane %v2049_v44, 4  ;;  %v2055_v38 = vadd.f32 %v3216_v49, %v2054_v46 }
 0x28f   : > { %2659 = vst [vmem:[#allocation1 + $0x4] ss:$9 sm:$0xff] %v2375_v62 }
 0x290   : > { %2660 = vst [vmem:[#allocation1 + $0x5] ss:$9 sm:$0xff] %v2376_v6  ;;  %v3220_v62 = vpop.eup %3219  ;;  %v2393_v6 = vperm.slane %v2049_v44, 6  ;;  %v2059_v1 = vsel %vm2058_vm13, %v3216_v49, %v2055_v38  ;;  %v1560_v38 = vadd.f32 %v3982_v42, %v4488_v5 }
 0x291   : > { %2661 = vst [vmem:[#allocation1 + $0x6] ss:$9 sm:$0xff] %v2377_v8  ;;  %v3222_v33 = vpop.eup %3221  ;;  %v2394_v8 = vperm.slane %v2049_v44, 7  ;;  %v2064_v28 = vsel %vm2061_vm14, %v2063_v22, %v2059_v1  ;;  %vm2072_vm0 = vweird.f32 %v3220_v62 }
 0x292   : > { %2662 = vst [vmem:[#allocation1 + $0x7] ss:$9 sm:$0xff] %v2378_v14  ;;  %v2067_v14 = vmul.f32 %v3220_v62, %v4625_v11  ;;  %v4634_v54 = vadd.f32 1.0, %v3222_v33  ;;  %v2395_v10 = vperm.slane %v2064_v28, 0  ;;  %v2396_v2 = vperm.slane %v2064_v28, 1  ;;  %vm2073_vm1 = vmor %vm2071_vm15, %vm2072_vm0 }
 0x293   : > { %v2398_v59 = vperm.slane %v2064_v28, 3  ;;  %v2399_v57 = vperm.slane %v2064_v28, 4  ;;  %v2402_v56 = vperm.slane %v2064_v28, 7  ;;  %v3076_v22 = vmul.f32 -1.442695, %v1560_v38 }
 0x294   : > { %v2068_v29 = vsub.f32 1.0, %v2067_v14  ;;  %3223 = vrcp.f32 %v4634_v54  ;;  %vm2086_vm4 = vweird.f32 %v4634_v54 }
 0x295   : > { %3225 = vpow2.f32 %v3074_v21 }
 0x296   : > { %v2069_v7 = vmul.f32 %v3220_v62, %v2068_v29 }
 0x299   : > { %v2663_v35 = vld [vmem:[#allocation1] sm:$0xff] }
 0x29a   : > { %2664 = vst [vmem:[#allocation1] ss:$9 sm:$0xff] %v2379_v58  ;;  %2818 = vperm.xlu2 %3104, %v2663_v35   ;;  %v2397_v58 = vperm.slane %v2064_v28, 2  ;;  %v3224_v35 = vpop.eup %3223 }
 0x29b   : > { %2665 = vst [vmem:[#allocation1 + $0x1] ss:$9 sm:$0xff] %v2380_v52  ;;  %v2077_v52 = vand.u32 2147483648, %v4625_v11  ;;  %v3226_v49 = vpop.eup %3225  ;;  %v2082_v34 = vmul.f32 %v3224_v35, %v4634_v54  ;;  %vm2087_vm5 = vweird.f32 %v3224_v35 }
 0x29c   : > { %2666 = vst [vmem:[#allocation1 + $0x2] ss:$9 sm:$0xff] %v2381_v51  ;;  %v2400_v51 = vperm.slane %v2064_v28, 5  ;;  %vm2088_vm10 = vmor %vm2086_vm4, %vm2087_vm5 }
 0x29d   : > { %2667 = vst [vmem:[#allocation1 + $0x3] ss:$9 sm:$0xff] %v2382_v50  ;;  %v2070_v50 = vadd.f32 %v3220_v62, %v2069_v7  ;;  %v2083_v9 = vsub.f32 1.0, %v2082_v34 }
 0x29e   : > { %2668 = vst [vmem:[#allocation1 + $0x4] ss:$9 sm:$0xff] %v2383_v55  ;;  %v2401_v55 = vperm.slane %v2064_v28, 6 }
 0x29f   : > { %2669 = vst [vmem:[#allocation1 + $0x5] ss:$9 sm:$0xff] %v2384_v23  ;;  %v1559_v23 = vadd.f32 %v3982_v42, %v4490_v25  ;;  %v2074_v15 = vsel %vm2073_vm1, %v3220_v62, %v2070_v50  ;;  %v2084_v11 = vmul.f32 %v3224_v35, %v2083_v9  ;;  %v1561_v50 = vadd.f32 %v3982_v42, %v4513_v4 }
 0x2a0   : > { %2670 = vst [vmem:[#allocation1 + $0x6] ss:$9 sm:$0xff] %v2385_v41  ;;  %v2078_v41 = vor.u32 1.1754944e-38, %v2077_v52 }
 0x2a1   : > { %2671 = vst [vmem:[#allocation1 + $0x7] ss:$9 sm:$0xff] %v2386_v39  ;;  %v4643_v39 = vadd.f32 1.0, %v3226_v49  ;;  %v3075_v19 = vmul.f32 -1.442695, %v1559_v23  ;;  %v2085_v46 = vadd.f32 %v3224_v35, %v2084_v11 }
 0x2a2   : > { %v2079_v13 = vsel %vm2076_vm3, %v2078_v41, %v2074_v15  ;;  %v3077_v34 = vmul.f32 -1.442695, %v1561_v50 }
 0x2a3   : > { %3227 = vrcp.f32 %v4643_v39  ;;  %v2403_v18 = vperm.slane %v2079_v13, 0  ;;  %v2404_v63 = vperm.slane %v2079_v13, 1  ;;  %v2405_v53 = vperm.slane %v2079_v13, 2 }
 0x2a4   : > { %3229 = vpow2.f32 %v3075_v19  ;;  %v2406_v25 = vperm.slane %v2079_v13, 3  ;;  %v2410_v62 = vperm.slane %v2079_v13, 7  ;;  %vm2101_vm12 = vweird.f32 %v4643_v39 }
 0x2a8   : > { %v2672_v37 = vld [vmem:[#allocation1] sm:$0xff] }
 0x2a9   : > { %2673 = vst [vmem:[#allocation1] ss:$9 sm:$0xff] %v2387_v61  ;;  %2821 = vperm.xlu1 %3106, %v2672_v37   ;;  %v2092_v61 = vand.u32 2147483648, %v4634_v54  ;;  %v3228_v37 = vpop.eup %3227 }
 0x2aa   : > { %2674 = vst [vmem:[#allocation1 + $0x1] ss:$9 sm:$0xff] %v2388_v45  ;;  %v2407_v45 = vperm.slane %v2079_v13, 4  ;;  %v3230_v47 = vpop.eup %3229  ;;  %v2097_v31 = vmul.f32 %v3228_v37, %v4643_v39  ;;  %vm2102_vm13 = vweird.f32 %v3228_v37 }
 0x2ab   : > { %2675 = vst [vmem:[#allocation1 + $0x2] ss:$9 sm:$0xff] %v2389_v3  ;;  %v2090_v3 = vand.u32 2147483647, %v4634_v54  ;;  %v4652_v33 = vadd.f32 1.0, %v3230_v47  ;;  %vm2103_vm14 = vmor %vm2101_vm12, %vm2102_vm13 }
 0x2ac   : > { %2676 = vst [vmem:[#allocation1 + $0x3] ss:$9 sm:$0xff] %v2390_v43  ;;  %v2408_v43 = vperm.slane %v2079_v13, 5  ;;  %v2098_v14 = vsub.f32 1.0, %v2097_v31 }
 0x2ad   : > { %2677 = vst [vmem:[#allocation1 + $0x4] ss:$9 sm:$0xff] %v2391_v12  ;;  %v2409_v12 = vperm.slane %v2079_v13, 6  ;;  %vm2091_vm11 = vcmp.eq.f32.partialorder %v2090_v3, 8.507059e+37  ;;  %3231 = vrcp.f32 %v4652_v33  ;;  %vm2116_vm0 = vweird.f32 %v4652_v33 }
 0x2ae   : > { %2678 = vst [vmem:[#allocation1 + $0x5] ss:$9 sm:$0xff] %v2392_v60  ;;  %v2093_v60 = vor.u32 1.1754944e-38, %v2092_v61  ;;  %3233 = vpow2.f32 %v3076_v22  ;;  %v2099_v28 = vmul.f32 %v3228_v37, %v2098_v14  ;;  %v2122_v19 = vand.u32 2147483648, %v4652_v33 }
 0x2af   : > { %2679 = vst [vmem:[#allocation1 + $0x6] ss:$9 sm:$0xff] %v2393_v6  ;;  %v2089_v6 = vsel %vm2088_vm10, %v3224_v35, %v2085_v46  ;;  %v1562_v3 = vadd.f32 %v3982_v42, %v4526_v17 }
 0x2b0   : > { %2680 = vst [vmem:[#allocation1 + $0x7] ss:$9 sm:$0xff] %v2394_v8  ;;  %v2094_v8 = vsel %vm2091_vm11, %v2093_v60, %v2089_v6  ;;  %v2100_v7 = vadd.f32 %v3228_v37, %v2099_v28  ;;  %v2123_v46 = vor.u32 1.1754944e-38, %v2122_v19 }
 0x2b1   : > { %v2411_v26 = vperm.slane %v2094_v8, 0  ;;  %v2412_v1 = vperm.slane %v2094_v8, 1  ;;  %v2413_v29 = vperm.slane %v2094_v8, 2  ;;  %v2414_v5 = vperm.slane %v2094_v8, 3 }
 0x2b2   : > { %v2415_v21 = vperm.slane %v2094_v8, 4  ;;  %v2418_v52 = vperm.slane %v2094_v8, 7  ;;  %v2104_v0 = vsel %vm2103_vm14, %v3228_v37, %v2100_v7  ;;  %v3078_v60 = vmul.f32 -1.442695, %v1562_v3 }
 0x2b7   : > { %v2681_v40 = vld [vmem:[#allocation1] sm:$0xff] }
 0x2b8   : > { %2682 = vst [vmem:[#allocation1] ss:$9 sm:$0xff] %v2395_v10  ;;  %2824 = vperm.xlu0 %3105, %v2681_v40   ;;  %v2107_v10 = vand.u32 2147483648, %v4643_v39  ;;  %v2416_v40 = vperm.slane %v2094_v8, 5 }
 0x2b9   : > { %2683 = vst [vmem:[#allocation1 + $0x1] ss:$9 sm:$0xff] %v2396_v2  ;;  %v3232_v2 = vpop.eup %3231 }
 0x2ba   : > { %2684 = vst [vmem:[#allocation1 + $0x2] ss:$9 sm:$0xff] %v2397_v58  ;;  %v2105_v58 = vand.u32 2147483647, %v4643_v39  ;;  %v2112_v35 = vmul.f32 %v3232_v2, %v4652_v33  ;;  %vm2117_vm1 = vweird.f32 %v3232_v2 }
 0x2bb   : > { %2685 = vst [vmem:[#allocation1 + $0x3] ss:$9 sm:$0xff] %v2398_v59  ;;  %v2417_v59 = vperm.slane %v2094_v8, 6  ;;  %vm4667_vm3 = vmor %vm2116_vm0, %vm2117_vm1 }
 0x2bc   : > { %2686 = vst [vmem:[#allocation1 + $0x4] ss:$9 sm:$0xff] %v2399_v57  ;;  %v3234_v57 = vpop.eup %3233  ;;  %vm2106_vm15 = vcmp.eq.f32.partialorder %v2105_v58, 8.507059e+37  ;;  %v2113_v49 = vsub.f32 1.0, %v2112_v35 }
 0x2bd   : > { %2687 = vst [vmem:[#allocation1 + $0x5] ss:$9 sm:$0xff] %v2400_v51  ;;  %v2108_v51 = vor.u32 1.1754944e-38, %v2107_v10 }
 0x2be   : > { %2688 = vst [vmem:[#allocation1 + $0x6] ss:$9 sm:$0xff] %v2401_v55  ;;  %v4661_v55 = vadd.f32 1.0, %v3234_v57  ;;  %v2114_v41 = vmul.f32 %v3232_v2, %v2113_v49 }
 0x2bf   : > { %2689 = vst [vmem:[#allocation1 + $0x7] ss:$9 sm:$0xff] %v2402_v56  ;;  %v2109_v56 = vsel %vm2106_vm15, %v2108_v51, %v2104_v0 }
 0x2c0   : > { %3235 = vrcp.f32 %v4661_v55  ;;  %v2419_v23 = vperm.slane %v2109_v56, 0  ;;  %v2420_v15 = vperm.slane %v2109_v56, 1  ;;  %v2421_v9 = vperm.slane %v2109_v56, 2 }
 0x2c1   : > { %3237 = vpow2.f32 %v3077_v34  ;;  %v2422_v4 = vperm.slane %v2109_v56, 3  ;;  %v2423_v13 = vperm.slane %v2109_v56, 4  ;;  %v2115_v11 = vadd.f32 %v3232_v2, %v2114_v41 }
 0x2c2   : > { %vm2131_vm5 = vweird.f32 %v4661_v55  ;;  %v2137_v17 = vand.u32 2147483648, %v4661_v55 }
 0x2c6   : > { %v2690_v44 = vld [vmem:[#allocation1] sm:$0xff] }
 0x2c7   : > { %2691 = vst [vmem:[#allocation1] ss:$9 sm:$0xff] %v2403_v18  ;;  %2827 = vperm.xlu2 %3104, %v2690_v44   ;;  %v3236_v18 = vpop.eup %3235  ;;  %v2120_v44 = vand.u32 2147483647, %v4652_v33 }
 0x2c8   : > { %2692 = vst [vmem:[#allocation1 + $0x1] ss:$9 sm:$0xff] %v2404_v63  ;;  %v2424_v63 = vperm.slane %v2109_v56, 5  ;;  %v3238_v61 = vpop.eup %3237  ;;  %v2127_v37 = vmul.f32 %v3236_v18, %v4661_v55  ;;  %vm2132_vm10 = vweird.f32 %v3236_v18 }
 0x2c9   : > { %2693 = vst [vmem:[#allocation1 + $0x2] ss:$9 sm:$0xff] %v2405_v53  ;;  %vm2121_vm4 = vcmp.eq.f32.partialorder %v2120_v44, 8.507059e+37  ;;  %vm2133_vm11 = vmor %vm2131_vm5, %vm2132_vm10  ;;  %vm2879_vm10 = vcmask 523712  }
 0x2ca   : > { %2694 = vst [vmem:[#allocation1 + $0x3] ss:$9 sm:$0xff] %v2406_v25  ;;  %v2425_v25 = vperm.slane %v2109_v56, 6  ;;  %v2128_v47 = vsub.f32 1.0, %v2127_v37 }
 0x2cb   : > { %2695 = vst [vmem:[#allocation1 + $0x4] ss:$9 sm:$0xff] %v2407_v45  ;;  %v2426_v45 = vperm.slane %v2109_v56, 7 }
 0x2cc   : > { %2696 = vst [vmem:[#allocation1 + $0x5] ss:$9 sm:$0xff] %v2408_v43  ;;  %v2119_v43 = vsel %vm4667_vm3, %v3232_v2, %v2115_v11  ;;  %v2129_v31 = vmul.f32 %v3236_v18, %v2128_v47 }
 0x2cd   : > { %2697 = vst [vmem:[#allocation1 + $0x6] ss:$9 sm:$0xff] %v2409_v12  ;;  %v4676_v12 = vadd.f32 1.0, %v3238_v61 }
 0x2ce   : > { %2698 = vst [vmem:[#allocation1 + $0x7] ss:$9 sm:$0xff] %v2410_v62  ;;  %v2124_v62 = vsel %vm2121_vm4, %v2123_v46, %v2119_v43 }
 0x2cf   : > { %3239 = vrcp.f32 %v4676_v12  ;;  %v2427_v38 = vperm.slane %v2124_v62, 0  ;;  %v2428_v6 = vperm.slane %v2124_v62, 1  ;;  %v2429_v8 = vperm.slane %v2124_v62, 2 }
 0x2d0   : > { %3241 = vpow2.f32 %v3078_v60  ;;  %v2430_v42 = vperm.slane %v2124_v62, 3  ;;  %v2431_v22 = vperm.slane %v2124_v62, 4  ;;  %v2433_v28 = vperm.slane %v2124_v62, 6 }
 0x2d1   : > { %vm2146_vm13 = vweird.f32 %v4676_v12 }
 0x2d5   : > { %v2699_v54 = vld [vmem:[#allocation1] sm:$0xff]  ;;  %v3240_v14 = vpop.eup %3239 }
 0x2d6   : > { %2700 = vst [vmem:[#allocation1] ss:$9 sm:$0xff] %v2411_v26  ;;  %2830 = vperm.xlu1 %3106, %v2699_v54   ;;  %v2130_v26 = vadd.f32 %v3236_v18, %v2129_v31  ;;  %v2432_v54 = vperm.slane %v2124_v62, 5  ;;  %v2142_v10 = vmul.f32 %v3240_v14, %v4676_v12  ;;  %vm2147_vm14 = vweird.f32 %v3240_v14 }
 0x2d7   : > { %2701 = vst [vmem:[#allocation1 + $0x1] ss:$9 sm:$0xff] %v2412_v1  ;;  %v2135_v1 = vand.u32 2147483647, %v4661_v55  ;;  %v2152_v55 = vand.u32 2147483648, %v4676_v12  ;;  %vm2148_vm15 = vmor %vm2146_vm13, %vm2147_vm14  ;;  %vm2907_vm13 = vcmask 982912  }
 0x2d8   : > { %2702 = vst [vmem:[#allocation1 + $0x2] ss:$9 sm:$0xff] %v2413_v29  ;;  %v3242_v29 = vpop.eup %3241  ;;  %v2134_v2 = vsel %vm2133_vm11, %v3236_v18, %v2130_v26  ;;  %v2143_v58 = vsub.f32 1.0, %v2142_v10  ;;  %vm2899_vm11 = vcmask 851712   ;;  %vm2911_vm14 = vcmask 1048512  }
 0x2d9   : > { %2703 = vst [vmem:[#allocation1 + $0x3] ss:$9 sm:$0xff] %v2414_v5  ;;  %v2434_v5 = vperm.slane %v2124_v62, 7  ;;  %vm2136_vm12 = vcmp.eq.f32.partialorder %v2135_v1, 8.507059e+37  ;;  %v2774_v1 = vpop.permute.xlu2 %2773 }
 0x2da   : > { %2704 = vst [vmem:[#allocation1 + $0x4] ss:$9 sm:$0xff] %v2415_v21  ;;  %v2138_v21 = vor.u32 1.1754944e-38, %v2137_v17 }
 0x2db   : > { %2705 = vst [vmem:[#allocation1 + $0x5] ss:$9 sm:$0xff] %v2416_v40  ;;  %v4683_v40 = vadd.f32 1.0, %v3242_v29 }
 0x2dc   : > { %2706 = vst [vmem:[#allocation1 + $0x6] ss:$9 sm:$0xff] %v2417_v59  ;;  %v2139_v7 = vsel %vm2136_vm12, %v2138_v21, %v2134_v2  ;;  %vm2903_vm12 = vcmask 917312  }
 0x2dd   : > { %2707 = vst [vmem:[#allocation1 + $0x7] ss:$9 sm:$0xff] %v2418_v52  ;;  %3243 = vrcp.f32 %v4683_v40  ;;  %v2435_v59 = vperm.slane %v2139_v7, 0  ;;  %v2436_v57 = vperm.slane %v2139_v7, 1  ;;  %v2144_v52 = vmul.f32 %v3240_v14, %v2143_v58 }
 0x2de   : > { %v2437_v51 = vperm.slane %v2139_v7, 2  ;;  %v2438_v50 = vperm.slane %v2139_v7, 3  ;;  %v2439_v0 = vperm.slane %v2139_v7, 4  ;;  %v2440_v56 = vperm.slane %v2139_v7, 5 }
 0x2df   : > { %v2145_v34 = vadd.f32 %v3240_v14, %v2144_v52  ;;  %v2441_v41 = vperm.slane %v2139_v7, 6  ;;  %vm2161_vm1 = vweird.f32 %v4683_v40  ;;  %v2165_v3 = vand.u32 2147483647, %v4683_v40 }
 0x2e1   : > { %vm2166_vm5 = vcmp.eq.f32.partialorder %v2165_v3, 8.507059e+37  ;;  %v4693_v29 = vpop.permute.xlu2 %2782  ;;  %v2893_v3 = vadd.s32 4294967208, %v4531_v32 }
 0x2e3   : > { %v3244_v49 = vpop.eup %3243 }
 0x2e4   : > { %v2708_v39 = vld [vmem:[#allocation1] sm:$0xff]  ;;  %vm2162_vm3 = vweird.f32 %v3244_v49 }
 0x2e5   : > { %2833 = vperm.xlu0 %3105, %v2708_v39   ;;  %2709 = vst [vmem:[#allocation1] ss:$9 sm:$0xff] %v2419_v23  ;;  %v2150_v23 = vand.u32 2147483647, %v4676_v12  ;;  %v2153_v39 = vor.u32 1.1754944e-38, %v2152_v55  ;;  %vm2163_vm4 = vmor %vm2161_vm1, %vm2162_vm3 }
 0x2e6   : > { %2710 = vst [vmem:[#allocation1 + $0x1] ss:$9 sm:$0xff] %v2420_v15  ;;  %v2442_v15 = vperm.slane %v2139_v7, 7 }
 0x2e7   : > { %2711 = vst [vmem:[#allocation1 + $0x2] ss:$9 sm:$0xff] %v2421_v9  ;;  %v2157_v9 = vmul.f32 %v3244_v49, %v4683_v40  ;;  %vm2151_vm0 = vcmp.eq.f32.partialorder %v2150_v23, 8.507059e+37 }
 0x2e8   : > { %2712 = vst [vmem:[#allocation1 + $0x3] ss:$9 sm:$0xff] %v2422_v4  ;;  %v2149_v4 = vsel %vm2148_vm15, %v3240_v14, %v2145_v34  ;;  %vm2945_vm15 = vcmask 1040384  }
 0x2e9   : > { %2713 = vst [vmem:[#allocation1 + $0x4] ss:$9 sm:$0xff] %v2423_v13  ;;  %v2154_v19 = vsel %vm2151_vm0, %v2153_v39, %v2149_v4  ;;  %v2158_v13 = vsub.f32 1.0, %v2157_v9  ;;  %v4699_v10 = vpop.permute.xlu2 %2791  ;;  %v2873_v39 = vadd.s32 4294967248, %v4531_v32  ;;  %v2877_v9 = vadd.s32 4294967240, %v4531_v32 }
 0x2ea   : > { %2714 = vst [vmem:[#allocation1 + $0x5] ss:$9 sm:$0xff] %v2424_v63  ;;  %v2443_v18 = vperm.slane %v2154_v19, 0  ;;  %v2444_v11 = vperm.slane %v2154_v19, 1  ;;  %v2445_v53 = vperm.slane %v2154_v19, 2  ;;  %v2447_v61 = vperm.slane %v2154_v19, 4 }
 0x2eb   : > { %2715 = vst [vmem:[#allocation1 + $0x6] ss:$9 sm:$0xff] %v2425_v25  ;;  %v2159_v44 = vmul.f32 %v3244_v49, %v2158_v13  ;;  %v2446_v25 = vperm.slane %v2154_v19, 3  ;;  %v2448_v37 = vperm.slane %v2154_v19, 5  ;;  %v2449_v43 = vperm.slane %v2154_v19, 6 }
 0x2ec   : > { %2716 = vst [vmem:[#allocation1 + $0x7] ss:$9 sm:$0xff] %v2426_v45  ;;  %v2167_v45 = vand.u32 2147483648, %v4683_v40  ;;  %v2450_v12 = vperm.slane %v2154_v19, 7  ;;  %vm2950_vm0 = vcmp.lt.s32.totalorder %v2850_v27, 256 }
 0x2ed   : > { %v2160_v46 = vadd.f32 %v3244_v49, %v2159_v44 }
 0x2ee   : > { %v2168_v47 = vor.u32 1.1754944e-38, %v2167_v45  ;;  %v2889_v45 = vadd.s32 4294967216, %v4531_v32 }
 0x2ef   : > { %v2164_v62 = vsel %vm2163_vm4, %v3244_v49, %v2160_v46 }
 0x2f0   : > { %v2169_v60 = vsel %vm2166_vm5, %v2168_v47, %v2164_v62 }
 0x2f1   : > { %v2452_v31 = vperm.slane %v2169_v60, 1  ;;  %v2456_v17 = vperm.slane %v2169_v60, 5  ;;  %v2458_v14 = vperm.slane %v2169_v60, 7  ;;  %v4705_v7 = vpop.permute.xlu2 %2800 }
 0x2f3   : > { %v2717_v33 = vld [vmem:[#allocation1] sm:$0xff] }
 0x2f4   : > { %2836 = vperm.xlu2 %3104, %v2717_v33   ;;  %2718 = vst [vmem:[#allocation1] ss:$9 sm:$0xff] %v2427_v38  ;;  %v2451_v38 = vperm.slane %v2169_v60, 0  ;;  %v2453_v33 = vperm.slane %v2169_v60, 2 }
 0x2f5   : > { %2719 = vst [vmem:[#allocation1 + $0x1] ss:$9 sm:$0xff] %v2428_v6 }
 0x2f6   : > { %2720 = vst [vmem:[#allocation1 + $0x2] ss:$9 sm:$0xff] %v2429_v8  ;;  %v2454_v8 = vperm.slane %v2169_v60, 3 }
 0x2f7   : > { %2721 = vst [vmem:[#allocation1 + $0x3] ss:$9 sm:$0xff] %v2430_v42  ;;  %v2455_v42 = vperm.slane %v2169_v60, 4 }
 0x2f8   : > { %2722 = vst [vmem:[#allocation1 + $0x4] ss:$9 sm:$0xff] %v2431_v22  ;;  %v2457_v22 = vperm.slane %v2169_v60, 6 }
 0x2f9   : > { %2723 = vst [vmem:[#allocation1 + $0x5] ss:$9 sm:$0xff] %v2432_v54  ;;  %v2777_v54 = vpop.permute.xlu1 %2776 }
 0x2fa   : > { %2724 = vst [vmem:[#allocation1 + $0x6] ss:$9 sm:$0xff] %v2433_v28  ;;  %v2780_v28 = vpop.permute.xlu0 %2779 }
 0x2fb   : > { %2725 = vst [vmem:[#allocation1 + $0x7] ss:$9 sm:$0xff] %v2434_v5 }
 0x301   : > { %v4695_v5 = vpop.permute.xlu1 %2785 }
 0x302   : > { %v2726_v35 = vld [vmem:[#allocation1] sm:$0xff]  ;;  %v4697_v21 = vpop.permute.xlu0 %2788 }
 0x303   : > { %2839 = vperm.xlu1 %3106, %v2726_v35   ;;  %2727 = vst [vmem:[#allocation1] ss:$9 sm:$0xff] %v2435_v59 }
 0x304   : > { %2728 = vst [vmem:[#allocation1 + $0x1] ss:$9 sm:$0xff] %v2436_v57  ;;  %v2810_v57 = vpop.permute.xlu2 %2809 }
 0x305   : > { %2729 = vst [vmem:[#allocation1 + $0x2] ss:$9 sm:$0xff] %v2437_v51  ;;  %v2916_v23 = vperm.slane %v2810_v57, %v4544_v48 }
 0x306   : > { %2730 = vst [vmem:[#allocation1 + $0x3] ss:$9 sm:$0xff] %v2438_v50 }
 0x307   : > { %2731 = vst [vmem:[#allocation1 + $0x4] ss:$9 sm:$0xff] %v2439_v0 }
 0x308   : > { %2732 = vst [vmem:[#allocation1 + $0x5] ss:$9 sm:$0xff] %v2440_v56 }
 0x309   : > { %2733 = vst [vmem:[#allocation1 + $0x6] ss:$9 sm:$0xff] %v2441_v41  ;;  %v4701_v2 = vpop.permute.xlu1 %2794 }
 0x30a   : > { %2734 = vst [vmem:[#allocation1 + $0x7] ss:$9 sm:$0xff] %v2442_v15  ;;  %v4703_v40 = vpop.permute.xlu0 %2797 }
 0x30c   : > { %v2819_v51 = vpop.permute.xlu2 %2818 }
 0x30d   : > { %v2922_v48 = vperm.slane %v2819_v51, %v4598_v20 }
 0x311   : > { %v2735_v63 = vld [vmem:[#allocation1] sm:$0xff]  ;;  %v2804_v58 = vpop.permute.xlu1 %2803 }
 0x312   : > { %2842 = vperm.xlu0 %3105, %v2735_v63   ;;  %2736 = vst [vmem:[#allocation1] ss:$9 sm:$0xff] %v2443_v18  ;;  %v2807_v59 = vpop.permute.xlu0 %2806  ;;  %v2913_v49 = vperm.slane %v2804_v58, %v4531_v32  ;;  %v2878_v63 = vperm.slane %v2777_v54, %v2877_v9 }
 0x313   : > { %2737 = vst [vmem:[#allocation1 + $0x1] ss:$9 sm:$0xff] %v2444_v11  ;;  %v2914_v50 = vperm.slane %v2807_v59, %v4539_v24  ;;  %v2881_v24 = vadd.s32 4294967232, %v4531_v32 }
 0x314   : > { %2738 = vst [vmem:[#allocation1 + $0x2] ss:$9 sm:$0xff] %v2445_v53  ;;  %v2885_v53 = vadd.s32 4294967224, %v4531_v32 }
 0x315   : > { %2739 = vst [vmem:[#allocation1 + $0x3] ss:$9 sm:$0xff] %v2446_v25  ;;  %v2915_v56 = vsel %vm2855_vm6, %v2914_v50, %v2913_v49  ;;  %vm2875_vm6 = vcmask 458112   ;;  %v2882_v25 = vperm.slane %v2780_v28, %v2881_v24 }
 0x316   : > { %2740 = vst [vmem:[#allocation1 + $0x4] ss:$9 sm:$0xff] %v2447_v61  ;;  %v2917_v4 = vsel %vm2859_vm7, %v2916_v23, %v2915_v56  ;;  %vm2883_vm7 = vcmask 589312  }
 0x317   : > { %2741 = vst [vmem:[#allocation1 + $0x5] ss:$9 sm:$0xff] %v2448_v37 }
 0x318   : > { %2742 = vst [vmem:[#allocation1 + $0x6] ss:$9 sm:$0xff] %v2449_v43 }
 0x319   : > { %2743 = vst [vmem:[#allocation1 + $0x7] ss:$9 sm:$0xff] %v2450_v12  ;;  %v2813_v52 = vpop.permute.xlu1 %2812 }
 0x31a   : > { %v2816_v35 = vpop.permute.xlu0 %2815  ;;  %v2918_v34 = vperm.slane %v2813_v52, %v4547_v36 }
 0x31b   : > { %v2920_v41 = vperm.slane %v2816_v35, %v4552_v16  ;;  %v2874_v16 = vperm.slane %v2774_v1, %v2873_v39 }
 0x31c   : > { %v2919_v19 = vsel %vm2863_vm8, %v2918_v34, %v2917_v4  ;;  %vm2887_vm8 = vcmask 654912  }
 0x31d   : > { %v2921_v18 = vsel %vm2867_vm9, %v2920_v41, %v2919_v19  ;;  %v2876_v46 = vsel %vm2875_vm6, %v2874_v16, %v4613_v30  ;;  %vm2891_vm9 = vcmask 720512  }
 0x31e   : > { %v2923_v61 = vsel %vm2871_vm2, %v2922_v48, %v2921_v18  ;;  %v2880_v47 = vsel %vm2879_vm10, %v2878_v63, %v2876_v46  ;;  %vm2895_vm2 = vcmask 786112  }
 0x320   : > { %v2744_v6 = vld [vmem:[#allocation1] sm:$0xff] }
 0x321   : > { %2845 = vperm.xlu2 %3104, %v2744_v6   ;;  %2745 = vst [vmem:[#allocation1] ss:$9 sm:$0xff] %v2451_v38  ;;  %v2822_v0 = vpop.permute.xlu1 %2821  ;;  %v2828_v15 = vpop.permute.xlu2 %2827  ;;  %v2886_v38 = vperm.slane %v4693_v29, %v2885_v53 }
 0x322   : > { %2746 = vst [vmem:[#allocation1 + $0x1] ss:$9 sm:$0xff] %v2452_v31  ;;  %v2924_v11 = vperm.slane %v2822_v0, %v2873_v39  ;;  %v2928_v62 = vperm.slane %v2828_v15, %v2881_v24  ;;  %v2884_v31 = vsel %vm2883_vm7, %v2882_v25, %v2880_v47  ;;  %v2909_v0 = vadd.s32 4294967176, %v4531_v32 }
 0x323   : > { %2747 = vst [vmem:[#allocation1 + $0x2] ss:$9 sm:$0xff] %v2453_v33  ;;  %v2897_v33 = vadd.s32 4294967200, %v4531_v32  ;;  %v2888_v28 = vsel %vm2887_vm8, %v2886_v38, %v2884_v31 }
 0x324   : > { %2748 = vst [vmem:[#allocation1 + $0x3] ss:$9 sm:$0xff] %v2454_v8  ;;  %v2925_v37 = vsel %vm2875_vm6, %v2924_v11, %v2923_v61  ;;  %v2890_v8 = vperm.slane %v4695_v5, %v2889_v45  ;;  %v2910_v39 = vperm.slane %v4705_v7, %v2909_v0 }
 0x325   : > { %2749 = vst [vmem:[#allocation1 + $0x4] ss:$9 sm:$0xff] %v2455_v42 }
 0x326   : > { %2750 = vst [vmem:[#allocation1 + $0x5] ss:$9 sm:$0xff] %v2456_v17  ;;  %v2894_v17 = vperm.slane %v4697_v21, %v2893_v3  ;;  %v2892_v59 = vsel %vm2891_vm9, %v2890_v8, %v2888_v28  ;;  %v2898_v21 = vperm.slane %v4699_v10, %v2897_v33 }
 0x327   : > { %2751 = vst [vmem:[#allocation1 + $0x6] ss:$9 sm:$0xff] %v2457_v22  ;;  %v2901_v22 = vadd.s32 4294967192, %v4531_v32 }
 0x328   : > { %2752 = vst [vmem:[#allocation1 + $0x7] ss:$9 sm:$0xff] %v2458_v14  ;;  %v2896_v57 = vsel %vm2895_vm2, %v2894_v17, %v2892_v59 }
 0x329   : > { %v2902_v5 = vperm.slane %v4701_v2, %v2901_v22  ;;  %v2900_v49 = vsel %vm2899_vm11, %v2898_v21, %v2896_v57 }
 0x32a   : > { %v2825_v55 = vpop.permute.xlu0 %2824 }
 0x32b   : > { %v2926_v44 = vperm.slane %v2825_v55, %v2877_v9  ;;  %v2904_v23 = vsel %vm2903_vm12, %v2902_v5, %v2900_v49 }
 0x32d   : > { %v2927_v43 = vsel %vm2879_vm10, %v2926_v44, %v2925_v37 }
 0x32e   : > { %v2929_v30 = vsel %vm2883_vm7, %v2928_v62, %v2927_v43 }
 0x32f   : > { %v2753_v26 = vld [vmem:[#allocation1] sm:$0xff] }
 0x330   : > { %2848 = vperm.xlu1 %3106, %v2753_v26   ;;  %v2905_v26 = vadd.s32 4294967184, %v4531_v32 }
 0x332   : > { %v2906_v51 = vperm.slane %v4703_v40, %v2905_v26 }
 0x334   : > { %v2908_v2 = vsel %vm2907_vm13, %v2906_v51, %v2904_v23 }
 0x335   : > { %v2912_v40 = vsel %vm2911_vm14, %v2910_v39, %v2908_v2 }
 0x348   : > { %v2831_v13 = vpop.permute.xlu1 %2830 }
 0x349   : > { %v2930_v12 = vperm.slane %v2831_v13, %v2885_v53 }
 0x34b   : > { %v2931_v14 = vsel %vm2887_vm8, %v2930_v12, %v2929_v30 }
 0x34e   : > { %v2837_v20 = vpop.permute.xlu2 %2836 }
 0x34f   : > { %v2934_v29 = vperm.slane %v2837_v20, %v2893_v3 }
 0x357   : > { %v2834_v36 = vpop.permute.xlu0 %2833 }
 0x358   : > { %v2932_v60 = vperm.slane %v2834_v36, %v2889_v45 }
 0x35a   : > { %v2933_v1 = vsel %vm2891_vm9, %v2932_v60, %v2931_v14 }
 0x35b   : > { %v2935_v35 = vsel %vm2895_vm2, %v2934_v29, %v2933_v1 }
 0x375   : > { %v2840_v6 = vpop.permute.xlu1 %2839 }
 0x376   : > { %v2936_v54 = vperm.slane %v2840_v6, %v2897_v33 }
 0x378   : > { %v2937_v50 = vsel %vm2899_vm11, %v2936_v54, %v2935_v35 }
 0x37b   : > { %v2846_v52 = vpop.permute.xlu2 %2845 }
 0x37c   : > { %v2940_v56 = vperm.slane %v2846_v52, %v2905_v26 }
 0x384   : > { %v2843_v42 = vpop.permute.xlu0 %2842 }
 0x385   : > { %v2938_v58 = vperm.slane %v2843_v42, %v2901_v22 }
 0x387   : > { %v2939_v55 = vsel %vm2903_vm12, %v2938_v58, %v2937_v50 }
 0x388   : > { %v2941_v15 = vsel %vm2907_vm13, %v2940_v56, %v2939_v55 }
 0x3a2   : > { %v2849_v34 = vpop.permute.xlu1 %2848 }
 0x3a3   : > { %v2942_v41 = vperm.slane %v2849_v34, %v2909_v0 }
 0x3a5   : > { %v2943_v10 = vsel %vm2911_vm14, %v2942_v41, %v2941_v15 }
 0x3a6   : > { %v2944_v32 = vrot.slane %v2943_v10, 7 }
 0x3a8   : > { %v2946_v9 = vsel %vm2945_vm15, %v2912_v40, %v2944_v32 }
 0x3a9   : > { %2952 = vst.msk [vmem:[%s223_s29] sm:$0x3] %vm2950_vm0, %v2946_v9 }
 0x3aa PF: > { %s16_s20 = sadd.s32 1, %s3262_s20  }
 0x3ab   : > { %p13_p4 = scmp.ge.s32.totalorder %s16_s20, 4  }
 0x3ad   :  { %15 = sbr.rel (!%p13_p4) target bundleno = 2 (0x2), region = 80 }

</bundles_post_ra>
